<compile_context>
chip_gen: v7x
topology: tpu7x:2x2x1
jax: 0.10.0
libtpu: 0.0.40
codegen_flags: <defaults>
</compile_context>

<pallas_src>
import functools
import math

import jax
import jax.numpy as jnp
from jax.experimental import pallas as pl
from jax.experimental.pallas import tpu as pltpu

LN_EPS = 1e-5          # matches nn.LayerNorm default
MASK_FILL = -1e30      # f32 mask fill (do NOT downcast to bf16)

# Row indices into the packed (16, D) parameter-vector stack.
_LN1_G, _LN1_B, _BQ1, _BK1, _BV1, _BO1 = 0, 1, 2, 3, 4, 5
_LN2_G, _LN2_B, _BQ2, _BK2, _BV2, _BO2 = 6, 7, 8, 9, 10, 11
_LN3_G, _LN3_B, _B2 = 12, 13, 14
_NUM_VEC_ROWS = 16     # padded to a sublane multiple


# ----------------------------------------------------------------------------
# Shared math (traced inside the Pallas kernel AND used for the XLA reference;
# the packed-parameter containers may be Refs or plain arrays — only static
# indexing is used on them, which works for both).
# ----------------------------------------------------------------------------
def _layer_norm(z, g, b):
    mu = jnp.mean(z, axis=-1, keepdims=True)
    var = jnp.mean(jnp.square(z - mu), axis=-1, keepdims=True)
    return (z - mu) * jax.lax.rsqrt(var + LN_EPS) * g + b


def _softmax(sc):
    m = jnp.max(sc, axis=-1, keepdims=True)
    e = jnp.exp(sc - m)
    return e / jnp.sum(e, axis=-1, keepdims=True)


def _mha_packed(q_ln, kv_ln, keep, attn_w, w_base, bq, bk, bv, bo, *, num_heads):
    """Multi-head attention over a (Bt, ., D) block.

    q_ln:  (Bt, S, D) f32 (already layer-normed)    kv_ln: (Bt, T, D) f32
    keep:  bool (Bt, S, T) or (Bt, 1, T); True = attend
    attn_w: (8, D, D) bf16 stack; rows w_base..w_base+3 are Wq, Wk, Wv, Wo
    Biases are f32 (D,).  MXU operands are bf16, accumulation is f32.
    """
    Bt, S, D = q_ln.shape
    T = kv_ln.shape[1]
    H = num_heads
    dh = D // H
    scale = 1.0 / math.sqrt(dh)
    bf16 = jnp.bfloat16
    f32 = jnp.float32

    # Dense projections with batch folded into the matmul M dimension.
    q2 = q_ln.reshape(Bt * S, D).astype(bf16)
    kv2 = kv_ln.reshape(Bt * T, D).astype(bf16)
    q = jnp.dot(q2, attn_w[w_base + 0], preferred_element_type=f32) + bq   # (Bt*S, D)
    k = jnp.dot(kv2, attn_w[w_base + 1], preferred_element_type=f32) + bk  # (Bt*T, D)
    v = jnp.dot(kv2, attn_w[w_base + 2], preferred_element_type=f32) + bv  # (Bt*T, D)

    # Scores / context per batch element (static unroll over the small Bt).
    # TODO(synk): revisit the head-split layout (dh=32 lane slices + swapaxes)
    #   for production sequence lengths; confirm relayout cost in bundle dump.
    ctx_rows = []
    for b in range(Bt):
        qh = jnp.swapaxes(q[b * S:(b + 1) * S].reshape(S, H, dh), 0, 1)    # (H,S,dh)
        kh = jnp.swapaxes(k[b * T:(b + 1) * T].reshape(T, H, dh), 0, 1)    # (H,T,dh)
        vh = jnp.swapaxes(v[b * T:(b + 1) * T].reshape(T, H, dh), 0, 1)    # (H,T,dh)
        sc = jnp.einsum("hsd,htd->hst", qh.astype(bf16), kh.astype(bf16),
                        preferred_element_type=f32) * scale                # (H,S,T)
        sc = jnp.where(keep[b][None], sc, MASK_FILL)
        p = _softmax(sc)
        ctx = jnp.einsum("hst,htd->hsd", p.astype(bf16), vh.astype(bf16),
                         preferred_element_type=f32)                       # (H,S,dh)
        ctx_rows.append(jnp.swapaxes(ctx, 0, 1).reshape(S, D))
    ctx = jnp.concatenate(ctx_rows, axis=0) if Bt > 1 else ctx_rows[0]     # (Bt*S, D)

    out = jnp.dot(ctx.astype(bf16), attn_w[w_base + 3],
                  preferred_element_type=f32) + bo
    return out.reshape(Bt, S, D)


def _block_math(vecs, attn_w, w1, b1, w2, y, y_keep, x, x_keep, *, num_heads):
    """Full decoder block on one (Bt, S, D) tile. `vecs`/`attn_w`/`w1`/`b1`/`w2`
    may be Refs (kernel) or arrays (reference)."""
    Bt, S, D = y.shape
    bf16 = jnp.bfloat16
    f32 = jnp.float32

    # --- sublayer 1: y = y + SelfAttn(LN1(y), y_mask) ---
    yn = _layer_norm(y, vecs[_LN1_G], vecs[_LN1_B])
    y = y + _mha_packed(yn, yn, y_keep, attn_w, 0,
                        vecs[_BQ1], vecs[_BK1], vecs[_BV1], vecs[_BO1],
                        num_heads=num_heads)

    # --- sublayer 2: y = y + CrossAttn(LN2(y), x, x_mask) ---
    yn = _layer_norm(y, vecs[_LN2_G], vecs[_LN2_B])
    y = y + _mha_packed(yn, x, x_keep, attn_w, 4,
                        vecs[_BQ2], vecs[_BK2], vecs[_BV2], vecs[_BO2],
                        num_heads=num_heads)

    # --- sublayer 3: y = y + FFN(LN3(y)) ---
    yn = _layer_norm(y, vecs[_LN3_G], vecs[_LN3_B])
    yn2 = yn.reshape(Bt * S, D).astype(bf16)
    h = jnp.dot(yn2, w1[...], preferred_element_type=f32) + b1[0]
    h = jnp.maximum(h, 0.0)
    ff = jnp.dot(h.astype(bf16), w2[...], preferred_element_type=f32) + vecs[_B2]
    return y + ff.reshape(Bt, S, D)


# ----------------------------------------------------------------------------
# Fused decoder-block kernel (one batch tile of Bt elements per grid step)
# ----------------------------------------------------------------------------
def _decoder_block_kernel(vec_ref, attn_w_ref, w1_ref, b1_ref, w2_ref,
                          y_ref, y_mask_ref, x_ref, x_mask_ref,
                          out_ref, *, num_heads):
    y_keep = y_mask_ref[...] > 0.0        # (Bt, S, S), computed once
    x_keep = x_mask_ref[...] > 0.0        # (Bt, 1, T), computed once
    out_ref[...] = _block_math(vec_ref, attn_w_ref, w1_ref, b1_ref, w2_ref,
                               y_ref[...], y_keep, x_ref[...], x_keep,
                               num_heads=num_heads)


# ----------------------------------------------------------------------------
# Parameter packing (done once in the wrapper; weights cast to bf16)
# ----------------------------------------------------------------------------
def pack_params(params):
    sa, ca, ff = params["self_attn"], params["cross_attn"], params["ffn"]
    D = sa["wq"].shape[0]
    rows = [sa["ln_g"], sa["ln_b"], sa["bq"], sa["bk"], sa["bv"], sa["bo"],
            ca["ln_g"], ca["ln_b"], ca["bq"], ca["bk"], ca["bv"], ca["bo"],
            ff["ln_g"], ff["ln_b"], ff["b2"]]
    pad = _NUM_VEC_ROWS - len(rows)
    vecs = jnp.concatenate(
        [r.reshape(1, D).astype(jnp.float32) for r in rows]
        + [jnp.zeros((pad, D), jnp.float32)], axis=0)                      # (16, D)
    attn_w = jnp.stack([sa["wq"], sa["wk"], sa["wv"], sa["wo"],
                        ca["wq"], ca["wk"], ca["wv"], ca["wo"]]).astype(jnp.bfloat16)
    w1 = ff["w1"].astype(jnp.bfloat16)
    w2 = ff["w2"].astype(jnp.bfloat16)
    b1 = ff["b1"].reshape(1, -1).astype(jnp.float32)
    return vecs, attn_w, w1, b1, w2


# ----------------------------------------------------------------------------
# Wrapper: single pallas_call for the whole decoder block
# ----------------------------------------------------------------------------
def decoder_block(params, y, y_mask, x, x_mask, *, num_heads, batch_tile=None):
    B, S, D = y.shape
    assert D % num_heads == 0, "dim_embed must be divisible by num_heads"
    Bt = B if batch_tile is None else batch_tile
    assert B % Bt == 0, "batch_tile must divide batch"

    vecs, attn_w, w1, b1, w2 = pack_params(params)

    def rep(shape):                       # replicated: constant block index
        nd = len(shape)
        return pl.BlockSpec(tuple(shape), lambda b, _n=nd: (0,) * _n)

    def bat(shape):                       # batched: Bt elements per grid step
        nd = len(shape)
        return pl.BlockSpec((Bt,) + tuple(shape[1:]),
                            lambda b, _n=nd: (b,) + (0,) * (_n - 1))

    kernel = functools.partial(_decoder_block_kernel, num_heads=num_heads)
    return pl.pallas_call(
        kernel,
        out_shape=jax.ShapeDtypeStruct((B, S, D), jnp.float32),
        grid=(B // Bt,),
        in_specs=[rep(vecs.shape), rep(attn_w.shape), rep(w1.shape),
                  rep(b1.shape), rep(w2.shape),
                  bat(y.shape), bat(y_mask.shape), bat(x.shape), bat(x_mask.shape)],
        out_specs=bat((B, S, D)),
        compiler_params=pltpu.CompilerParams(
            dimension_semantics=("parallel",),
            vmem_limit_bytes=32 * 1024 * 1024),
    )(vecs, attn_w, w1, b1, w2, y, y_mask, x, x_mask)


# ----------------------------------------------------------------------------
# References
# ----------------------------------------------------------------------------
def decoder_block_ref(params, y, y_mask, x, x_mask, *, num_heads):
    """XLA reference with the SAME bf16-operand / f32-accumulate math."""
    vecs, attn_w, w1, b1, w2 = pack_params(params)
    return _block_math(vecs, attn_w, w1, b1, w2,
                       y, y_mask > 0.0, x, x_mask > 0.0, num_heads=num_heads)


def decoder_block_ref_f32(params, y, y_mask, x, x_mask, *, num_heads):
    """Full-f32 (PyTorch-module-faithful) reference."""
    def ln(z, g, b):
        mu = z.mean(-1, keepdims=True)
        var = jnp.square(z - mu).mean(-1, keepdims=True)
        return (z - mu) * jax.lax.rsqrt(var + LN_EPS) * g + b

    def mha(p, q_in, kv_in, mask):
        B, S, D = q_in.shape
        T = kv_in.shape[1]
        dh = D // num_heads
        q = q_in @ p["wq"] + p["bq"][0]
        k = kv_in @ p["wk"] + p["bk"][0]
        v = kv_in @ p["wv"] + p["bv"][0]
        q = q.reshape(B, S, num_heads, dh)
        k = k.reshape(B, T, num_heads, dh)
        v = v.reshape(B, T, num_heads, dh)
        sc = jnp.einsum("bqhd,bkhd->bhqk", q, k) / math.sqrt(dh)
        sc = jnp.where(mask[:, None] > 0, sc, MASK_FILL)
        pr = jax.nn.softmax(sc, axis=-1)
        ctx = jnp.einsum("bhqk,bkhd->bqhd", pr, v).reshape(B, S, D)
        return ctx @ p["wo"] + p["bo"][0]

    p = params["self_attn"]
    yn = ln(y, p["ln_g"][0], p["ln_b"][0])
    y = y + mha(p, yn, yn, y_mask)
    p = params["cross_attn"]
    yn = ln(y, p["ln_g"][0], p["ln_b"][0])
    y = y + mha(p, yn, x, x_mask)
    p = params["ffn"]
    yn = ln(y, p["ln_g"][0], p["ln_b"][0])
    h = jnp.maximum(yn @ p["w1"] + p["b1"][0], 0.0)
    return y + (h @ p["w2"] + p["b2"][0])


# ----------------------------------------------------------------------------
# Deterministic parameter construction
# ----------------------------------------------------------------------------
def init_params(key, dim_embed, dim_pwff):
    def lin(k, din, dout):
        kw, kb = jax.random.split(k)
        w = jax.random.normal(kw, (din, dout), jnp.float32) * 0.1
        b = jax.random.normal(kb, (1, dout), jnp.float32) * 0.01
        return w, b

    def attn_params(k):
        ks = jax.random.split(k, 4)
        wq, bq = lin(ks[0], dim_embed, dim_embed)
        wk, bk = lin(ks[1], dim_embed, dim_embed)
        wv, bv = lin(ks[2], dim_embed, dim_embed)
        wo, bo = lin(ks[3], dim_embed, dim_embed)
        return {"ln_g": jnp.ones((1, dim_embed), jnp.float32),
                "ln_b": jnp.zeros((1, dim_embed), jnp.float32),
                "wq": wq, "bq": bq, "wk": wk, "bk": bk,
                "wv": wv, "bv": bv, "wo": wo, "bo": bo}

    k1, k2, k3 = jax.random.split(key, 3)
    w1, b1 = lin(jax.random.fold_in(k3, 0), dim_embed, dim_pwff)
    w2, b2 = lin(jax.random.fold_in(k3, 1), dim_pwff, dim_embed)
    return {
        "self_attn": attn_params(k1),
        "cross_attn": attn_params(k2),
        "ffn": {"ln_g": jnp.ones((1, dim_embed), jnp.float32),
                "ln_b": jnp.zeros((1, dim_embed), jnp.float32),
                "w1": w1, "b1": b1, "w2": w2, "b2": b2},
    }


# ----------------------------------------------------------------------------
if __name__ == "__main__":
    NUM_HEADS = 4
    DIM_EMBED = 128     # lane-dense; dh = 32
    DIM_PWFF = 256
    B, S_TGT, S_SRC = 2, 8, 16   # Bt*S = 16 rows -> bf16 sublane packing friendly

    key = jax.random.PRNGKey(0)
    kp, ky, kx = jax.random.split(key, 3)
    params = init_params(kp, DIM_EMBED, DIM_PWFF)

    y = jax.random.normal(ky, (B, S_TGT, DIM_EMBED), jnp.float32)
    x = jax.random.normal(kx, (B, S_SRC, DIM_EMBED), jnp.float32)

    # causal target mask (B, S, S); 1 = attend, 0 = masked
    y_mask = jnp.broadcast_to(
        jnp.tril(jnp.ones((S_TGT, S_TGT), jnp.float32)), (B, S_TGT, S_TGT))
    # source padding mask (B, 1, S_SRC): batch 1 has its last 3 positions padded
    x_mask = jnp.ones((B, 1, S_SRC), jnp.float32)
    x_mask = x_mask.at[1, 0, -3:].set(0.0)

    out = decoder_block(params, y, y_mask, x, x_mask, num_heads=NUM_HEADS)
    out = jax.block_until_ready(out)
    assert out.shape == (B, S_TGT, DIM_EMBED)

    # 1) Tight check against an XLA reference with identical bf16-operand /
    #    f32-accumulate numerics (verifies the kernel's math & plumbing).
    ref = decoder_block_ref(params, y, y_mask, x, x_mask, num_heads=NUM_HEADS)
    ref = jax.block_until_ready(ref)
    err = jnp.max(jnp.abs(out - ref))
    assert jnp.allclose(out, ref, atol=2e-3, rtol=2e-3), \
        f"max abs err vs bf16-matched ref = {err}"

    # 2) Sanity check against the full-f32 (PyTorch-faithful) reference; the
    #    looser tolerance bounds the bf16 MXU-operand quantization error.
    with jax.default_matmul_precision("highest"):
        ref32 = decoder_block_ref_f32(params, y, y_mask, x, x_mask,
                                      num_heads=NUM_HEADS)
        ref32 = jax.block_until_ready(ref32)
    err32 = jnp.max(jnp.abs(out - ref32))
    assert jnp.allclose(out, ref32, atol=5e-2, rtol=5e-2), \
        f"max abs err vs f32 ref = {err32}"

    print("KERNEL_OK")
</pallas_src>

<mosaic_0001>
module attributes {stable_mosaic.version = 11 : i64} {
  func.func @_decoder_block_kernel(%arg0: i32, %arg1: memref<16x128xf32, #tpu.memory_space<vmem>>, %arg2: memref<8x128x128xbf16, #tpu.memory_space<vmem>>, %arg3: memref<128x256xbf16, #tpu.memory_space<vmem>>, %arg4: memref<1x256xf32, #tpu.memory_space<vmem>>, %arg5: memref<256x128xbf16, #tpu.memory_space<vmem>>, %arg6: memref<2x8x128xf32, #tpu.memory_space<vmem>>, %arg7: memref<2x8x8xf32, #tpu.memory_space<vmem>>, %arg8: memref<2x16x128xf32, #tpu.memory_space<vmem>>, %arg9: memref<2x1x16xf32, #tpu.memory_space<vmem>>, %arg10: memref<2x8x128xf32, #tpu.memory_space<vmem>>) attributes {dimension_semantics = [#tpu.dimension_semantics<parallel>], iteration_bounds = array<i64: 1>, scalar_prefetch = 0 : i64, scratch_operands = 0 : i64, tpu.core_type = #tpu.core_type<tc>, window_params = [{pipeline_mode = #tpu.pipeline_mode<synchronous>, transform_indices = @transform_0, window_bounds = array<i64: 16, 128>}, {pipeline_mode = #tpu.pipeline_mode<synchronous>, transform_indices = @transform_1, window_bounds = array<i64: 8, 128, 128>}, {pipeline_mode = #tpu.pipeline_mode<synchronous>, transform_indices = @transform_2, window_bounds = array<i64: 128, 256>}, {pipeline_mode = #tpu.pipeline_mode<synchronous>, transform_indices = @transform_3, window_bounds = array<i64: 1, 256>}, {pipeline_mode = #tpu.pipeline_mode<synchronous>, transform_indices = @transform_4, window_bounds = array<i64: 256, 128>}, {transform_indices = @transform_5, window_bounds = array<i64: 2, 8, 128>}, {transform_indices = @transform_6, window_bounds = array<i64: 2, 8, 8>}, {transform_indices = @transform_7, window_bounds = array<i64: 2, 16, 128>}, {transform_indices = @transform_8, window_bounds = array<i64: 2, 1, 16>}, {transform_indices = @transform_9, window_bounds = array<i64: 2, 8, 128>}]} {
    %c0 = arith.constant 0 : index
    %c0_0 = arith.constant 0 : index
    %c0_1 = arith.constant 0 : index
    %0 = vector.load %arg7[%c0, %c0_0, %c0_1] : memref<2x8x8xf32, #tpu.memory_space<vmem>>, vector<2x8x8xf32>
    %cst = arith.constant 0.000000e+00 : f32
    %1 = vector.broadcast %cst : f32 to vector<2x8x8xf32>
    %2 = arith.cmpf ogt, %0, %1 : vector<2x8x8xf32>
    %c0_2 = arith.constant 0 : index
    %c0_3 = arith.constant 0 : index
    %c0_4 = arith.constant 0 : index
    %3 = vector.load %arg9[%c0_2, %c0_3, %c0_4] : memref<2x1x16xf32, #tpu.memory_space<vmem>>, vector<2x1x16xf32>
    %cst_5 = arith.constant 0.000000e+00 : f32
    %4 = vector.broadcast %cst_5 : f32 to vector<2x1x16xf32>
    %5 = arith.cmpf ogt, %3, %4 : vector<2x1x16xf32>
    %c0_6 = arith.constant 0 : index
    %c0_7 = arith.constant 0 : index
    %c0_8 = arith.constant 0 : index
    %6 = vector.load %arg6[%c0_6, %c0_7, %c0_8] : memref<2x8x128xf32, #tpu.memory_space<vmem>>, vector<2x8x128xf32>
    %c0_9 = arith.constant 0 : index
    %c0_10 = arith.constant 0 : index
    %c0_11 = arith.constant 0 : index
    %7 = vector.load %arg8[%c0_9, %c0_10, %c0_11] : memref<2x16x128xf32, #tpu.memory_space<vmem>>, vector<2x16x128xf32>
    %c0_12 = arith.constant 0 : index
    %c0_13 = arith.constant 0 : index
    %8 = vector.load %arg1[%c0_12, %c0_13] : memref<16x128xf32, #tpu.memory_space<vmem>>, vector<1x128xf32>
    %9 = vector.shape_cast %8 : vector<1x128xf32> to vector<128xf32>
    %c1 = arith.constant 1 : index
    %c0_14 = arith.constant 0 : index
    %10 = vector.load %arg1[%c1, %c0_14] : memref<16x128xf32, #tpu.memory_space<vmem>>, vector<1x128xf32>
    %11 = vector.shape_cast %10 : vector<1x128xf32> to vector<128xf32>
    %cst_15 = arith.constant dense<0.000000e+00> : vector<2x8xf32>
    %12 = vector.multi_reduction <add>, %6, %cst_15 [2] : vector<2x8x128xf32> to vector<2x8xf32>
    %13 = vector.shape_cast %12 : vector<2x8xf32> to vector<2x8x1xf32>
    %cst_16 = arith.constant 1.280000e+02 : f32
    %14 = vector.broadcast %cst_16 : f32 to vector<2x8x1xf32>
    %15 = arith.divf %13, %14 : vector<2x8x1xf32>
    %16 = vector.broadcast %15 : vector<2x8x1xf32> to vector<2x8x128xf32>
    %17 = arith.subf %6, %16 : vector<2x8x128xf32>
    %18 = arith.mulf %17, %17 : vector<2x8x128xf32>
    %cst_17 = arith.constant dense<0.000000e+00> : vector<2x8xf32>
    %19 = vector.multi_reduction <add>, %18, %cst_17 [2] : vector<2x8x128xf32> to vector<2x8xf32>
    %20 = vector.shape_cast %19 : vector<2x8xf32> to vector<2x8x1xf32>
    %cst_18 = arith.constant 1.280000e+02 : f32
    %21 = vector.broadcast %cst_18 : f32 to vector<2x8x1xf32>
    %22 = arith.divf %20, %21 : vector<2x8x1xf32>
    %23 = vector.broadcast %15 : vector<2x8x1xf32> to vector<2x8x128xf32>
    %24 = arith.subf %6, %23 : vector<2x8x128xf32>
    %cst_19 = arith.constant 9.99999974E-6 : f32
    %25 = vector.broadcast %cst_19 : f32 to vector<2x8x1xf32>
    %26 = arith.addf %22, %25 : vector<2x8x1xf32>
    %27 = math.rsqrt %26 : vector<2x8x1xf32>
    %28 = vector.broadcast %27 : vector<2x8x1xf32> to vector<2x8x128xf32>
    %29 = arith.mulf %24, %28 : vector<2x8x128xf32>
    %30 = vector.shape_cast %9 : vector<128xf32> to vector<1x1x128xf32>
    %31 = vector.broadcast %30 : vector<1x1x128xf32> to vector<2x8x128xf32>
    %32 = arith.mulf %29, %31 : vector<2x8x128xf32>
    %33 = vector.shape_cast %11 : vector<128xf32> to vector<1x1x128xf32>
    %34 = vector.broadcast %33 : vector<1x1x128xf32> to vector<2x8x128xf32>
    %35 = arith.addf %32, %34 : vector<2x8x128xf32>
    %c2 = arith.constant 2 : index
    %c0_20 = arith.constant 0 : index
    %36 = vector.load %arg1[%c2, %c0_20] : memref<16x128xf32, #tpu.memory_space<vmem>>, vector<1x128xf32>
    %37 = vector.shape_cast %36 : vector<1x128xf32> to vector<128xf32>
    %c3 = arith.constant 3 : index
    %c0_21 = arith.constant 0 : index
    %38 = vector.load %arg1[%c3, %c0_21] : memref<16x128xf32, #tpu.memory_space<vmem>>, vector<1x128xf32>
    %39 = vector.shape_cast %38 : vector<1x128xf32> to vector<128xf32>
    %c4 = arith.constant 4 : index
    %c0_22 = arith.constant 0 : index
    %40 = vector.load %arg1[%c4, %c0_22] : memref<16x128xf32, #tpu.memory_space<vmem>>, vector<1x128xf32>
    %41 = vector.shape_cast %40 : vector<1x128xf32> to vector<128xf32>
    %c5 = arith.constant 5 : index
    %c0_23 = arith.constant 0 : index
    %42 = vector.load %arg1[%c5, %c0_23] : memref<16x128xf32, #tpu.memory_space<vmem>>, vector<1x128xf32>
    %43 = vector.shape_cast %42 : vector<1x128xf32> to vector<128xf32>
    %44 = vector.shape_cast %35 : vector<2x8x128xf32> to vector<16x128xf32>
    %45 = arith.truncf %44 : vector<16x128xf32> to vector<16x128xbf16>
    %46 = vector.shape_cast %35 : vector<2x8x128xf32> to vector<16x128xf32>
    %47 = arith.truncf %46 : vector<16x128xf32> to vector<16x128xbf16>
    %c0_24 = arith.constant 0 : index
    %c0_25 = arith.constant 0 : index
    %c0_26 = arith.constant 0 : index
    %48 = vector.load %arg2[%c0_24, %c0_25, %c0_26] : memref<8x128x128xbf16, #tpu.memory_space<vmem>>, vector<1x128x128xbf16>
    %49 = vector.shape_cast %48 : vector<1x128x128xbf16> to vector<128x128xbf16>
    %cst_27 = arith.constant dense<0.000000e+00> : vector<16x128xf32>
    %50 = tpu.matmul %45, %49, %cst_27 {dimension_numbers = #tpu.dot_dimension_numbers<[1], [0], [0], [1], [0, 0, 1, 1], [], []>} : vector<16x128xbf16>, vector<128x128xbf16>, vector<16x128xf32> -> vector<16x128xf32>
    %51 = vector.shape_cast %37 : vector<128xf32> to vector<1x128xf32>
    %52 = vector.broadcast %51 : vector<1x128xf32> to vector<16x128xf32>
    %53 = arith.addf %50, %52 : vector<16x128xf32>
    %c1_28 = arith.constant 1 : index
    %c0_29 = arith.constant 0 : index
    %c0_30 = arith.constant 0 : index
    %54 = vector.load %arg2[%c1_28, %c0_29, %c0_30] : memref<8x128x128xbf16, #tpu.memory_space<vmem>>, vector<1x128x128xbf16>
    %55 = vector.shape_cast %54 : vector<1x128x128xbf16> to vector<128x128xbf16>
    %cst_31 = arith.constant dense<0.000000e+00> : vector<16x128xf32>
    %56 = tpu.matmul %47, %55, %cst_31 {dimension_numbers = #tpu.dot_dimension_numbers<[1], [0], [0], [1], [0, 0, 1, 1], [], []>} : vector<16x128xbf16>, vector<128x128xbf16>, vector<16x128xf32> -> vector<16x128xf32>
    %57 = vector.shape_cast %39 : vector<128xf32> to vector<1x128xf32>
    %58 = vector.broadcast %57 : vector<1x128xf32> to vector<16x128xf32>
    %59 = arith.addf %56, %58 : vector<16x128xf32>
    %c2_32 = arith.constant 2 : index
    %c0_33 = arith.constant 0 : index
    %c0_34 = arith.constant 0 : index
    %60 = vector.load %arg2[%c2_32, %c0_33, %c0_34] : memref<8x128x128xbf16, #tpu.memory_space<vmem>>, vector<1x128x128xbf16>
    %61 = vector.shape_cast %60 : vector<1x128x128xbf16> to vector<128x128xbf16>
    %cst_35 = arith.constant dense<0.000000e+00> : vector<16x128xf32>
    %62 = tpu.matmul %47, %61, %cst_35 {dimension_numbers = #tpu.dot_dimension_numbers<[1], [0], [0], [1], [0, 0, 1, 1], [], []>} : vector<16x128xbf16>, vector<128x128xbf16>, vector<16x128xf32> -> vector<16x128xf32>
    %63 = vector.shape_cast %41 : vector<128xf32> to vector<1x128xf32>
    %64 = vector.broadcast %63 : vector<1x128xf32> to vector<16x128xf32>
    %65 = arith.addf %62, %64 : vector<16x128xf32>
    %66 = vector.extract_strided_slice %53 {offsets = [0, 0], sizes = [8, 128], strides = [1, 1]} : vector<16x128xf32> to vector<8x128xf32>
    %67 = vector.shape_cast %66 : vector<8x128xf32> to vector<8x4x32xf32>
    %68 = tpu.transpose %67, [1, 0, 2] : vector<8x4x32xf32> -> vector<4x8x32xf32>
    %69 = vector.extract_strided_slice %59 {offsets = [0, 0], sizes = [8, 128], strides = [1, 1]} : vector<16x128xf32> to vector<8x128xf32>
    %70 = vector.shape_cast %69 : vector<8x128xf32> to vector<8x4x32xf32>
    %71 = tpu.transpose %70, [1, 0, 2] : vector<8x4x32xf32> -> vector<4x8x32xf32>
    %72 = vector.extract_strided_slice %65 {offsets = [0, 0], sizes = [8, 128], strides = [1, 1]} : vector<16x128xf32> to vector<8x128xf32>
    %73 = vector.shape_cast %72 : vector<8x128xf32> to vector<8x4x32xf32>
    %74 = tpu.transpose %73, [1, 0, 2] : vector<8x4x32xf32> -> vector<4x8x32xf32>
    %75 = arith.truncf %68 : vector<4x8x32xf32> to vector<4x8x32xbf16>
    %76 = arith.truncf %71 : vector<4x8x32xf32> to vector<4x8x32xbf16>
    "tpu.trace_start"() <{level = 10 : i32, message = "hsd,htd->hst"}> : () -> ()
    %cst_36 = arith.constant dense<0.000000e+00> : vector<4x8x8xf32>
    %77 = tpu.matmul %75, %76, %cst_36 {dimension_numbers = #tpu.dot_dimension_numbers<[2], [2], [1], [1], [0, 0, 0, 1, 1, 1], [0], [0]>} : vector<4x8x32xbf16>, vector<4x8x32xbf16>, vector<4x8x8xf32> -> vector<4x8x8xf32>
    "tpu.trace_stop"() : () -> ()
    %cst_37 = arith.constant 0.176776692 : f32
    %78 = vector.broadcast %cst_37 : f32 to vector<4x8x8xf32>
    %79 = arith.mulf %77, %78 : vector<4x8x8xf32>
    %80 = vector.extract_strided_slice %2 {offsets = [0, 0, 0], sizes = [1, 8, 8], strides = [1, 1, 1]} : vector<2x8x8xi1> to vector<1x8x8xi1>
    %81 = vector.shape_cast %80 : vector<1x8x8xi1> to vector<8x8xi1>
    %82 = vector.shape_cast %81 : vector<8x8xi1> to vector<1x8x8xi1>
    %cst_38 = arith.constant -1.000000e+30 : f32
    %83 = vector.shape_cast %82 : vector<1x8x8xi1> to vector<1x8x8xi1>
    %84 = vector.broadcast %83 : vector<1x8x8xi1> to vector<4x8x8xi1>
    %85 = vector.broadcast %cst_38 : f32 to vector<4x8x8xf32>
    %86 = arith.select %84, %79, %85 : vector<4x8x8xi1>, vector<4x8x8xf32>
    %cst_39 = arith.constant dense<0xFF800000> : vector<4x8xf32>
    %87 = vector.multi_reduction <maximumf>, %86, %cst_39 [2] : vector<4x8x8xf32> to vector<4x8xf32>
    %88 = vector.shape_cast %87 : vector<4x8xf32> to vector<4x8x1xf32>
    %89 = vector.broadcast %88 : vector<4x8x1xf32> to vector<4x8x8xf32>
    %90 = arith.subf %86, %89 : vector<4x8x8xf32>
    %91 = math.exp %90 : vector<4x8x8xf32>
    %cst_40 = arith.constant dense<0.000000e+00> : vector<4x8xf32>
    %92 = vector.multi_reduction <add>, %91, %cst_40 [2] : vector<4x8x8xf32> to vector<4x8xf32>
    %93 = vector.shape_cast %92 : vector<4x8xf32> to vector<4x8x1xf32>
    %94 = vector.broadcast %93 : vector<4x8x1xf32> to vector<4x8x8xf32>
    %95 = arith.divf %91, %94 : vector<4x8x8xf32>
    %96 = arith.truncf %95 : vector<4x8x8xf32> to vector<4x8x8xbf16>
    %97 = arith.truncf %74 : vector<4x8x32xf32> to vector<4x8x32xbf16>
    "tpu.trace_start"() <{level = 10 : i32, message = "hst,htd->hsd"}> : () -> ()
    %cst_41 = arith.constant dense<0.000000e+00> : vector<4x8x32xf32>
    %98 = tpu.matmul %96, %97, %cst_41 {dimension_numbers = #tpu.dot_dimension_numbers<[2], [1], [1], [2], [0, 0, 0, 1, 1, 2], [0], [0]>} : vector<4x8x8xbf16>, vector<4x8x32xbf16>, vector<4x8x32xf32> -> vector<4x8x32xf32>
    "tpu.trace_stop"() : () -> ()
    %99 = tpu.transpose %98, [1, 0, 2] : vector<4x8x32xf32> -> vector<8x4x32xf32>
    %100 = vector.shape_cast %99 : vector<8x4x32xf32> to vector<8x128xf32>
    %101 = vector.extract_strided_slice %53 {offsets = [8, 0], sizes = [8, 128], strides = [1, 1]} : vector<16x128xf32> to vector<8x128xf32>
    %102 = vector.shape_cast %101 : vector<8x128xf32> to vector<8x4x32xf32>
    %103 = tpu.transpose %102, [1, 0, 2] : vector<8x4x32xf32> -> vector<4x8x32xf32>
    %104 = vector.extract_strided_slice %59 {offsets = [8, 0], sizes = [8, 128], strides = [1, 1]} : vector<16x128xf32> to vector<8x128xf32>
    %105 = vector.shape_cast %104 : vector<8x128xf32> to vector<8x4x32xf32>
    %106 = tpu.transpose %105, [1, 0, 2] : vector<8x4x32xf32> -> vector<4x8x32xf32>
    %107 = vector.extract_strided_slice %65 {offsets = [8, 0], sizes = [8, 128], strides = [1, 1]} : vector<16x128xf32> to vector<8x128xf32>
    %108 = vector.shape_cast %107 : vector<8x128xf32> to vector<8x4x32xf32>
    %109 = tpu.transpose %108, [1, 0, 2] : vector<8x4x32xf32> -> vector<4x8x32xf32>
    %110 = arith.truncf %103 : vector<4x8x32xf32> to vector<4x8x32xbf16>
    %111 = arith.truncf %106 : vector<4x8x32xf32> to vector<4x8x32xbf16>
    "tpu.trace_start"() <{level = 10 : i32, message = "hsd,htd->hst"}> : () -> ()
    %cst_42 = arith.constant dense<0.000000e+00> : vector<4x8x8xf32>
    %112 = tpu.matmul %110, %111, %cst_42 {dimension_numbers = #tpu.dot_dimension_numbers<[2], [2], [1], [1], [0, 0, 0, 1, 1, 1], [0], [0]>} : vector<4x8x32xbf16>, vector<4x8x32xbf16>, vector<4x8x8xf32> -> vector<4x8x8xf32>
    "tpu.trace_stop"() : () -> ()
    %cst_43 = arith.constant 0.176776692 : f32
    %113 = vector.broadcast %cst_43 : f32 to vector<4x8x8xf32>
    %114 = arith.mulf %112, %113 : vector<4x8x8xf32>
    %115 = vector.extract_strided_slice %2 {offsets = [1, 0, 0], sizes = [1, 8, 8], strides = [1, 1, 1]} : vector<2x8x8xi1> to vector<1x8x8xi1>
    %116 = vector.shape_cast %115 : vector<1x8x8xi1> to vector<8x8xi1>
    %117 = vector.shape_cast %116 : vector<8x8xi1> to vector<1x8x8xi1>
    %cst_44 = arith.constant -1.000000e+30 : f32
    %118 = vector.shape_cast %117 : vector<1x8x8xi1> to vector<1x8x8xi1>
    %119 = vector.broadcast %118 : vector<1x8x8xi1> to vector<4x8x8xi1>
    %120 = vector.broadcast %cst_44 : f32 to vector<4x8x8xf32>
    %121 = arith.select %119, %114, %120 : vector<4x8x8xi1>, vector<4x8x8xf32>
    %cst_45 = arith.constant dense<0xFF800000> : vector<4x8xf32>
    %122 = vector.multi_reduction <maximumf>, %121, %cst_45 [2] : vector<4x8x8xf32> to vector<4x8xf32>
    %123 = vector.shape_cast %122 : vector<4x8xf32> to vector<4x8x1xf32>
    %124 = vector.broadcast %123 : vector<4x8x1xf32> to vector<4x8x8xf32>
    %125 = arith.subf %121, %124 : vector<4x8x8xf32>
    %126 = math.exp %125 : vector<4x8x8xf32>
    %cst_46 = arith.constant dense<0.000000e+00> : vector<4x8xf32>
    %127 = vector.multi_reduction <add>, %126, %cst_46 [2] : vector<4x8x8xf32> to vector<4x8xf32>
    %128 = vector.shape_cast %127 : vector<4x8xf32> to vector<4x8x1xf32>
    %129 = vector.broadcast %128 : vector<4x8x1xf32> to vector<4x8x8xf32>
    %130 = arith.divf %126, %129 : vector<4x8x8xf32>
    %131 = arith.truncf %130 : vector<4x8x8xf32> to vector<4x8x8xbf16>
    %132 = arith.truncf %109 : vector<4x8x32xf32> to vector<4x8x32xbf16>
    "tpu.trace_start"() <{level = 10 : i32, message = "hst,htd->hsd"}> : () -> ()
    %cst_47 = arith.constant dense<0.000000e+00> : vector<4x8x32xf32>
    %133 = tpu.matmul %131, %132, %cst_47 {dimension_numbers = #tpu.dot_dimension_numbers<[2], [1], [1], [2], [0, 0, 0, 1, 1, 2], [0], [0]>} : vector<4x8x8xbf16>, vector<4x8x32xbf16>, vector<4x8x32xf32> -> vector<4x8x32xf32>
    "tpu.trace_stop"() : () -> ()
    %134 = tpu.transpose %133, [1, 0, 2] : vector<4x8x32xf32> -> vector<8x4x32xf32>
    %135 = vector.shape_cast %134 : vector<8x4x32xf32> to vector<8x128xf32>
    %136 = tpu.concatenate %100, %135 in 0 : vector<8x128xf32>, vector<8x128xf32> -> vector<16x128xf32>
    %137 = arith.truncf %136 : vector<16x128xf32> to vector<16x128xbf16>
    %c3_48 = arith.constant 3 : index
    %c0_49 = arith.constant 0 : index
    %c0_50 = arith.constant 0 : index
    %138 = vector.load %arg2[%c3_48, %c0_49, %c0_50] : memref<8x128x128xbf16, #tpu.memory_space<vmem>>, vector<1x128x128xbf16>
    %139 = vector.shape_cast %138 : vector<1x128x128xbf16> to vector<128x128xbf16>
    %cst_51 = arith.constant dense<0.000000e+00> : vector<16x128xf32>
    %140 = tpu.matmul %137, %139, %cst_51 {dimension_numbers = #tpu.dot_dimension_numbers<[1], [0], [0], [1], [0, 0, 1, 1], [], []>} : vector<16x128xbf16>, vector<128x128xbf16>, vector<16x128xf32> -> vector<16x128xf32>
    %141 = vector.shape_cast %43 : vector<128xf32> to vector<1x128xf32>
    %142 = vector.broadcast %141 : vector<1x128xf32> to vector<16x128xf32>
    %143 = arith.addf %140, %142 : vector<16x128xf32>
    %144 = vector.shape_cast %143 : vector<16x128xf32> to vector<2x8x128xf32>
    %145 = arith.addf %6, %144 : vector<2x8x128xf32>
    %c6 = arith.constant 6 : index
    %c0_52 = arith.constant 0 : index
    %146 = vector.load %arg1[%c6, %c0_52] : memref<16x128xf32, #tpu.memory_space<vmem>>, vector<1x128xf32>
    %147 = vector.shape_cast %146 : vector<1x128xf32> to vector<128xf32>
    %c7 = arith.constant 7 : index
    %c0_53 = arith.constant 0 : index
    %148 = vector.load %arg1[%c7, %c0_53] : memref<16x128xf32, #tpu.memory_space<vmem>>, vector<1x128xf32>
    %149 = vector.shape_cast %148 : vector<1x128xf32> to vector<128xf32>
    %cst_54 = arith.constant dense<0.000000e+00> : vector<2x8xf32>
    %150 = vector.multi_reduction <add>, %145, %cst_54 [2] : vector<2x8x128xf32> to vector<2x8xf32>
    %151 = vector.shape_cast %150 : vector<2x8xf32> to vector<2x8x1xf32>
    %cst_55 = arith.constant 1.280000e+02 : f32
    %152 = vector.broadcast %cst_55 : f32 to vector<2x8x1xf32>
    %153 = arith.divf %151, %152 : vector<2x8x1xf32>
    %154 = vector.broadcast %153 : vector<2x8x1xf32> to vector<2x8x128xf32>
    %155 = arith.subf %145, %154 : vector<2x8x128xf32>
    %156 = arith.mulf %155, %155 : vector<2x8x128xf32>
    %cst_56 = arith.constant dense<0.000000e+00> : vector<2x8xf32>
    %157 = vector.multi_reduction <add>, %156, %cst_56 [2] : vector<2x8x128xf32> to vector<2x8xf32>
    %158 = vector.shape_cast %157 : vector<2x8xf32> to vector<2x8x1xf32>
    %cst_57 = arith.constant 1.280000e+02 : f32
    %159 = vector.broadcast %cst_57 : f32 to vector<2x8x1xf32>
    %160 = arith.divf %158, %159 : vector<2x8x1xf32>
    %161 = vector.broadcast %153 : vector<2x8x1xf32> to vector<2x8x128xf32>
    %162 = arith.subf %145, %161 : vector<2x8x128xf32>
    %cst_58 = arith.constant 9.99999974E-6 : f32
    %163 = vector.broadcast %cst_58 : f32 to vector<2x8x1xf32>
    %164 = arith.addf %160, %163 : vector<2x8x1xf32>
    %165 = math.rsqrt %164 : vector<2x8x1xf32>
    %166 = vector.broadcast %165 : vector<2x8x1xf32> to vector<2x8x128xf32>
    %167 = arith.mulf %162, %166 : vector<2x8x128xf32>
    %168 = vector.shape_cast %147 : vector<128xf32> to vector<1x1x128xf32>
    %169 = vector.broadcast %168 : vector<1x1x128xf32> to vector<2x8x128xf32>
    %170 = arith.mulf %167, %169 : vector<2x8x128xf32>
    %171 = vector.shape_cast %149 : vector<128xf32> to vector<1x1x128xf32>
    %172 = vector.broadcast %171 : vector<1x1x128xf32> to vector<2x8x128xf32>
    %173 = arith.addf %170, %172 : vector<2x8x128xf32>
    %c8 = arith.constant 8 : index
    %c0_59 = arith.constant 0 : index
    %174 = vector.load %arg1[%c8, %c0_59] : memref<16x128xf32, #tpu.memory_space<vmem>>, vector<1x128xf32>
    %175 = vector.shape_cast %174 : vector<1x128xf32> to vector<128xf32>
    %c9 = arith.constant 9 : index
    %c0_60 = arith.constant 0 : index
    %176 = vector.load %arg1[%c9, %c0_60] : memref<16x128xf32, #tpu.memory_space<vmem>>, vector<1x128xf32>
    %177 = vector.shape_cast %176 : vector<1x128xf32> to vector<128xf32>
    %c10 = arith.constant 10 : index
    %c0_61 = arith.constant 0 : index
    %178 = vector.load %arg1[%c10, %c0_61] : memref<16x128xf32, #tpu.memory_space<vmem>>, vector<1x128xf32>
    %179 = vector.shape_cast %178 : vector<1x128xf32> to vector<128xf32>
    %c11 = arith.constant 11 : index
    %c0_62 = arith.constant 0 : index
    %180 = vector.load %arg1[%c11, %c0_62] : memref<16x128xf32, #tpu.memory_space<vmem>>, vector<1x128xf32>
    %181 = vector.shape_cast %180 : vector<1x128xf32> to vector<128xf32>
    %182 = vector.shape_cast %173 : vector<2x8x128xf32> to vector<16x128xf32>
    %183 = arith.truncf %182 : vector<16x128xf32> to vector<16x128xbf16>
    %184 = vector.shape_cast %7 : vector<2x16x128xf32> to vector<32x128xf32>
    %185 = arith.truncf %184 : vector<32x128xf32> to vector<32x128xbf16>
    %c4_63 = arith.constant 4 : index
    %c0_64 = arith.constant 0 : index
    %c0_65 = arith.constant 0 : index
    %186 = vector.load %arg2[%c4_63, %c0_64, %c0_65] : memref<8x128x128xbf16, #tpu.memory_space<vmem>>, vector<1x128x128xbf16>
    %187 = vector.shape_cast %186 : vector<1x128x128xbf16> to vector<128x128xbf16>
    %cst_66 = arith.constant dense<0.000000e+00> : vector<16x128xf32>
    %188 = tpu.matmul %183, %187, %cst_66 {dimension_numbers = #tpu.dot_dimension_numbers<[1], [0], [0], [1], [0, 0, 1, 1], [], []>} : vector<16x128xbf16>, vector<128x128xbf16>, vector<16x128xf32> -> vector<16x128xf32>
    %189 = vector.shape_cast %175 : vector<128xf32> to vector<1x128xf32>
    %190 = vector.broadcast %189 : vector<1x128xf32> to vector<16x128xf32>
    %191 = arith.addf %188, %190 : vector<16x128xf32>
    %c5_67 = arith.constant 5 : index
    %c0_68 = arith.constant 0 : index
    %c0_69 = arith.constant 0 : index
    %192 = vector.load %arg2[%c5_67, %c0_68, %c0_69] : memref<8x128x128xbf16, #tpu.memory_space<vmem>>, vector<1x128x128xbf16>
    %193 = vector.shape_cast %192 : vector<1x128x128xbf16> to vector<128x128xbf16>
    %cst_70 = arith.constant dense<0.000000e+00> : vector<32x128xf32>
    %194 = tpu.matmul %185, %193, %cst_70 {dimension_numbers = #tpu.dot_dimension_numbers<[1], [0], [0], [1], [0, 0, 1, 1], [], []>} : vector<32x128xbf16>, vector<128x128xbf16>, vector<32x128xf32> -> vector<32x128xf32>
    %195 = vector.shape_cast %177 : vector<128xf32> to vector<1x128xf32>
    %196 = vector.broadcast %195 : vector<1x128xf32> to vector<32x128xf32>
    %197 = arith.addf %194, %196 : vector<32x128xf32>
    %c6_71 = arith.constant 6 : index
    %c0_72 = arith.constant 0 : index
    %c0_73 = arith.constant 0 : index
    %198 = vector.load %arg2[%c6_71, %c0_72, %c0_73] : memref<8x128x128xbf16, #tpu.memory_space<vmem>>, vector<1x128x128xbf16>
    %199 = vector.shape_cast %198 : vector<1x128x128xbf16> to vector<128x128xbf16>
    %cst_74 = arith.constant dense<0.000000e+00> : vector<32x128xf32>
    %200 = tpu.matmul %185, %199, %cst_74 {dimension_numbers = #tpu.dot_dimension_numbers<[1], [0], [0], [1], [0, 0, 1, 1], [], []>} : vector<32x128xbf16>, vector<128x128xbf16>, vector<32x128xf32> -> vector<32x128xf32>
    %201 = vector.shape_cast %179 : vector<128xf32> to vector<1x128xf32>
    %202 = vector.broadcast %201 : vector<1x128xf32> to vector<32x128xf32>
    %203 = arith.addf %200, %202 : vector<32x128xf32>
    %204 = vector.extract_strided_slice %191 {offsets = [0, 0], sizes = [8, 128], strides = [1, 1]} : vector<16x128xf32> to vector<8x128xf32>
    %205 = vector.shape_cast %204 : vector<8x128xf32> to vector<8x4x32xf32>
    %206 = tpu.transpose %205, [1, 0, 2] : vector<8x4x32xf32> -> vector<4x8x32xf32>
    %207 = vector.extract_strided_slice %197 {offsets = [0, 0], sizes = [16, 128], strides = [1, 1]} : vector<32x128xf32> to vector<16x128xf32>
    %208 = vector.shape_cast %207 : vector<16x128xf32> to vector<16x4x32xf32>
    %209 = tpu.transpose %208, [1, 0, 2] : vector<16x4x32xf32> -> vector<4x16x32xf32>
    %210 = vector.extract_strided_slice %203 {offsets = [0, 0], sizes = [16, 128], strides = [1, 1]} : vector<32x128xf32> to vector<16x128xf32>
    %211 = vector.shape_cast %210 : vector<16x128xf32> to vector<16x4x32xf32>
    %212 = tpu.transpose %211, [1, 0, 2] : vector<16x4x32xf32> -> vector<4x16x32xf32>
    %213 = arith.truncf %206 : vector<4x8x32xf32> to vector<4x8x32xbf16>
    %214 = arith.truncf %209 : vector<4x16x32xf32> to vector<4x16x32xbf16>
    "tpu.trace_start"() <{level = 10 : i32, message = "hsd,htd->hst"}> : () -> ()
    %cst_75 = arith.constant dense<0.000000e+00> : vector<4x8x16xf32>
    %215 = tpu.matmul %213, %214, %cst_75 {dimension_numbers = #tpu.dot_dimension_numbers<[2], [2], [1], [1], [0, 0, 0, 1, 1, 1], [0], [0]>} : vector<4x8x32xbf16>, vector<4x16x32xbf16>, vector<4x8x16xf32> -> vector<4x8x16xf32>
    "tpu.trace_stop"() : () -> ()
    %cst_76 = arith.constant 0.176776692 : f32
    %216 = vector.broadcast %cst_76 : f32 to vector<4x8x16xf32>
    %217 = arith.mulf %215, %216 : vector<4x8x16xf32>
    %218 = vector.extract_strided_slice %5 {offsets = [0, 0, 0], sizes = [1, 1, 16], strides = [1, 1, 1]} : vector<2x1x16xi1> to vector<1x1x16xi1>
    %219 = vector.shape_cast %218 : vector<1x1x16xi1> to vector<1x16xi1>
    %220 = vector.shape_cast %219 : vector<1x16xi1> to vector<1x1x16xi1>
    %cst_77 = arith.constant -1.000000e+30 : f32
    %221 = vector.shape_cast %220 : vector<1x1x16xi1> to vector<1x1x16xi1>
    %222 = vector.broadcast %221 : vector<1x1x16xi1> to vector<4x8x16xi1>
    %223 = vector.broadcast %cst_77 : f32 to vector<4x8x16xf32>
    %224 = arith.select %222, %217, %223 : vector<4x8x16xi1>, vector<4x8x16xf32>
    %cst_78 = arith.constant dense<0xFF800000> : vector<4x8xf32>
    %225 = vector.multi_reduction <maximumf>, %224, %cst_78 [2] : vector<4x8x16xf32> to vector<4x8xf32>
    %226 = vector.shape_cast %225 : vector<4x8xf32> to vector<4x8x1xf32>
    %227 = vector.broadcast %226 : vector<4x8x1xf32> to vector<4x8x16xf32>
    %228 = arith.subf %224, %227 : vector<4x8x16xf32>
    %229 = math.exp %228 : vector<4x8x16xf32>
    %cst_79 = arith.constant dense<0.000000e+00> : vector<4x8xf32>
    %230 = vector.multi_reduction <add>, %229, %cst_79 [2] : vector<4x8x16xf32> to vector<4x8xf32>
    %231 = vector.shape_cast %230 : vector<4x8xf32> to vector<4x8x1xf32>
    %232 = vector.broadcast %231 : vector<4x8x1xf32> to vector<4x8x16xf32>
    %233 = arith.divf %229, %232 : vector<4x8x16xf32>
    %234 = arith.truncf %233 : vector<4x8x16xf32> to vector<4x8x16xbf16>
    %235 = arith.truncf %212 : vector<4x16x32xf32> to vector<4x16x32xbf16>
    "tpu.trace_start"() <{level = 10 : i32, message = "hst,htd->hsd"}> : () -> ()
    %cst_80 = arith.constant dense<0.000000e+00> : vector<4x8x32xf32>
    %236 = tpu.matmul %234, %235, %cst_80 {dimension_numbers = #tpu.dot_dimension_numbers<[2], [1], [1], [2], [0, 0, 0, 1, 1, 2], [0], [0]>} : vector<4x8x16xbf16>, vector<4x16x32xbf16>, vector<4x8x32xf32> -> vector<4x8x32xf32>
    "tpu.trace_stop"() : () -> ()
    %237 = tpu.transpose %236, [1, 0, 2] : vector<4x8x32xf32> -> vector<8x4x32xf32>
    %238 = vector.shape_cast %237 : vector<8x4x32xf32> to vector<8x128xf32>
    %239 = vector.extract_strided_slice %191 {offsets = [8, 0], sizes = [8, 128], strides = [1, 1]} : vector<16x128xf32> to vector<8x128xf32>
    %240 = vector.shape_cast %239 : vector<8x128xf32> to vector<8x4x32xf32>
    %241 = tpu.transpose %240, [1, 0, 2] : vector<8x4x32xf32> -> vector<4x8x32xf32>
    %242 = vector.extract_strided_slice %197 {offsets = [16, 0], sizes = [16, 128], strides = [1, 1]} : vector<32x128xf32> to vector<16x128xf32>
    %243 = vector.shape_cast %242 : vector<16x128xf32> to vector<16x4x32xf32>
    %244 = tpu.transpose %243, [1, 0, 2] : vector<16x4x32xf32> -> vector<4x16x32xf32>
    %245 = vector.extract_strided_slice %203 {offsets = [16, 0], sizes = [16, 128], strides = [1, 1]} : vector<32x128xf32> to vector<16x128xf32>
    %246 = vector.shape_cast %245 : vector<16x128xf32> to vector<16x4x32xf32>
    %247 = tpu.transpose %246, [1, 0, 2] : vector<16x4x32xf32> -> vector<4x16x32xf32>
    %248 = arith.truncf %241 : vector<4x8x32xf32> to vector<4x8x32xbf16>
    %249 = arith.truncf %244 : vector<4x16x32xf32> to vector<4x16x32xbf16>
    "tpu.trace_start"() <{level = 10 : i32, message = "hsd,htd->hst"}> : () -> ()
    %cst_81 = arith.constant dense<0.000000e+00> : vector<4x8x16xf32>
    %250 = tpu.matmul %248, %249, %cst_81 {dimension_numbers = #tpu.dot_dimension_numbers<[2], [2], [1], [1], [0, 0, 0, 1, 1, 1], [0], [0]>} : vector<4x8x32xbf16>, vector<4x16x32xbf16>, vector<4x8x16xf32> -> vector<4x8x16xf32>
    "tpu.trace_stop"() : () -> ()
    %cst_82 = arith.constant 0.176776692 : f32
    %251 = vector.broadcast %cst_82 : f32 to vector<4x8x16xf32>
    %252 = arith.mulf %250, %251 : vector<4x8x16xf32>
    %253 = vector.extract_strided_slice %5 {offsets = [1, 0, 0], sizes = [1, 1, 16], strides = [1, 1, 1]} : vector<2x1x16xi1> to vector<1x1x16xi1>
    %254 = vector.shape_cast %253 : vector<1x1x16xi1> to vector<1x16xi1>
    %255 = vector.shape_cast %254 : vector<1x16xi1> to vector<1x1x16xi1>
    %cst_83 = arith.constant -1.000000e+30 : f32
    %256 = vector.shape_cast %255 : vector<1x1x16xi1> to vector<1x1x16xi1>
    %257 = vector.broadcast %256 : vector<1x1x16xi1> to vector<4x8x16xi1>
    %258 = vector.broadcast %cst_83 : f32 to vector<4x8x16xf32>
    %259 = arith.select %257, %252, %258 : vector<4x8x16xi1>, vector<4x8x16xf32>
    %cst_84 = arith.constant dense<0xFF800000> : vector<4x8xf32>
    %260 = vector.multi_reduction <maximumf>, %259, %cst_84 [2] : vector<4x8x16xf32> to vector<4x8xf32>
    %261 = vector.shape_cast %260 : vector<4x8xf32> to vector<4x8x1xf32>
    %262 = vector.broadcast %261 : vector<4x8x1xf32> to vector<4x8x16xf32>
    %263 = arith.subf %259, %262 : vector<4x8x16xf32>
    %264 = math.exp %263 : vector<4x8x16xf32>
    %cst_85 = arith.constant dense<0.000000e+00> : vector<4x8xf32>
    %265 = vector.multi_reduction <add>, %264, %cst_85 [2] : vector<4x8x16xf32> to vector<4x8xf32>
    %266 = vector.shape_cast %265 : vector<4x8xf32> to vector<4x8x1xf32>
    %267 = vector.broadcast %266 : vector<4x8x1xf32> to vector<4x8x16xf32>
    %268 = arith.divf %264, %267 : vector<4x8x16xf32>
    %269 = arith.truncf %268 : vector<4x8x16xf32> to vector<4x8x16xbf16>
    %270 = arith.truncf %247 : vector<4x16x32xf32> to vector<4x16x32xbf16>
    "tpu.trace_start"() <{level = 10 : i32, message = "hst,htd->hsd"}> : () -> ()
    %cst_86 = arith.constant dense<0.000000e+00> : vector<4x8x32xf32>
    %271 = tpu.matmul %269, %270, %cst_86 {dimension_numbers = #tpu.dot_dimension_numbers<[2], [1], [1], [2], [0, 0, 0, 1, 1, 2], [0], [0]>} : vector<4x8x16xbf16>, vector<4x16x32xbf16>, vector<4x8x32xf32> -> vector<4x8x32xf32>
    "tpu.trace_stop"() : () -> ()
    %272 = tpu.transpose %271, [1, 0, 2] : vector<4x8x32xf32> -> vector<8x4x32xf32>
    %273 = vector.shape_cast %272 : vector<8x4x32xf32> to vector<8x128xf32>
    %274 = tpu.concatenate %238, %273 in 0 : vector<8x128xf32>, vector<8x128xf32> -> vector<16x128xf32>
    %275 = arith.truncf %274 : vector<16x128xf32> to vector<16x128xbf16>
    %c7_87 = arith.constant 7 : index
    %c0_88 = arith.constant 0 : index
    %c0_89 = arith.constant 0 : index
    %276 = vector.load %arg2[%c7_87, %c0_88, %c0_89] : memref<8x128x128xbf16, #tpu.memory_space<vmem>>, vector<1x128x128xbf16>
    %277 = vector.shape_cast %276 : vector<1x128x128xbf16> to vector<128x128xbf16>
    %cst_90 = arith.constant dense<0.000000e+00> : vector<16x128xf32>
    %278 = tpu.matmul %275, %277, %cst_90 {dimension_numbers = #tpu.dot_dimension_numbers<[1], [0], [0], [1], [0, 0, 1, 1], [], []>} : vector<16x128xbf16>, vector<128x128xbf16>, vector<16x128xf32> -> vector<16x128xf32>
    %279 = vector.shape_cast %181 : vector<128xf32> to vector<1x128xf32>
    %280 = vector.broadcast %279 : vector<1x128xf32> to vector<16x128xf32>
    %281 = arith.addf %278, %280 : vector<16x128xf32>
    %282 = vector.shape_cast %281 : vector<16x128xf32> to vector<2x8x128xf32>
    %283 = arith.addf %145, %282 : vector<2x8x128xf32>
    %c12 = arith.constant 12 : index
    %c0_91 = arith.constant 0 : index
    %284 = vector.load %arg1[%c12, %c0_91] : memref<16x128xf32, #tpu.memory_space<vmem>>, vector<1x128xf32>
    %285 = vector.shape_cast %284 : vector<1x128xf32> to vector<128xf32>
    %c13 = arith.constant 13 : index
    %c0_92 = arith.constant 0 : index
    %286 = vector.load %arg1[%c13, %c0_92] : memref<16x128xf32, #tpu.memory_space<vmem>>, vector<1x128xf32>
    %287 = vector.shape_cast %286 : vector<1x128xf32> to vector<128xf32>
    %cst_93 = arith.constant dense<0.000000e+00> : vector<2x8xf32>
    %288 = vector.multi_reduction <add>, %283, %cst_93 [2] : vector<2x8x128xf32> to vector<2x8xf32>
    %289 = vector.shape_cast %288 : vector<2x8xf32> to vector<2x8x1xf32>
    %cst_94 = arith.constant 1.280000e+02 : f32
    %290 = vector.broadcast %cst_94 : f32 to vector<2x8x1xf32>
    %291 = arith.divf %289, %290 : vector<2x8x1xf32>
    %292 = vector.broadcast %291 : vector<2x8x1xf32> to vector<2x8x128xf32>
    %293 = arith.subf %283, %292 : vector<2x8x128xf32>
    %294 = arith.mulf %293, %293 : vector<2x8x128xf32>
    %cst_95 = arith.constant dense<0.000000e+00> : vector<2x8xf32>
    %295 = vector.multi_reduction <add>, %294, %cst_95 [2] : vector<2x8x128xf32> to vector<2x8xf32>
    %296 = vector.shape_cast %295 : vector<2x8xf32> to vector<2x8x1xf32>
    %cst_96 = arith.constant 1.280000e+02 : f32
    %297 = vector.broadcast %cst_96 : f32 to vector<2x8x1xf32>
    %298 = arith.divf %296, %297 : vector<2x8x1xf32>
    %299 = vector.broadcast %291 : vector<2x8x1xf32> to vector<2x8x128xf32>
    %300 = arith.subf %283, %299 : vector<2x8x128xf32>
    %cst_97 = arith.constant 9.99999974E-6 : f32
    %301 = vector.broadcast %cst_97 : f32 to vector<2x8x1xf32>
    %302 = arith.addf %298, %301 : vector<2x8x1xf32>
    %303 = math.rsqrt %302 : vector<2x8x1xf32>
    %304 = vector.broadcast %303 : vector<2x8x1xf32> to vector<2x8x128xf32>
    %305 = arith.mulf %300, %304 : vector<2x8x128xf32>
    %306 = vector.shape_cast %285 : vector<128xf32> to vector<1x1x128xf32>
    %307 = vector.broadcast %306 : vector<1x1x128xf32> to vector<2x8x128xf32>
    %308 = arith.mulf %305, %307 : vector<2x8x128xf32>
    %309 = vector.shape_cast %287 : vector<128xf32> to vector<1x1x128xf32>
    %310 = vector.broadcast %309 : vector<1x1x128xf32> to vector<2x8x128xf32>
    %311 = arith.addf %308, %310 : vector<2x8x128xf32>
    %312 = vector.shape_cast %311 : vector<2x8x128xf32> to vector<16x128xf32>
    %313 = arith.truncf %312 : vector<16x128xf32> to vector<16x128xbf16>
    %c0_98 = arith.constant 0 : index
    %c0_99 = arith.constant 0 : index
    %314 = vector.load %arg3[%c0_98, %c0_99] : memref<128x256xbf16, #tpu.memory_space<vmem>>, vector<128x256xbf16>
    %cst_100 = arith.constant dense<0.000000e+00> : vector<16x256xf32>
    %315 = tpu.matmul %313, %314, %cst_100 {dimension_numbers = #tpu.dot_dimension_numbers<[1], [0], [0], [1], [0, 0, 1, 1], [], []>} : vector<16x128xbf16>, vector<128x256xbf16>, vector<16x256xf32> -> vector<16x256xf32>
    %c0_101 = arith.constant 0 : index
    %c0_102 = arith.constant 0 : index
    %316 = vector.load %arg4[%c0_101, %c0_102] : memref<1x256xf32, #tpu.memory_space<vmem>>, vector<1x256xf32>
    %317 = vector.shape_cast %316 : vector<1x256xf32> to vector<256xf32>
    %318 = vector.shape_cast %317 : vector<256xf32> to vector<1x256xf32>
    %319 = vector.broadcast %318 : vector<1x256xf32> to vector<16x256xf32>
    %320 = arith.addf %315, %319 : vector<16x256xf32>
    %cst_103 = arith.constant 0.000000e+00 : f32
    %321 = vector.broadcast %cst_103 : f32 to vector<16x256xf32>
    %322 = arith.maximumf %320, %321 : vector<16x256xf32>
    %323 = arith.truncf %322 : vector<16x256xf32> to vector<16x256xbf16>
    %c0_104 = arith.constant 0 : index
    %c0_105 = arith.constant 0 : index
    %324 = vector.load %arg5[%c0_104, %c0_105] : memref<256x128xbf16, #tpu.memory_space<vmem>>, vector<256x128xbf16>
    %cst_106 = arith.constant dense<0.000000e+00> : vector<16x128xf32>
    %325 = tpu.matmul %323, %324, %cst_106 {dimension_numbers = #tpu.dot_dimension_numbers<[1], [0], [0], [1], [0, 0, 1, 1], [], []>} : vector<16x256xbf16>, vector<256x128xbf16>, vector<16x128xf32> -> vector<16x128xf32>
    %c14 = arith.constant 14 : index
    %c0_107 = arith.constant 0 : index
    %326 = vector.load %arg1[%c14, %c0_107] : memref<16x128xf32, #tpu.memory_space<vmem>>, vector<1x128xf32>
    %327 = vector.shape_cast %326 : vector<1x128xf32> to vector<128xf32>
    %328 = vector.shape_cast %327 : vector<128xf32> to vector<1x128xf32>
    %329 = vector.broadcast %328 : vector<1x128xf32> to vector<16x128xf32>
    %330 = arith.addf %325, %329 : vector<16x128xf32>
    %331 = vector.shape_cast %330 : vector<16x128xf32> to vector<2x8x128xf32>
    %332 = arith.addf %283, %331 : vector<2x8x128xf32>
    %c0_108 = arith.constant 0 : index
    %c0_109 = arith.constant 0 : index
    %c0_110 = arith.constant 0 : index
    %333 = vector.load %arg10[%c0_108, %c0_109, %c0_110] : memref<2x8x128xf32, #tpu.memory_space<vmem>>, vector<2x8x128xf32>
    tpu.vector_store %arg10[%c0_108, %c0_109, %c0_110], %332 {strides = array<i32>} : memref<2x8x128xf32, #tpu.memory_space<vmem>>, vector<2x8x128xf32>,
    return
  }
  func.func @transform_0(%arg0: i32) -> (i32, i32) {
    %c0_i32 = arith.constant 0 : i32
    %c0_i32_0 = arith.constant 0 : i32
    %c0_i32_1 = arith.constant 0 : i32
    return %c0_i32, %c0_i32_0 : i32, i32
  }
  func.func @transform_1(%arg0: i32) -> (i32, i32, i32) {
    %c0_i32 = arith.constant 0 : i32
    %c0_i32_0 = arith.constant 0 : i32
    %c0_i32_1 = arith.constant 0 : i32
    %c0_i32_2 = arith.constant 0 : i32
    return %c0_i32, %c0_i32_0, %c0_i32_1 : i32, i32, i32
  }
  func.func @transform_2(%arg0: i32) -> (i32, i32) {
    %c0_i32 = arith.constant 0 : i32
    %c0_i32_0 = arith.constant 0 : i32
    %c0_i32_1 = arith.constant 0 : i32
    return %c0_i32, %c0_i32_0 : i32, i32
  }
  func.func @transform_3(%arg0: i32) -> (i32, i32) {
    %c0_i32 = arith.constant 0 : i32
    %c0_i32_0 = arith.constant 0 : i32
    %c0_i32_1 = arith.constant 0 : i32
    return %c0_i32, %c0_i32_0 : i32, i32
  }
  func.func @transform_4(%arg0: i32) -> (i32, i32) {
    %c0_i32 = arith.constant 0 : i32
    %c0_i32_0 = arith.constant 0 : i32
    %c0_i32_1 = arith.constant 0 : i32
    return %c0_i32, %c0_i32_0 : i32, i32
  }
  func.func @transform_5(%arg0: i32) -> (i32, i32, i32) {
    %c0_i32 = arith.constant 0 : i32
    %c0_i32_0 = arith.constant 0 : i32
    %c0_i32_1 = arith.constant 0 : i32
    return %arg0, %c0_i32, %c0_i32_0 : i32, i32, i32
  }
  func.func @transform_6(%arg0: i32) -> (i32, i32, i32) {
    %c0_i32 = arith.constant 0 : i32
    %c0_i32_0 = arith.constant 0 : i32
    %c0_i32_1 = arith.constant 0 : i32
    return %arg0, %c0_i32, %c0_i32_0 : i32, i32, i32
  }
  func.func @transform_7(%arg0: i32) -> (i32, i32, i32) {
    %c0_i32 = arith.constant 0 : i32
    %c0_i32_0 = arith.constant 0 : i32
    %c0_i32_1 = arith.constant 0 : i32
    return %arg0, %c0_i32, %c0_i32_0 : i32, i32, i32
  }
  func.func @transform_8(%arg0: i32) -> (i32, i32, i32) {
    %c0_i32 = arith.constant 0 : i32
    %c0_i32_0 = arith.constant 0 : i32
    %c0_i32_1 = arith.constant 0 : i32
    return %arg0, %c0_i32, %c0_i32_0 : i32, i32, i32
  }
  func.func @transform_9(%arg0: i32) -> (i32, i32, i32) {
    %c0_i32 = arith.constant 0 : i32
    %c0_i32_0 = arith.constant 0 : i32
    %c0_i32_1 = arith.constant 0 : i32
    return %arg0, %c0_i32, %c0_i32_0 : i32, i32, i32
  }
}

</mosaic_0001>

<bundles_post_ra>
// kernel: tpu_custom_call.1
= control target key start
LH: loop header
LB: loop body
LE: loop exit
PB: predicated region body
PF: predicated region fallthrough
CT: control target
= control target key end

     0   :  { %14 = vsyncpa [#allocation3], 0  ;;  %s12699_s0 = inlined_call_operand.hbm [shape: f32[16,128], index: 0, kind: input, shape index: {}]   ;;  %s12700_s1 = inlined_call_operand.hbm [shape: bf16[8,128,128], index: 1, kind: input, shape index: {}]   ;;  %s12701_s2 = inlined_call_operand.hbm [shape: bf16[128,256], index: 2, kind: input, shape index: {}]   ;;  %s12702_s3 = inlined_call_operand.vmem [shape: f32[1,256], index: 3, kind: input, shape index: {}]   ;;  %s12703_s4 = inlined_call_operand.hbm [shape: bf16[256,128], index: 4, kind: input, shape index: {}]   ;;  %s12704_s5 = inlined_call_operand.vmem [shape: f32[2,8,128], index: 5, kind: input, shape index: {}]   ;;  %s12705_s6 = inlined_call_operand.hbm [shape: f32[2,8,8], index: 6, kind: input, shape index: {}]   ;;  %s12706_s7 = inlined_call_operand.hbm [shape: f32[2,16,128], index: 7, kind: input, shape index: {}]   ;;  %s12707_s8 = inlined_call_operand.vmem [shape: f32[2,1,16], index: 8, kind: input, shape index: {}]   ;;  %s12708_s9 = inlined_call_operand.hbm [shape: f32[2,8,128], index: 9, kind: output, shape index: {}]  }
   0x1   :  { %15 = vsyncpa [#allocation6], 0 }
   0x2   :  { %16 = vsyncpa [#allocation9], 0 }
   0x3   :  { %17 = vsyncpa [#allocation12], 0 }
   0x4   :  { %18 = vsyncpa [#allocation4], 0  ;;  %s10191_s30 = smov [#allocation5]   ;;  %s10027_s13 = scalar_lea.hbm %s12700_s1, 8192 }
   0x5   :  { %s36_s10 = sshll.u32 %s10191_s30, 4  ;;  %p10028_p0 = scmp.ne.s32.totalorder %s12700_s1, %s10027_s13  ;;  %s37_s10 = int_to_ptr.vmem [resolvable:$true] %s36_s10 }
   0x6   :  { %p10031_p1 = scmp.lt.u32.totalorder %s10027_s13, %s12700_s1 }
   0x8   :  { %p10033_p2 = pnand %p10031_p1, %p10028_p0 }
   0xa   :  { %10036 = shalt.err (!%p10033_p2)
}
   0xb   :  { %s10037_s18 = scalar_lea.vmem %s37_s10, 8192  ;;  %p10042_p4 = scmp.lt.s32.totalorder %s37_s10, %s37_s10 }
   0xc   :  { %p10038_p3 = scmp.ne.s32.totalorder %s37_s10, %s10037_s18  ;;  %p10043_p5 = scmp.lt.s32.totalorder %s10037_s18, %s10037_s18 }
   0xe   :  { %p10044_p6 = por %p10043_p5, %p10042_p4 }
  0x10   :  { %p10045_p7 = pnand %p10044_p6, %p10038_p3 }
  0x12   :  { %10048 = shalt.err (!%p10045_p7)
}
  0x13   :  { %s10192_s19 = smov 64   ;;  %s10193_s20 = smov 4  }
  0x14   :  { %42 = dma.hbm_to_vmem [thread:$0]  %s12700_s1, 8192, %s37_s10, [#allocation6], %s10192_s19, %s10192_s19, %s10193_s20  }
  0x15   :  { %s10194_s23 = smov [#allocation8]   ;;  %s10195_s25 = smov [#allocation2]  }
  0x16   :  { %s62_s24 = sshll.u32 %s10194_s23, 4  ;;  %s24_s26 = sshll.u32 %s10195_s25, 4  ;;  %s63_s24 = int_to_ptr.vmem [resolvable:$true] %s62_s24  ;;  %s25_s26 = int_to_ptr.vmem [resolvable:$true] %s24_s26 }
  0x17   :  { %s10049_s29 = scalar_lea.hbm %s12703_s4, 2048 }
  0x18   :  { %p10050_p8 = scmp.ne.s32.totalorder %s12703_s4, %s10049_s29  ;;  %p10053_p9 = scmp.lt.u32.totalorder %s10049_s29, %s12703_s4 }
  0x1a   :  { %p10055_p10 = pnand %p10053_p9, %p10050_p8 }
  0x1c   :  { %10058 = shalt.err (!%p10055_p10)
}
  0x1d   :  { %s10059_s1 = scalar_lea.vmem %s63_s24, 2048  ;;  %p10064_p12 = scmp.lt.s32.totalorder %s63_s24, %s63_s24 }
  0x1e   :  { %p10060_p11 = scmp.ne.s32.totalorder %s63_s24, %s10059_s1  ;;  %p10065_p13 = scmp.lt.s32.totalorder %s10059_s1, %s10059_s1 }
  0x20   :  { %p10066_p0 = por %p10065_p13, %p10064_p12 }
  0x22   :  { %p10067_p1 = pnand %p10066_p0, %p10060_p11 }
  0x24   :  { %10070 = shalt.err (!%p10067_p1)
}
  0x25   :  { %68 = dma.hbm_to_vmem [thread:$0]  %s12703_s4, 2048, %s63_s24, [#allocation9], %s10192_s19, %s10192_s19, %s10193_s20  }
  0x26   :  { %s10071_s17 = scalar_lea.hbm %s12699_s0, 256 }
  0x27   :  { %p10072_p2 = scmp.ne.s32.totalorder %s12699_s0, %s10071_s17  ;;  %p10075_p3 = scmp.lt.u32.totalorder %s10071_s17, %s12699_s0 }
  0x29   :  { %p10077_p4 = pnand %p10075_p3, %p10072_p2 }
  0x2b   :  { %10080 = shalt.err (!%p10077_p4)
}
  0x2c   :  { %s10081_s25 = scalar_lea.vmem %s25_s26, 256  ;;  %p10086_p6 = scmp.lt.s32.totalorder %s25_s26, %s25_s26 }
  0x2d   :  { %p10082_p5 = scmp.ne.s32.totalorder %s25_s26, %s10081_s25  ;;  %p10087_p7 = scmp.lt.s32.totalorder %s10081_s25, %s10081_s25 }
  0x2f   :  { %p10088_p8 = por %p10087_p7, %p10086_p6 }
  0x31   :  { %p10089_p9 = pnand %p10088_p8, %p10082_p5 }
  0x33   :  { %10092 = shalt.err (!%p10089_p9)
}
  0x34   :  { %s10196_s4 = smov 128   ;;  %s10197_s20 = smov 8  }
  0x35   :  { %30 = dma.hbm_to_vmem [thread:$0]  %s12699_s0, 256, %s25_s26, [#allocation3], %s10196_s4, %s10196_s4, %s10197_s20  }
  0x36   :  { %s10198_s28 = smov [#allocation7]   ;;  %s10199_s30 = smov [#allocation10]  }
  0x37   :  { %s48_s29 = sshll.u32 %s10198_s28, 4  ;;  %s76_s11 = sshll.u32 %s10199_s30, 4  ;;  %s49_s29 = int_to_ptr.vmem [resolvable:$true] %s48_s29  ;;  %s77_s11 = int_to_ptr.vmem [resolvable:$true] %s76_s11 }
  0x38   :  { %s10093_s1 = scalar_lea.hbm %s12701_s2, 2048 }
  0x39   :  { %p10094_p10 = scmp.ne.s32.totalorder %s12701_s2, %s10093_s1  ;;  %p10097_p11 = scmp.lt.u32.totalorder %s10093_s1, %s12701_s2 }
  0x3b   :  { %p10099_p12 = pnand %p10097_p11, %p10094_p10 }
  0x3d   :  { %10102 = shalt.err (!%p10099_p12)
}
  0x3e   :  { %s10103_s0 = scalar_lea.vmem %s49_s29, 2048  ;;  %p10108_p0 = scmp.lt.s32.totalorder %s49_s29, %s49_s29 }
  0x3f   :  { %p10104_p13 = scmp.ne.s32.totalorder %s49_s29, %s10103_s0  ;;  %p10109_p1 = scmp.lt.s32.totalorder %s10103_s0, %s10103_s0 }
  0x41   :  { %p10110_p2 = por %p10109_p1, %p10108_p0 }
  0x43   :  { %p10111_p3 = pnand %p10110_p2, %p10104_p13 }
  0x45   :  { %10114 = shalt.err (!%p10111_p3)
}
  0x46   :  { %54 = dma.hbm_to_vmem [thread:$0]  %s12701_s2, 2048, %s49_s29, [#allocation6], %s10196_s4, %s10196_s4, %s10197_s20  }
  0x47   :  { %s10115_s22 = scalar_lea.hbm %s12705_s6, 256 }
  0x48   :  { %p10116_p4 = scmp.ne.s32.totalorder %s12705_s6, %s10115_s22  ;;  %p10119_p5 = scmp.lt.u32.totalorder %s10115_s22, %s12705_s6 }
  0x4a   :  { %p10121_p6 = pnand %p10119_p5, %p10116_p4 }
  0x4c   :  { %10124 = shalt.err (!%p10121_p6)
}
  0x4d   :  { %s10125_s28 = scalar_lea.vmem %s77_s11, 256  ;;  %p10130_p8 = scmp.lt.s32.totalorder %s77_s11, %s77_s11 }
  0x4e   :  { %p10126_p7 = scmp.ne.s32.totalorder %s77_s11, %s10125_s28  ;;  %p10131_p9 = scmp.lt.s32.totalorder %s10125_s28, %s10125_s28 }
  0x50   :  { %p10132_p10 = por %p10131_p9, %p10130_p8 }
  0x52   :  { %p10133_p11 = pnand %p10132_p10, %p10126_p7 }
  0x54   :  { %10136 = shalt.err (!%p10133_p11)
}
  0x55   :  { %82 = dma.hbm_to_vmem [thread:$0]  %s12705_s6, 256, %s77_s11, [#allocation9], %s10196_s4, %s10196_s4, %s10197_s20  }
  0x56   :  { %s10200_s30 = smov [#allocation11]   ;;  %s10137_s10 = scalar_lea.hbm %s12706_s7, 512 }
  0x57   :  { %s88_s12 = sshll.u32 %s10200_s30, 4  ;;  %p10138_p12 = scmp.ne.s32.totalorder %s12706_s7, %s10137_s10  ;;  %s89_s12 = int_to_ptr.vmem [resolvable:$true] %s88_s12 }
  0x58   :  { %p10141_p13 = scmp.lt.u32.totalorder %s10137_s10, %s12706_s7 }
  0x5a   :  { %p10143_p0 = pnand %p10141_p13, %p10138_p12 }
  0x5c   :  { %10146 = shalt.err (!%p10143_p0)
}
  0x5d   :  { %s10147_s26 = scalar_lea.vmem %s89_s12, 512  ;;  %p10152_p2 = scmp.lt.s32.totalorder %s89_s12, %s89_s12 }
  0x5e   :  { %p10148_p1 = scmp.ne.s32.totalorder %s89_s12, %s10147_s26  ;;  %p10153_p3 = scmp.lt.s32.totalorder %s10147_s26, %s10147_s26 }
  0x60   :  { %p10154_p4 = por %p10153_p3, %p10152_p2 }
  0x62   :  { %p10155_p5 = pnand %p10154_p4, %p10148_p1 }
  0x64   :  { %10158 = shalt.err (!%p10155_p5)
}
  0x65   :  { %94 = dma.hbm_to_vmem [thread:$0]  %s12706_s7, 512, %s89_s12, [#allocation12], %s10196_s4, %s10196_s4, %s10197_s20  }
  0x66   :  { %10181 = dma.done.wait [#allocation3], 256  }
  0x67   :  { %10182 = vsyncadd [#allocation3], 4294967040 }
  0x68   :  { %10183 = dma.done.wait [#allocation6], 10240  }
  0x69   :  { %10184 = vsyncadd [#allocation6], 4294957056 }
  0x6a   :  { %10185 = dma.done.wait [#allocation9], 2304  }
  0x6b   :  { %10186 = vsyncadd [#allocation9], 4294964992 }
  0x6c   :  { %10187 = dma.done.wait [#allocation12], 512  }
  0x6d   :  { %10188 = vsyncadd [#allocation12], 4294966784  ;;  %v124_v0 = vld [vmem:[%s12704_s5] sm:$0xff]  ;;  %v125_v1 = vld [vmem:[%s12704_s5 + $0x8] sm:$0xff]  ;;  %v12709_v5 = vmov 0.0   ;;  %vm10202_vm0 = vmmov 0  }
  0x6e   :  { %132 = vadd.xlane.f32.xlu0 %v124_v0  ;;  %v9621_v2 = vld [vmem:[#allocation5] sm:$0xff]   ;;  %v9623_v4 = vld [vmem:[#allocation5 + $0x8] sm:$0xff]   ;;  %9220 = vmatprep.subr.bf16.mxu0 %v12709_v5  ;;  %v9625_v15 = vld [vmem:[#allocation5 + $0x10] sm:$0xff]   ;;  %s10203_s7 = smov 96   ;;  %s10204_s23 = smov 32   ;;  %vm947_vm1 = vcmask 261120  }
  0x6f   :  { %v9622_v3 = vld [vmem:[#allocation5 + $0x40] sm:$0xff]   ;;  %9240 = vmatprep.subr.bf16.mxu1 %v12709_v5  ;;  %9221 = vmatpush3.bf16.msra.mxu0 %v9621_v2  ;;  %v9624_v14 = vld [vmem:[#allocation5 + $0x48] sm:$0xff]   ;;  %v9626_v16 = vld [vmem:[#allocation5 + $0x50] sm:$0xff]   ;;  %vm1142_vm3 = vcmask 64512   ;;  %vm1198_vm4 = vcmask 1043456   ;;  %vm1529_vm6 = vcmask 523264  }
  0x70   :  { %9241 = vmatpush3.bf16.msra.mxu1 %v9622_v3  ;;  %9222 = vmatprep.subr.bf16.mxu0 %v12709_v5  ;;  %v9627_v17 = vld [vmem:[#allocation5 + $0x18] sm:$0xff]   ;;  %v9629_v19 = vld [vmem:[#allocation5 + $0x20] sm:$0xff]   ;;  %v9631_v21 = vld [vmem:[#allocation5 + $0x28] sm:$0xff]   ;;  %vm1531_vm7 = vcmask 785408   ;;  %vm4486_vm9 = vcmask 130048   ;;  %vm5284_vm10 = vcmask 1041409  }
  0x71   :  { %9242 = vmatprep.subr.bf16.mxu1 %v12709_v5  ;;  %v9628_v18 = vld [vmem:[#allocation5 + $0x58] sm:$0xff]   ;;  %v9630_v20 = vld [vmem:[#allocation5 + $0x60] sm:$0xff]   ;;  %9236 = vmatprep.mubr.msk.bf16.mxu0 %vm10202_vm0, %v12709_v5  ;;  %v9632_v22 = vld [vmem:[#allocation5 + $0x68] sm:$0xff]   ;;  %vm5287_vm11 = vcmask 1042434   ;;  %vm5290_vm12 = vcmask 1043459   ;;  %vm5293_vm13 = vcmask 1044484  }
  0x72   :  { %134 = vadd.xlane.f32.xlu0 %v125_v1  ;;  %9256 = vmatprep.mubr.msk.bf16.mxu1 %vm10202_vm0, %v12709_v5  ;;  %v9633_v23 = vld [vmem:[#allocation5 + $0x30] sm:$0xff]   ;;  %v9635_v25 = vld [vmem:[#allocation5 + $0x38] sm:$0xff]   ;;  %v9637_v43 = vld [vmem:[#allocation5 + $0x80] sm:$0xff]   ;;  %vm5296_vm14 = vcmask 1045509   ;;  %vm5299_vm15 = vcmask 1046534  }
  0x73   :  { %9223 = vmatpush3.bf16.msra.mxu0 %v9623_v4  ;;  %v9634_v24 = vld [vmem:[#allocation5 + $0x70] sm:$0xff]   ;;  %v9636_v26 = vld [vmem:[#allocation5 + $0x78] sm:$0xff]   ;;  %v9638_v45 = vld [vmem:[#allocation5 + $0x88] sm:$0xff]  }
  0x74   :  { %9224 = vmatprep.subr.bf16.mxu0 %v12709_v5  ;;  %9243 = vmatpush3.bf16.msra.mxu1 %v9624_v14  ;;  %v8877_v35 = vld [vmem:[#allocation2] ss:$0 sm:$0xff]  ;;  %v8878_v39 = vld [vmem:[#allocation2 + $0x1] ss:$0 sm:$0xff]  ;;  %v9640_v47 = vld [vmem:[#allocation5 + $0x98] sm:$0xff]  }
  0x75   :  { %9244 = vmatprep.subr.bf16.mxu1 %v12709_v5  ;;  %v9639_v46 = vld [vmem:[#allocation5 + $0x90] sm:$0xff]   ;;  %v9641_v48 = vld [vmem:[#allocation5 + $0xa0] sm:$0xff]   ;;  %v9642_v49 = vld [vmem:[#allocation5 + $0xa8] sm:$0xff]  }
  0x76   :  { %v9643_v50 = vld [vmem:[#allocation5 + $0xb0] sm:$0xff]   ;;  %v9644_v51 = vld [vmem:[#allocation5 + $0xb8] sm:$0xff]  }
  0x77   :  { %9225 = vmatpush3.bf16.msra.mxu0 %v9625_v15  ;;  %v8888_v52 = vld [vmem:[#allocation2 + $0x3] ss:$0 sm:$0xff]  ;;  %v8879_v58 = vld [vmem:[#allocation2 + $0x2] ss:$0 sm:$0xff]  ;;  %v10402_v4 = vld [vmem:[#allocation2 + $0x4] ss:$0 sm:$0xff] }
  0x78   :  { %9245 = vmatpush3.bf16.msra.mxu1 %v9626_v16  ;;  %9226 = vmatprep.subr.bf16.mxu0 %v12709_v5 }
  0x79   :  { %9246 = vmatprep.subr.bf16.mxu1 %v12709_v5 }
  0x7b   :  { %9227 = vmatpush3.bf16.msra.mxu0 %v9627_v17 }
  0x7c   :  { %9247 = vmatpush3.bf16.msra.mxu1 %v9628_v18  ;;  %9228 = vmatprep.subr.bf16.mxu0 %v12709_v5 }
  0x7d   :  { %9248 = vmatprep.subr.bf16.mxu1 %v12709_v5 }
  0x7f   :  { %9229 = vmatpush3.bf16.msra.mxu0 %v9629_v19 }
  0x80   :  { %9249 = vmatpush3.bf16.msra.mxu1 %v9630_v20  ;;  %9230 = vmatprep.subr.bf16.mxu0 %v12709_v5 }
  0x81   :  { %9250 = vmatprep.subr.bf16.mxu1 %v12709_v5 }
  0x83   :  { %9231 = vmatpush3.bf16.msra.mxu0 %v9631_v21 }
  0x84   :  { %9251 = vmatpush3.bf16.msra.mxu1 %v9632_v22  ;;  %9232 = vmatprep.subr.bf16.mxu0 %v12709_v5 }
  0x85   :  { %9252 = vmatprep.subr.bf16.mxu1 %v12709_v5 }
  0x87   :  { %9233 = vmatpush3.bf16.msra.mxu0 %v9633_v23 }
  0x88   :  { %9253 = vmatpush3.bf16.msra.mxu1 %v9634_v24  ;;  %9234 = vmatprep.subr.bf16.mxu0 %v12709_v5 }
  0x89   :  { %9254 = vmatprep.subr.bf16.mxu1 %v12709_v5 }
  0x8b   :  { %9235 = vmatpush3.bf16.msra.mxu0 %v9635_v25 }
  0x8c   :  { %9255 = vmatpush3.bf16.msra.mxu1 %v9636_v26  ;;  %9260 = vmatprep.subr.bf16.mxu0 %v12709_v5 }
  0x8d   :  { %9280 = vmatprep.subr.bf16.mxu1 %v12709_v5 }
  0xfb   :  { %v133_v6 = vpop.xlane.xlu0 %132 }
  0xfc   :  { %v137_v7 = vmul.f32 0.0078125, %v133_v6 }
  0xfe   :  { %v139_v8 = vsub.f32 %v124_v0, %v137_v7 }
  0xff   :  { %v135_v9 = vpop.xlane.xlu0 %134 }
 0x100   :  { %v138_v10 = vmul.f32 0.0078125, %v135_v9  ;;  %v141_v11 = vmul.f32 %v139_v8, %v139_v8  ;;  %v10205_v9 = vmov 1983009808  }
 0x102   :  { %v140_v12 = vsub.f32 %v125_v1, %v138_v10  ;;  %143 = vadd.xlane.f32.xlu1 %v141_v11  ;;  %v514_v10 = vunpack.c.l.s4 %v10205_v9  ;;  %v516_v11 = vlaneseq }
 0x104   :  { %v142_v13 = vmul.f32 %v140_v12, %v140_v12  ;;  %v515_v14 = vunpack.c.0.s8 %v514_v10  ;;  %v10407_v15 = vshrl.u32 %v516_v11, 7 }
 0x106   :  { %145 = vadd.xlane.f32.xlu1 %v142_v13  ;;  %v10410_v18 = vsub.s32 %v515_v14, %v10407_v15 }
 0x18f   :  { %v144_v27 = vpop.xlane.xlu1 %143 }
 0x190   :  { %v147_v28 = vmul.f32 0.0078125, %v144_v27 }
 0x192   :  { %v149_v29 = vadd.f32 1e-05, %v147_v28 }
 0x193   :  { %v146_v30 = vpop.xlane.xlu1 %145 }
 0x194   :  { %9725 = vrsqrt.f32 %v149_v29  ;;  %v148_v31 = vmul.f32 0.0078125, %v146_v30 }
 0x196   :  { %v150_v32 = vadd.f32 1e-05, %v148_v31 }
 0x198   :  { %9727 = vrsqrt.f32 %v150_v32 }
 0x19e   :  { %v9726_v33 = vpop.eup %9725 }
 0x19f   :  { %v153_v34 = vmul.f32 %v9726_v33, %v139_v8 }
 0x1a1   :  { %v159_v38 = vmul.f32 %v8877_v35, %v153_v34 }
 0x1a2   :  { %v9728_v36 = vpop.eup %9727 }
 0x1a3   :  { %v154_v37 = vmul.f32 %v9728_v36, %v140_v12  ;;  %v165_v41 = vadd.f32 %v8878_v39, %v159_v38  ;;  %v10206_v12 = vmov 1934713408  }
 0x1a4   :  { %v546_v13 = vunpack.c.l.s4 %v10206_v12 }
 0x1a5   :  { %v160_v40 = vmul.f32 %v8877_v35, %v154_v37 }
 0x1a6   :  { %v547_v17 = vunpack.c.0.s8 %v546_v13 }
 0x1a7   :  { %v166_v42 = vadd.f32 %v8878_v39, %v160_v40 }
 0x1a8   :  { %v10413_v25 = vsub.s32 %v547_v17, %v10407_v15 }
 0x1a9   :  { %v171_v44 = vpack.c.bf16 %v166_v42, %v165_v41 }
 0x1ab   :  { %9237 = vmatmul.mubr.bf16.vlgmr.msra.gmra.mrb[0].mxu0 %v171_v44  ;;  %9257 = vmatmul.mubr.bf16.vlgmr.msra.gmra.mrb[0].mxu1 %v171_v44 }
 0x1ac   :  { %9261 = vmatpush3.bf16.msra.mxu0 %v9637_v43  ;;  %9276 = vmatprep.mubr.msk.bf16.mxu0 %vm10202_vm0, %v12709_v5 }
 0x1ad   :  { %9262 = vmatprep.subr.bf16.mxu0 %v12709_v5  ;;  %9282 = vmatprep.mubr.msk.bf16.mxu1 %vm10202_vm0, %v12709_v5 }
 0x1b0   :  { %9263 = vmatpush3.bf16.msra.mxu0 %v9638_v45 }
 0x1b1   :  { %9264 = vmatprep.subr.bf16.mxu0 %v12709_v5 }
 0x1b4   :  { %9265 = vmatpush3.bf16.msra.mxu0 %v9639_v46 }
 0x1b5   :  { %9266 = vmatprep.subr.bf16.mxu0 %v12709_v5 }
 0x1b8   :  { %9267 = vmatpush3.bf16.msra.mxu0 %v9640_v47 }
 0x1b9   :  { %9268 = vmatprep.subr.bf16.mxu0 %v12709_v5 }
 0x1bc   :  { %9269 = vmatpush3.bf16.msra.mxu0 %v9641_v48 }
 0x1bd   :  { %9270 = vmatprep.subr.bf16.mxu0 %v12709_v5 }
 0x1c0   :  { %9271 = vmatpush3.bf16.msra.mxu0 %v9642_v49 }
 0x1c1   :  { %9272 = vmatprep.subr.bf16.mxu0 %v12709_v5 }
 0x1c4   :  { %9273 = vmatpush3.bf16.msra.mxu0 %v9643_v50 }
 0x1c5   :  { %9274 = vmatprep.subr.bf16.mxu0 %v12709_v5 }
 0x1c8   :  { %9275 = vmatpush3.bf16.msra.mxu0 %v9644_v51 }
 0x1c9   :  { %9328 = vmatprep.subr.bf16.mxu0 %v12709_v5 }
 0x1cb   :  { %9277 = vmatmul.mubr.bf16.vlgmr.msra.gmra.mrb[4].mxu0 %v171_v44 }
 0x1cc   :  { %9330 = vmatprep.mubr.msk.bf16.mxu0 %vm10202_vm0, %v12709_v5 }
 0x27e   :  { %v274_v53 = vpop.f32.mrb[0].mxu0  ;;  %v384_v54 = vpop.f32.mrb[0].mxu1 }
 0x27f   :  { %v385_v55 = vadd.f32 %v8888_v52, %v384_v54  ;;  %v9238_v56 = vpop.f32.mrb[1].mxu0  ;;  %v9258_v57 = vpop.f32.mrb[1].mxu1  ;;  %v275_v1 = vadd.f32 %v8879_v58, %v274_v53 }
 0x280   :  { %v277_v59 = vpop.f32.mrb[2].mxu0  ;;  %v387_v60 = vpop.f32.mrb[2].mxu1 }
 0x281   :  { %v10390_v61 = vadd.f32 %v8879_v58, %v277_v59  ;;  %v10392_v62 = vadd.f32 %v8888_v52, %v387_v60  ;;  %651 = vrot.lane.b32.xlu1 %v385_v55, %s10192_s19  ;;  %648 = vrot.lane.b32.xlu0 %v385_v55, %s10203_s7  ;;  %v9239_v63 = vpop.f32.mrb[3].mxu0  ;;  %v9259_v0 = vpop.f32.mrb[3].mxu1 }
 0x285   :  { %654 = vrot.lane.b32.xlu1 %v385_v55, %s10204_s23  ;;  %505 = vrot.lane.b32.xlu0 %v275_v1, %s10192_s19 }
 0x289   :  { %502 = vrot.lane.b32.xlu1 %v275_v1, %s10203_s7 }
 0x28d   :  { %508 = vrot.lane.b32.xlu1 %v275_v1, %s10204_s23 }
 0x29e   :  { %v10400_v2 = vpop.f32.mrb[4].mxu0 }
 0x29f   :  { %v9278_v3 = vpop.f32.mrb[5].mxu0 }
 0x2a0   :  { %v497_v6 = vpop.f32.mrb[6].mxu0 }
 0x2a1   :  { %v10405_v7 = vadd.f32 %v10402_v4, %v497_v6  ;;  %v9279_v8 = vpop.f32.mrb[7].mxu0 }
 0x2f3   :  { %v652_v16 = vpop.permute.xlu1 %651  ;;  %v649_v21 = vpop.permute.xlu0 %648 }
 0x2f4   :  { %v657_v19 = vcombine.low %v385_v55, %v652_v16  ;;  %v658_v20 = vcombine.high %v385_v55, %v652_v16 }
 0x2f6   :  { %v665_v26 = vrot.slane %v657_v19, %v10410_v18  ;;  %v672_v27 = vrot.slane %v658_v20, %v10410_v18 }
 0x2f7   :  { %v655_v22 = vpop.permute.xlu1 %654  ;;  %v506_v35 = vpop.permute.xlu0 %505 }
 0x2f8   :  { %v673_v23 = vcombine.low %v649_v21, %v655_v22  ;;  %v674_v24 = vcombine.high %v649_v21, %v655_v22  ;;  %v511_v40 = vcombine.low %v275_v1, %v506_v35  ;;  %v512_v41 = vcombine.high %v275_v1, %v506_v35 }
 0x2fa   :  { %v681_v28 = vrot.slane %v673_v23, %v10410_v18  ;;  %v688_v29 = vrot.slane %v674_v24, %v10410_v18  ;;  %v519_v53 = vrot.slane %v511_v40, %v10410_v18  ;;  %v526_v54 = vrot.slane %v512_v41, %v10410_v18 }
 0x2fb   :  { %v503_v30 = vpop.permute.xlu1 %502 }
 0x2fc   :  { %v689_v31 = vcombine.low %v665_v26, %v681_v28  ;;  %v690_v32 = vcombine.high %v665_v26, %v681_v28  ;;  %v705_v33 = vcombine.low %v672_v27, %v688_v29  ;;  %v706_v34 = vcombine.high %v672_v27, %v688_v29 }
 0x2fe   :  { %v697_v36 = vrot.slane %v689_v31, %v10413_v25  ;;  %v704_v37 = vrot.slane %v690_v32, %v10413_v25  ;;  %v713_v38 = vrot.slane %v705_v33, %v10413_v25  ;;  %v720_v39 = vrot.slane %v706_v34, %v10413_v25 }
 0x2ff   :  { %v509_v42 = vpop.permute.xlu1 %508 }
 0x300   :  { %v725_v43 = vcombine.low %v697_v36, %v704_v37  ;;  %v8908_v44 = vcombine.high %v697_v36, %v704_v37  ;;  %v741_v45 = vcombine.low %v713_v38, %v720_v39  ;;  %v8909_v46 = vcombine.high %v713_v38, %v720_v39 }
 0x301   :  { %v527_v47 = vcombine.low %v503_v30, %v509_v42  ;;  %v528_v48 = vcombine.high %v503_v30, %v509_v42 }
 0x302   :  { %v732_v49 = vrot.slane %v725_v43, %v10410_v18  ;;  %v740_v50 = vrot.slane %v8908_v44, %v10410_v18  ;;  %v748_v51 = vrot.slane %v741_v45, %v10410_v18  ;;  %v756_v52 = vrot.slane %v8909_v46, %v10410_v18 }
 0x303   :  { %v535_v55 = vrot.slane %v527_v47, %v10410_v18  ;;  %v542_v56 = vrot.slane %v528_v48, %v10410_v18 }
 0x304   :  { %v757_v57 = vcombine.low %v732_v49, %v740_v50  ;;  %v773_v58 = vcombine.low %v748_v51, %v756_v52  ;;  %v758_v24 = vcombine.high %v732_v49, %v740_v50  ;;  %v774_v29 = vcombine.high %v748_v51, %v756_v52 }
 0x305   :  { %v543_v59 = vcombine.low %v519_v53, %v535_v55  ;;  %v544_v60 = vcombine.high %v519_v53, %v535_v55  ;;  %v559_v63 = vcombine.low %v526_v54, %v542_v56  ;;  %v560_v0 = vcombine.high %v526_v54, %v542_v56  ;;  %v116_v54 = vld [vmem:[#allocation10] sm:$0xff] }
 0x306   :  { %v765_v1 = vrot.slane %v757_v57, %v10413_v25  ;;  %v781_v3 = vrot.slane %v773_v58, %v10413_v25  ;;  %v772_v34 = vrot.slane %v758_v24, %v10413_v25  ;;  %v788_v35 = vrot.slane %v774_v29, %v10413_v25 }
 0x307   :  { %v551_v6 = vrot.slane %v543_v59, %v10413_v25  ;;  %v558_v8 = vrot.slane %v544_v60, %v10413_v25  ;;  %v567_v9 = vrot.slane %v559_v63, %v10413_v25  ;;  %v574_v10 = vrot.slane %v560_v0, %v10413_v25 }
 0x308   :  { %v789_v11 = vcombine.low %v765_v1, %v781_v3  ;;  %v790_v28 = vcombine.high %v765_v1, %v781_v3  ;;  %v791_v38 = vcombine.low %v772_v34, %v788_v35  ;;  %v792_v47 = vcombine.high %v772_v34, %v788_v35 }
 0x309   :  { %v579_v12 = vcombine.low %v551_v6, %v558_v8  ;;  %v8906_v13 = vcombine.high %v551_v6, %v558_v8  ;;  %v595_v14 = vcombine.low %v567_v9, %v574_v10  ;;  %v8907_v16 = vcombine.high %v567_v9, %v574_v10 }
 0x30a   :  { %v943_v17 = vpack.c.bf16 %v789_v11, %v789_v11  ;;  %v944_v33 = vpack.c.bf16 %v790_v28, %v790_v28  ;;  %v945_v42 = vpack.c.bf16 %v791_v38, %v791_v38  ;;  %v946_v49 = vpack.c.bf16 %v792_v47, %v792_v47 }
 0x30b   :  { %v586_v19 = vrot.slane %v579_v12, %v10410_v18  ;;  %v594_v20 = vrot.slane %v8906_v13, %v10410_v18  ;;  %v602_v21 = vrot.slane %v595_v14, %v10410_v18  ;;  %v610_v22 = vrot.slane %v8907_v16, %v10410_v18 }
 0x30c   :  { %v952_v23 = vsel %vm947_vm1, %v943_v17, 0  ;;  %v998_v37 = vsel %vm947_vm1, %v944_v33, 0  ;;  %v1044_v46 = vsel %vm947_vm1, %v945_v42, 0  ;;  %v1090_v51 = vsel %vm947_vm1, %v946_v49, 0 }
 0x30d   :  { %v611_v26 = vcombine.low %v586_v19, %v594_v20  ;;  %v627_v27 = vcombine.low %v602_v21, %v610_v22  ;;  %9281 = vmatpush3.bf16.xpose.msra.mxu1 %v952_v23  ;;  %v612_v39 = vcombine.high %v586_v19, %v594_v20  ;;  %v628_v40 = vcombine.high %v602_v21, %v610_v22 }
 0x30e   :  { %9286 = vmatprep.subr.bf16.mxu1 %v12709_v5  ;;  %vm118_vm2 = vcmp.gt.f32.partialorder %v116_v54, 0.0 }
 0x30f   :  { %v619_v30 = vrot.slane %v611_v26, %v10413_v25  ;;  %v635_v31 = vrot.slane %v627_v27, %v10413_v25  ;;  %v626_v44 = vrot.slane %v612_v39, %v10413_v25  ;;  %v642_v45 = vrot.slane %v628_v40, %v10413_v25 }
 0x310   :  { %v495_v27 = vadd.f32 %v10402_v4, %v10400_v2 }
 0x311   :  { %v643_v32 = vcombine.low %v619_v30, %v635_v31  ;;  %v644_v41 = vcombine.high %v619_v30, %v635_v31  ;;  %v645_v48 = vcombine.low %v626_v44, %v642_v45  ;;  %v646_v52 = vcombine.high %v626_v44, %v642_v45 }
 0x313   :  { %v939_v36 = vpack.c.bf16 %v643_v32, %v643_v32  ;;  %v940_v43 = vpack.c.bf16 %v644_v41, %v644_v41  ;;  %v941_v50 = vpack.c.bf16 %v645_v48, %v645_v48  ;;  %v942_v53 = vpack.c.bf16 %v646_v52, %v646_v52 }
 0x315   :  { %9283 = vmatmul.mubr.msk.bf16.vlgmr.msra.gmra.mrb[4].mxu1 %vm947_vm1, %v939_v36 }
 0x316   :  { %9287 = vmatpush3.bf16.xpose.msra.mxu1 %v998_v37  ;;  %9288 = vmatprep.mubr.msk.bf16.mxu1 %vm10202_vm0, %v12709_v5 }
 0x317   :  { %9292 = vmatprep.subr.bf16.mxu1 %v12709_v5 }
 0x31d   :  { %9289 = vmatmul.mubr.msk.bf16.vlgmr.msra.gmra.mrb[8].mxu1 %vm947_vm1, %v940_v43 }
 0x31e   :  { %9293 = vmatpush3.bf16.xpose.msra.mxu1 %v1044_v46  ;;  %9294 = vmatprep.mubr.msk.bf16.mxu1 %vm10202_vm0, %v12709_v5 }
 0x31f   :  { %9298 = vmatprep.subr.bf16.mxu1 %v12709_v5 }
 0x325   :  { %9295 = vmatmul.mubr.msk.bf16.vlgmr.msra.gmra.mrb[12].mxu1 %vm947_vm1, %v941_v50 }
 0x326   :  { %9299 = vmatpush3.bf16.xpose.msra.mxu1 %v1090_v51  ;;  %9300 = vmatprep.mubr.msk.bf16.mxu1 %vm10202_vm0, %v12709_v5 }
 0x327   :  { %9304 = vmatprep.subr.bf16.mxu1 %v12709_v5 }
 0x32d   :  { %9301 = vmatmul.mubr.msk.bf16.vlgmr.msra.gmra.mrb[16].mxu1 %vm947_vm1, %v942_v53 }
 0x32e   :  { %9306 = vmatprep.mubr.msk.bf16.mxu1 %vm10202_vm0, %v12709_v5 }
 0x3e8   :  { %v988_v55 = vpop.f32.mrb[4].mxu1 }
 0x3e9   :  { %v1132_v56 = vmul.f32 0.17677669, %v988_v55  ;;  %v9284_v57 = vpop.f32.mrb[5].mxu1 }
 0x3ea   :  { %v991_v58 = vpop.f32.mrb[6].mxu1 }
 0x3eb   :  { %v9285_v59 = vpop.f32.mrb[7].mxu1  ;;  %v1138_v60 = vsel %vm118_vm2, %v1132_v56, -1e+30 }
 0x3ec   :  { %v1143_v63 = vsel %vm1142_vm3, %v1138_v60, -inf }
 0x3ed   :  { %1144 = vmax.xlane.f32.xlu0 %v1143_v63 }
 0x3f0   :  { %v1034_v0 = vpop.f32.mrb[8].mxu1 }
 0x3f1   :  { %v1133_v1 = vmul.f32 0.17677669, %v1034_v0  ;;  %v9290_v3 = vpop.f32.mrb[9].mxu1 }
 0x3f2   :  { %v1037_v6 = vpop.f32.mrb[10].mxu1 }
 0x3f3   :  { %v9291_v8 = vpop.f32.mrb[11].mxu1  ;;  %v1139_v9 = vsel %vm118_vm2, %v1133_v1, -1e+30 }
 0x3f4   :  { %v1146_v10 = vsel %vm1142_vm3, %v1139_v9, -inf }
 0x3f5   :  { %1147 = vmax.xlane.f32.xlu1 %v1146_v10 }
 0x3f8   :  { %v1080_v11 = vpop.f32.mrb[12].mxu1 }
 0x3f9   :  { %v1134_v12 = vmul.f32 0.17677669, %v1080_v11  ;;  %v9296_v13 = vpop.f32.mrb[13].mxu1 }
 0x3fa   :  { %v1083_v14 = vpop.f32.mrb[14].mxu1 }
 0x3fb   :  { %v9297_v16 = vpop.f32.mrb[15].mxu1  ;;  %v10472_v17 = vsel %vm118_vm2, %v1134_v12, -1e+30 }
 0x3fc   :  { %v1149_v19 = vsel %vm1142_vm3, %v10472_v17, -inf }
 0x3fd   :  { %1150 = vmax.xlane.f32.xlu0 %v1149_v19 }
 0x400   :  { %v1126_v20 = vpop.f32.mrb[16].mxu1 }
 0x401   :  { %v1135_v21 = vmul.f32 0.17677669, %v1126_v20  ;;  %v9302_v22 = vpop.f32.mrb[17].mxu1 }
 0x402   :  { %v1129_v23 = vpop.f32.mrb[18].mxu1 }
 0x403   :  { %v9303_v24 = vpop.f32.mrb[19].mxu1  ;;  %v10477_v26 = vsel %vm118_vm2, %v1135_v21, -1e+30  ;;  %vm5302_vm2 = vcmask 1047559  }
 0x404   :  { %v1152_v28 = vsel %vm1142_vm3, %v10477_v26, -inf }
 0x405   :  { %1153 = vmax.xlane.f32.xlu0 %v1152_v28 }
 0x406   :  { %794 = vrot.lane.b32.xlu1 %v495_v27, %s10203_s7 }
 0x40a   :  { %800 = vrot.lane.b32.xlu1 %v495_v27, %s10204_s23 }
 0x40e   :  { %1680 = vrot.lane.b32.xlu1 %v10392_v62, %s10203_s7 }
 0x412   :  { %1686 = vrot.lane.b32.xlu1 %v10392_v62, %s10204_s23 }
 0x416   :  { %1534 = vrot.lane.b32.xlu1 %v10390_v61, %s10203_s7 }
 0x41b   :  { %797 = vrot.lane.b32.xlu0 %v495_v27, %s10192_s19 }
 0x47a   :  { %v1145_v2 = vpop.xlane.xlu0 %1144 }
 0x47b   :  { %v1155_v4 = vsub.f32 %v1138_v60, %v1145_v2 }
 0x47d   :  { %v1159_v29 = vmul.f32 1.442695, %v1155_v4 }
 0x47f   :  { %9729 = vpow2.f32 %v1159_v29 }
 0x482   :  { %v1148_v30 = vpop.xlane.xlu1 %1147 }
 0x483   :  { %v1156_v31 = vsub.f32 %v1139_v9, %v1148_v30 }
 0x485   :  { %v1161_v32 = vmul.f32 1.442695, %v1156_v31 }
 0x486   :  { %v795_v35 = vpop.permute.xlu1 %794 }
 0x487   :  { %9731 = vpow2.f32 %v1161_v32 }
 0x489   :  { %v10492_v33 = vpop.eup %9729 }
 0x48a   :  { %v1167_v34 = vsel %vm1142_vm3, %v10492_v33, 0.0  ;;  %v1151_v36 = vpop.xlane.xlu0 %1150  ;;  %v801_v38 = vpop.permute.xlu1 %800 }
 0x48b   :  { %1168 = vadd.xlane.f32.xlu0 %v1167_v34  ;;  %v819_v41 = vcombine.low %v795_v35, %v801_v38  ;;  %v820_v42 = vcombine.high %v795_v35, %v801_v38  ;;  %v1157_v24 = vsub.f32 %v10472_v17, %v1151_v36 }
 0x48d   :  { %v827_v46 = vrot.slane %v819_v41, %v10410_v18  ;;  %v834_v47 = vrot.slane %v820_v42, %v10410_v18  ;;  %v1163_v28 = vmul.f32 1.442695, %v1157_v24 }
 0x48e   :  { %v1681_v32 = vpop.permute.xlu1 %1680 }
 0x48f   :  { %9733 = vpow2.f32 %v1163_v28 }
 0x491   :  { %v10496_v37 = vpop.eup %9731 }
 0x492   :  { %v1154_v39 = vpop.xlane.xlu0 %1153  ;;  %v1170_v40 = vsel %vm1142_vm3, %v10496_v37, 0.0 }
 0x493   :  { %1171 = vadd.xlane.f32.xlu1 %v1170_v40  ;;  %v1158_v2 = vsub.f32 %v10477_v26, %v1154_v39  ;;  %v1687_v26 = vpop.permute.xlu1 %1686 }
 0x494   :  { %v1705_v35 = vcombine.low %v1681_v32, %v1687_v26  ;;  %v1706_v36 = vcombine.high %v1681_v32, %v1687_v26 }
 0x495   :  { %v1165_v4 = vmul.f32 1.442695, %v1158_v2 }
 0x496   :  { %v798_v43 = vpop.permute.xlu0 %797  ;;  %v1713_v42 = vrot.slane %v1705_v35, %v10410_v18 }
 0x497   :  { %v803_v44 = vcombine.low %v495_v27, %v798_v43  ;;  %v804_v45 = vcombine.high %v495_v27, %v798_v43  ;;  %9735 = vpow2.f32 %v1165_v4  ;;  %v10538_v38 = vpop.permute.xlu1 %1534  ;;  %v1720_v43 = vrot.slane %v1706_v36, %v10410_v18 }
 0x499   :  { %v811_v48 = vrot.slane %v803_v44, %v10410_v18  ;;  %v818_v49 = vrot.slane %v804_v45, %v10410_v18  ;;  %v10528_v29 = vpop.eup %9733 }
 0x49a   :  { %v1173_v30 = vsel %vm1142_vm3, %v10528_v29, 0.0 }
 0x49b   :  { %v835_v50 = vcombine.low %v811_v48, %v827_v46  ;;  %v836_v51 = vcombine.high %v811_v48, %v827_v46  ;;  %v851_v52 = vcombine.low %v818_v49, %v834_v47  ;;  %v852_v53 = vcombine.high %v818_v49, %v834_v47 }
 0x49d   :  { %v843_v54 = vrot.slane %v835_v50, %v10413_v25  ;;  %v850_v55 = vrot.slane %v836_v51, %v10413_v25  ;;  %v859_v56 = vrot.slane %v851_v52, %v10413_v25  ;;  %v866_v57 = vrot.slane %v852_v53, %v10413_v25 }
 0x49f   :  { %v871_v58 = vcombine.low %v843_v54, %v850_v55  ;;  %v8910_v59 = vcombine.high %v843_v54, %v850_v55  ;;  %v887_v60 = vcombine.low %v859_v56, %v866_v57  ;;  %v8911_v63 = vcombine.high %v859_v56, %v866_v57 }
 0x4a1   :  { %v878_v0 = vrot.slane %v871_v58, %v10410_v18  ;;  %v886_v1 = vrot.slane %v8910_v59, %v10410_v18  ;;  %v894_v3 = vrot.slane %v887_v60, %v10410_v18  ;;  %v902_v6 = vrot.slane %v8911_v63, %v10410_v18  ;;  %1683 = vrot.lane.b32.xlu0 %v10392_v62, %s10192_s19  ;;  %v10532_v31 = vpop.eup %9735 }
 0x4a2   :  { %v1176_v17 = vsel %vm1142_vm3, %v10532_v31, 0.0 }
 0x4a3   :  { %v903_v8 = vcombine.low %v878_v0, %v886_v1  ;;  %v919_v9 = vcombine.low %v894_v3, %v902_v6  ;;  %v904_v10 = vcombine.high %v878_v0, %v886_v1  ;;  %v920_v11 = vcombine.high %v894_v3, %v902_v6 }
 0x4a4   :  { %1537 = vrot.lane.b32.xlu1 %v10390_v61, %s10192_s19 }
 0x4a5   :  { %v911_v12 = vrot.slane %v903_v8, %v10413_v25  ;;  %v927_v13 = vrot.slane %v919_v9, %v10413_v25  ;;  %v918_v14 = vrot.slane %v904_v10, %v10413_v25  ;;  %v934_v16 = vrot.slane %v920_v11, %v10413_v25 }
 0x4a7   :  { %v935_v19 = vcombine.low %v911_v12, %v927_v13  ;;  %v936_v20 = vcombine.high %v911_v12, %v927_v13  ;;  %v10520_v21 = vcombine.low %v918_v14, %v934_v16  ;;  %v10522_v22 = vcombine.high %v918_v14, %v934_v16 }
 0x4a9   :  { %v1191_v23 = vpack.c.bf16 %v935_v19, %v935_v19  ;;  %v1192_v56 = vpack.c.bf16 %v936_v20, %v936_v20  ;;  %v1193_v14 = vpack.c.bf16 %v10520_v21, %v10520_v21 }
 0x4ab   :  { %v1200_v27 = vsel %vm1198_vm4, %v1191_v23, 0  ;;  %v1246_v8 = vsel %vm1198_vm4, %v1192_v56, 0  ;;  %v1292_v23 = vsel %vm1198_vm4, %v1193_v14, 0 }
 0x4ac   :  { %9305 = vmatpush3.bf16.msra.mxu1 %v1200_v27 }
 0x4ad   :  { %9310 = vmatprep.subr.bf16.mxu1 %v12709_v5 }
 0x4c0   :  { %1174 = vadd.xlane.f32.xlu0 %v1173_v30 }
 0x4c4   :  { %1177 = vadd.xlane.f32.xlu0 %v1176_v17 }
 0x4da   :  { %1540 = vrot.lane.b32.xlu0 %v10390_v61, %s10204_s23 }
 0x518   :  { %v1169_v34 = vpop.xlane.xlu0 %1168 }
 0x519   :  { %9737 = vrcp.f32 %v1169_v34 }
 0x51c   :  { %v1684_v39 = vpop.permute.xlu0 %1683 }
 0x51d   :  { %v1689_v40 = vcombine.low %v10392_v62, %v1684_v39  ;;  %v1690_v41 = vcombine.high %v10392_v62, %v1684_v39 }
 0x51f   :  { %v1697_v44 = vrot.slane %v1689_v40, %v10410_v18  ;;  %v1704_v45 = vrot.slane %v1690_v41, %v10410_v18  ;;  %v1194_v40 = vpack.c.bf16 %v10522_v22, %v10522_v22 }
 0x520   :  { %v1172_v46 = vpop.xlane.xlu1 %1171 }
 0x521   :  { %v1721_v47 = vcombine.low %v1697_v44, %v1713_v42  ;;  %v1722_v48 = vcombine.high %v1697_v44, %v1713_v42  ;;  %v1737_v49 = vcombine.low %v1704_v45, %v1720_v43  ;;  %v1738_v50 = vcombine.high %v1704_v45, %v1720_v43 }
 0x522   :  { %9739 = vrcp.f32 %v1172_v46  ;;  %v1338_v22 = vsel %vm1198_vm4, %v1194_v40, 0 }
 0x523   :  { %v9738_v51 = vpop.eup %9737  ;;  %v1729_v52 = vrot.slane %v1721_v47, %v10413_v25  ;;  %v1736_v53 = vrot.slane %v1722_v48, %v10413_v25  ;;  %v1745_v62 = vrot.slane %v1737_v49, %v10413_v25  ;;  %v1752_v54 = vrot.slane %v1738_v50, %v10413_v25 }
 0x524   :  { %v1180_v55 = vmul.f32 %v9738_v51, %v10492_v33  ;;  %v1538_v21 = vpop.permute.xlu1 %1537 }
 0x525   :  { %v1757_v57 = vcombine.low %v1729_v52, %v1736_v53  ;;  %v8924_v58 = vcombine.high %v1729_v52, %v1736_v53  ;;  %v1773_v59 = vcombine.low %v1745_v62, %v1752_v54  ;;  %v8925_v60 = vcombine.high %v1745_v62, %v1752_v54 }
 0x526   :  { %v1187_v63 = vpack.c.bf16 %v1180_v55, %v1180_v55  ;;  %v1543_v28 = vcombine.low %v10390_v61, %v1538_v21  ;;  %v1544_v2 = vcombine.high %v10390_v61, %v1538_v21 }
 0x527   :  { %v1764_v0 = vrot.slane %v1757_v57, %v10410_v18  ;;  %v1772_v1 = vrot.slane %v8924_v58, %v10410_v18  ;;  %v1780_v3 = vrot.slane %v1773_v59, %v10410_v18  ;;  %v1788_v6 = vrot.slane %v8925_v60, %v10410_v18 }
 0x528   :  { %9307 = vmatmul.mubr.msk.bf16.vlgmr.msra.gmra.mrb[20].mxu1 %vm1142_vm3, %v1187_v63  ;;  %v1551_v26 = vrot.slane %v1543_v28, %v10410_v18  ;;  %v1558_v34 = vrot.slane %v1544_v2, %v10410_v18 }
 0x529   :  { %9311 = vmatpush3.bf16.msra.mxu1 %v1246_v8  ;;  %9312 = vmatprep.mubr.msk.bf16.mxu1 %vm10202_vm0, %v12709_v5  ;;  %v1789_v33 = vcombine.low %v1764_v0, %v1772_v1  ;;  %v1805_v9 = vcombine.low %v1780_v3, %v1788_v6  ;;  %v1790_v61 = vcombine.high %v1764_v0, %v1772_v1 }
 0x52a   :  { %9316 = vmatprep.subr.bf16.mxu1 %v12709_v5  ;;  %v1806_v41 = vcombine.high %v1780_v3, %v1788_v6 }
 0x52b   :  { %v1797_v10 = vrot.slane %v1789_v33, %v10413_v25  ;;  %v1813_v11 = vrot.slane %v1805_v9, %v10413_v25  ;;  %v1804_v51 = vrot.slane %v1790_v61, %v10413_v25 }
 0x52c   :  { %v9740_v12 = vpop.eup %9739  ;;  %v1820_v52 = vrot.slane %v1806_v41, %v10413_v25 }
 0x52d   :  { %v1182_v13 = vmul.f32 %v9740_v12, %v10496_v37  ;;  %v1821_v16 = vcombine.low %v1797_v10, %v1813_v11 }
 0x52e   :  { %v1823_v3 = vcombine.low %v1804_v51, %v1820_v52 }
 0x52f   :  { %v1188_v19 = vpack.c.bf16 %v1182_v13, %v1182_v13  ;;  %v1975_v20 = vpack.c.bf16 %v1821_v16, %v1821_v16  ;;  %v1824_v13 = vcombine.high %v1804_v51, %v1820_v52 }
 0x530   :  { %v1977_v12 = vpack.c.bf16 %v1823_v3, %v1823_v3 }
 0x531   :  { %9313 = vmatmul.mubr.msk.bf16.vlgmr.msra.gmra.mrb[24].mxu1 %vm1142_vm3, %v1188_v19  ;;  %v1983_v24 = vsel %vm947_vm1, %v1975_v20, 0 }
 0x532   :  { %9317 = vmatpush3.bf16.msra.mxu1 %v1292_v23  ;;  %9329 = vmatpush3.bf16.xpose.msra.mxu0 %v1983_v24  ;;  %v2075_v23 = vsel %vm947_vm1, %v1977_v12, 0  ;;  %v1978_v24 = vpack.c.bf16 %v1824_v13, %v1824_v13 }
 0x533   :  { %9318 = vmatprep.mubr.msk.bf16.mxu1 %vm10202_vm0, %v12709_v5  ;;  %9322 = vmatprep.subr.bf16.mxu1 %v12709_v5 }
 0x534   :  { %9340 = vmatprep.subr.bf16.mxu0 %v12709_v5 }
 0x54d   :  { %v1175_v37 = vpop.xlane.xlu0 %1174 }
 0x54e   :  { %9741 = vrcp.f32 %v1175_v37 }
 0x551   :  { %v1178_v27 = vpop.xlane.xlu0 %1177 }
 0x552   :  { %9743 = vrcp.f32 %v1178_v27  ;;  %v2121_v27 = vsel %vm947_vm1, %v1978_v24, 0 }
 0x555   :  { %v1541_v4 = vpop.permute.xlu0 %1540 }
 0x556   :  { %v1559_v30 = vcombine.low %v10538_v38, %v1541_v4  ;;  %v1560_v17 = vcombine.high %v10538_v38, %v1541_v4 }
 0x558   :  { %v9742_v32 = vpop.eup %9741  ;;  %v1567_v35 = vrot.slane %v1559_v30, %v10410_v18  ;;  %v1574_v36 = vrot.slane %v1560_v17, %v10410_v18 }
 0x559   :  { %v1184_v39 = vmul.f32 %v9742_v32, %v10528_v29  ;;  %v1822_v29 = vcombine.high %v1797_v10, %v1813_v11 }
 0x55a   :  { %v1575_v42 = vcombine.low %v1551_v26, %v1567_v35  ;;  %v1576_v43 = vcombine.high %v1551_v26, %v1567_v35  ;;  %v1591_v44 = vcombine.low %v1558_v34, %v1574_v36  ;;  %v1592_v38 = vcombine.high %v1558_v34, %v1574_v36 }
 0x55b   :  { %v1189_v45 = vpack.c.bf16 %v1184_v39, %v1184_v39  ;;  %v1976_v1 = vpack.c.bf16 %v1822_v29, %v1822_v29 }
 0x55c   :  { %v9744_v46 = vpop.eup %9743  ;;  %v1583_v47 = vrot.slane %v1575_v42, %v10413_v25  ;;  %v1590_v48 = vrot.slane %v1576_v43, %v10413_v25  ;;  %v1599_v49 = vrot.slane %v1591_v44, %v10413_v25  ;;  %v1606_v50 = vrot.slane %v1592_v38, %v10413_v25 }
 0x55d   :  { %9319 = vmatmul.mubr.msk.bf16.vlgmr.msra.gmra.mrb[28].mxu1 %vm1142_vm3, %v1189_v45  ;;  %v1186_v56 = vmul.f32 %v9744_v46, %v10532_v31  ;;  %v2029_v10 = vsel %vm947_vm1, %v1976_v1, 0 }
 0x55e   :  { %v1611_v53 = vcombine.low %v1583_v47, %v1590_v48  ;;  %v8922_v62 = vcombine.high %v1583_v47, %v1590_v48  ;;  %v1627_v54 = vcombine.low %v1599_v49, %v1606_v50  ;;  %v8923_v55 = vcombine.high %v1599_v49, %v1606_v50  ;;  %9323 = vmatpush3.bf16.msra.mxu1 %v1338_v22  ;;  %v10624_v48 = vld [vmem:[#allocation10 + $0x8] sm:$0xff] }
 0x55f   :  { %9324 = vmatprep.mubr.msk.bf16.mxu1 %vm10202_vm0, %v12709_v5  ;;  %9334 = vmatprep.subr.bf16.mxu1 %v12709_v5  ;;  %v1190_v6 = vpack.c.bf16 %v1186_v56, %v1186_v56  ;;  %vm119_vm5 = vcmp.gt.f32.partialorder %v10624_v48, 0.0 }
 0x560   :  { %v1618_v57 = vrot.slane %v1611_v53, %v10410_v18  ;;  %v1626_v58 = vrot.slane %v8922_v62, %v10410_v18  ;;  %v1634_v59 = vrot.slane %v1627_v54, %v10410_v18  ;;  %v1642_v60 = vrot.slane %v8923_v55, %v10410_v18 }
 0x562   :  { %v1643_v63 = vcombine.low %v1618_v57, %v1626_v58  ;;  %v1659_v0 = vcombine.low %v1634_v59, %v1642_v60  ;;  %v1644_v8 = vcombine.high %v1618_v57, %v1626_v58  ;;  %v1660_v31 = vcombine.high %v1634_v59, %v1642_v60 }
 0x564   :  { %v1651_v33 = vrot.slane %v1643_v63, %v10413_v25  ;;  %v1667_v9 = vrot.slane %v1659_v0, %v10413_v25  ;;  %v1658_v19 = vrot.slane %v1644_v8, %v10413_v25  ;;  %v1674_v20 = vrot.slane %v1660_v31, %v10413_v25 }
 0x565   :  { %9325 = vmatmul.mubr.msk.bf16.vlgmr.msra.gmra.mrb[32].mxu1 %vm1142_vm3, %v1190_v6 }
 0x566   :  { %v1675_v11 = vcombine.low %v1651_v33, %v1667_v9  ;;  %9336 = vmatprep.mubr.msk.bf16.mxu1 %vm10202_vm0, %v12709_v5  ;;  %v1676_v16 = vcombine.high %v1651_v33, %v1667_v9  ;;  %v1677_v21 = vcombine.low %v1658_v19, %v1674_v20  ;;  %v1678_v2 = vcombine.high %v1658_v19, %v1674_v20 }
 0x567   :  { %9335 = vmatpush3.bf16.xpose.msra.mxu1 %v2029_v10 }
 0x568   :  { %v1971_v14 = vpack.c.bf16 %v1675_v11, %v1675_v11  ;;  %9346 = vmatprep.subr.bf16.mxu1 %v12709_v5  ;;  %v1972_v37 = vpack.c.bf16 %v1676_v16, %v1676_v16  ;;  %v1973_v28 = vpack.c.bf16 %v1677_v21, %v1677_v21  ;;  %v1974_v4 = vpack.c.bf16 %v1678_v2, %v1678_v2 }
 0x56a   :  { %9331 = vmatmul.mubr.msk.bf16.vlgmr.msra.gmra.mrb[8].mxu0 %vm947_vm1, %v1971_v14 }
 0x56b   :  { %9341 = vmatpush3.bf16.xpose.msra.mxu0 %v2075_v23  ;;  %9342 = vmatprep.mubr.msk.bf16.mxu0 %vm10202_vm0, %v12709_v5 }
 0x56c   :  { %9352 = vmatprep.subr.bf16.mxu0 %v12709_v5 }
 0x56e   :  { %9337 = vmatmul.mubr.msk.bf16.vlgmr.msra.gmra.mrb[36].mxu1 %vm947_vm1, %v1972_v37 }
 0x56f   :  { %9347 = vmatpush3.bf16.xpose.msra.mxu1 %v2121_v27  ;;  %9348 = vmatprep.mubr.msk.bf16.mxu1 %vm10202_vm0, %v12709_v5 }
 0x570   :  { %9358 = vmatprep.subr.bf16.mxu1 %v12709_v5 }
 0x572   :  { %9343 = vmatmul.mubr.msk.bf16.vlgmr.msra.gmra.mrb[12].mxu0 %vm947_vm1, %v1973_v28 }
 0x573   :  { %9354 = vmatprep.mubr.msk.bf16.mxu0 %vm10202_vm0, %v12709_v5 }
 0x576   :  { %9349 = vmatmul.mubr.msk.bf16.vlgmr.msra.gmra.mrb[40].mxu1 %vm947_vm1, %v1974_v4 }
 0x577   :  { %9360 = vmatprep.mubr.msk.bf16.mxu1 %vm10202_vm0, %v12709_v5 }
 0x5fb   :  { %v1236_v30 = vpop.f32.mrb[20].mxu1 }
 0x5fc   :  { %v9308_v17 = vpop.f32.mrb[21].mxu1 }
 0x5fd   :  { %v1239_v32 = vpop.f32.mrb[22].mxu1 }
 0x5fe   :  { %v9309_v26 = vpop.f32.mrb[23].mxu1 }
 0x604   :  { %v1282_v34 = vpop.f32.mrb[24].mxu1 }
 0x605   :  { %v9314_v35 = vpop.f32.mrb[25].mxu1 }
 0x606   :  { %v1285_v36 = vpop.f32.mrb[26].mxu1 }
 0x607   :  { %v9315_v39 = vpop.f32.mrb[27].mxu1 }
 0x630   :  { %v1328_v40 = vpop.f32.mrb[28].mxu1 }
 0x631   :  { %v1380_v61 = vcombine.low %v1236_v30, %v1328_v40  ;;  %v1381_v41 = vcombine.high %v1236_v30, %v1328_v40  ;;  %v9320_v42 = vpop.f32.mrb[29].mxu1 }
 0x632   :  { %v1331_v43 = vpop.f32.mrb[30].mxu1 }
 0x633   :  { %v9321_v44 = vpop.f32.mrb[31].mxu1  ;;  %v1388_v50 = vrot.slane %v1380_v61, %v10410_v18  ;;  %v1395_v22 = vrot.slane %v1381_v41, %v10410_v18 }
 0x638   :  { %v1374_v38 = vpop.f32.mrb[32].mxu1 }
 0x639   :  { %v1396_v45 = vcombine.low %v1282_v34, %v1374_v38  ;;  %v1397_v46 = vcombine.high %v1282_v34, %v1374_v38  ;;  %v9326_v47 = vpop.f32.mrb[33].mxu1 }
 0x63a   :  { %v1377_v49 = vpop.f32.mrb[34].mxu1 }
 0x63b   :  { %v1404_v29 = vrot.slane %v1396_v45, %v10410_v18  ;;  %v1411_v51 = vrot.slane %v1397_v46, %v10410_v18  ;;  %v9327_v52 = vpop.f32.mrb[35].mxu1 }
 0x63d   :  { %v1412_v53 = vcombine.low %v1388_v50, %v1404_v29  ;;  %v1413_v62 = vcombine.high %v1388_v50, %v1404_v29  ;;  %v1428_v54 = vcombine.low %v1395_v22, %v1411_v51  ;;  %v1429_v55 = vcombine.high %v1395_v22, %v1411_v51  ;;  %v2019_v56 = vpop.f32.mrb[8].mxu0 }
 0x63e   :  { %v2163_v57 = vmul.f32 0.17677669, %v2019_v56  ;;  %v9332_v58 = vpop.f32.mrb[9].mxu0 }
 0x63f   :  { %v1420_v59 = vrot.slane %v1412_v53, %v10413_v25  ;;  %v1427_v60 = vrot.slane %v1413_v62, %v10413_v25  ;;  %v1436_v63 = vrot.slane %v1428_v54, %v10413_v25  ;;  %v1443_v0 = vrot.slane %v1429_v55, %v10413_v25  ;;  %v2022_v1 = vpop.f32.mrb[10].mxu0 }
 0x640   :  { %v9333_v3 = vpop.f32.mrb[11].mxu0  ;;  %v2169_v6 = vsel %vm119_vm5, %v2163_v57, -1e+30 }
 0x641   :  { %v1448_v8 = vcombine.low %v1420_v59, %v1427_v60  ;;  %v8920_v31 = vcombine.high %v1420_v59, %v1427_v60  ;;  %v1464_v33 = vcombine.low %v1436_v63, %v1443_v0  ;;  %v8921_v9 = vcombine.high %v1436_v63, %v1443_v0  ;;  %v2065_v10 = vpop.f32.mrb[36].mxu1 }
 0x642   :  { %v2164_v11 = vmul.f32 0.17677669, %v2065_v10  ;;  %v9338_v12 = vpop.f32.mrb[37].mxu1  ;;  %v2173_v13 = vsel %vm1142_vm3, %v2169_v6, -inf }
 0x643   :  { %v2068_v14 = vpop.f32.mrb[38].mxu1  ;;  %2174 = vmax.xlane.f32.xlu1 %v2173_v13  ;;  %v1455_v16 = vrot.slane %v1448_v8, %v10410_v18  ;;  %v1463_v19 = vrot.slane %v8920_v31, %v10410_v18  ;;  %v1471_v20 = vrot.slane %v1464_v33, %v10410_v18  ;;  %v1479_v23 = vrot.slane %v8921_v9, %v10410_v18 }
 0x644   :  { %v9339_v24 = vpop.f32.mrb[39].mxu1  ;;  %v2170_v37 = vsel %vm119_vm5, %v2164_v11, -1e+30 }
 0x645   :  { %v2176_v21 = vsel %vm1142_vm3, %v2170_v37, -inf  ;;  %v2111_v27 = vpop.f32.mrb[12].mxu0  ;;  %v1481_v28 = vcombine.high %v1455_v16, %v1463_v19  ;;  %v1497_v2 = vcombine.high %v1471_v20, %v1479_v23  ;;  %v1480_v4 = vcombine.low %v1455_v16, %v1463_v19 }
 0x646   :  { %2177 = vmax.xlane.f32.xlu0 %v2176_v21  ;;  %v2165_v30 = vmul.f32 0.17677669, %v2111_v27  ;;  %v9344_v17 = vpop.f32.mrb[13].mxu0  ;;  %v1496_v32 = vcombine.low %v1471_v20, %v1479_v23 }
 0x647   :  { %v2114_v26 = vpop.f32.mrb[14].mxu0  ;;  %v10646_v34 = vrot.slane %v1481_v28, %v10413_v25  ;;  %v10649_v35 = vrot.slane %v1497_v2, %v10413_v25  ;;  %v10652_v36 = vrot.slane %v1480_v4, %v10413_v25 }
 0x648   :  { %v9345_v39 = vpop.f32.mrb[15].mxu0  ;;  %v2171_v40 = vsel %vm119_vm5, %v2165_v30, -1e+30  ;;  %v10657_v61 = vrot.slane %v1496_v32, %v10413_v25 }
 0x649   :  { %v2157_v41 = vpop.f32.mrb[40].mxu1  ;;  %v2179_v42 = vsel %vm1142_vm3, %v2171_v40, -inf  ;;  %v1514_v43 = vcombine.low %v10646_v34, %v10649_v35  ;;  %v1515_v44 = vcombine.high %v10646_v34, %v10649_v35 }
 0x64a   :  { %v2166_v38 = vmul.f32 0.17677669, %v2157_v41  ;;  %v9350_v45 = vpop.f32.mrb[41].mxu1  ;;  %2180 = vmax.xlane.f32.xlu0 %v2179_v42  ;;  %v1512_v46 = vcombine.low %v10652_v36, %v10657_v61  ;;  %v1513_v47 = vcombine.high %v10652_v36, %v10657_v61  ;;  %v9653_v36 = vld [vmem:[#allocation5 + $0x140] sm:$0xff]   ;;  %v8938_v61 = vld [vmem:[#allocation2 + $0x5] ss:$0 sm:$0xff] }
 0x64b   :  { %v2160_v49 = vpop.f32.mrb[42].mxu1 }
 0x64c   :  { %v9351_v50 = vpop.f32.mrb[43].mxu1  ;;  %v2172_v22 = vsel %vm119_vm5, %v2166_v38, -1e+30 }
 0x64d   :  { %v2182_v29 = vsel %vm1142_vm3, %v2172_v22, -inf }
 0x64e   :  { %2183 = vmax.xlane.f32.xlu0 %v2182_v29 }
 0x6d0   :  { %v2175_v51 = vpop.xlane.xlu1 %2174 }
 0x6d1   :  { %v2185_v52 = vsub.f32 %v2169_v6, %v2175_v51 }
 0x6d3   :  { %v2189_v53 = vmul.f32 1.442695, %v2185_v52  ;;  %v2178_v62 = vpop.xlane.xlu0 %2177 }
 0x6d4   :  { %v2186_v54 = vsub.f32 %v2170_v37, %v2178_v62 }
 0x6d5   :  { %9745 = vpow2.f32 %v2189_v53 }
 0x6d6   :  { %v2191_v55 = vmul.f32 1.442695, %v2186_v54 }
 0x6d7   :  { %v2181_v59 = vpop.xlane.xlu0 %2180 }
 0x6d8   :  { %9747 = vpow2.f32 %v2191_v55  ;;  %v2187_v0 = vsub.f32 %v2171_v40, %v2181_v59 }
 0x6da   :  { %v2193_v3 = vmul.f32 1.442695, %v2187_v0 }
 0x6db   :  { %v2184_v60 = vpop.xlane.xlu0 %2183 }
 0x6dc   :  { %v2188_v63 = vsub.f32 %v2172_v22, %v2184_v60 }
 0x6de   :  { %v2195_v1 = vmul.f32 1.442695, %v2188_v63 }
 0x6df   :  { %v10671_v56 = vpop.eup %9745 }
 0x6e0   :  { %v2197_v57 = vsel %vm1142_vm3, %v10671_v56, 0.0  ;;  %9749 = vpow2.f32 %v2195_v1 }
 0x6e1   :  { %2198 = vadd.xlane.f32.xlu1 %v2197_v57  ;;  %9751 = vpow2.f32 %v2193_v3 }
 0x6e2   :  { %v10675_v58 = vpop.eup %9747 }
 0x6e3   :  { %v2200_v48 = vsel %vm1142_vm3, %v10675_v58, 0.0 }
 0x6e4   :  { %2201 = vadd.xlane.f32.xlu0 %v2200_v48 }
 0x6ea   :  { %v10685_v6 = vpop.eup %9749 }
 0x6eb   :  { %v10687_v8 = vpop.eup %9751  ;;  %v2206_v31 = vsel %vm1142_vm3, %v10685_v6, 0.0 }
 0x6ec   :  { %v2203_v33 = vsel %vm1142_vm3, %v10687_v8, 0.0 }
 0x6f2   :  { %1826 = vrot.lane.b32.xlu1 %v10405_v7, %s10203_s7 }
 0x6f6   :  { %1832 = vrot.lane.b32.xlu1 %v10405_v7, %s10204_s23 }
 0x6fa   :  { %1829 = vrot.lane.b32.xlu0 %v10405_v7, %s10192_s19 }
 0x719   :  { %2207 = vadd.xlane.f32.xlu0 %v2206_v31 }
 0x71a   :  { %2204 = vadd.xlane.f32.xlu1 %v2203_v33 }
 0x76e   :  { %v2199_v9 = vpop.xlane.xlu1 %2198 }
 0x76f   :  { %9753 = vrcp.f32 %v2199_v9 }
 0x771   :  { %v2202_v10 = vpop.xlane.xlu0 %2201 }
 0x772   :  { %v1827_v11 = vpop.permute.xlu1 %1826  ;;  %9755 = vrcp.f32 %v2202_v10 }
 0x775   :  { %v1830_v12 = vpop.permute.xlu0 %1829 }
 0x776   :  { %v1835_v13 = vcombine.low %v10405_v7, %v1830_v12  ;;  %v1836_v14 = vcombine.high %v10405_v7, %v1830_v12  ;;  %v1833_v16 = vpop.permute.xlu1 %1832 }
 0x777   :  { %v1851_v19 = vcombine.low %v1827_v11, %v1833_v16  ;;  %v1852_v20 = vcombine.high %v1827_v11, %v1833_v16 }
 0x778   :  { %v1843_v23 = vrot.slane %v1835_v13, %v10410_v18  ;;  %v1850_v24 = vrot.slane %v1836_v14, %v10410_v18 }
 0x779   :  { %v1859_v37 = vrot.slane %v1851_v19, %v10410_v18  ;;  %v1866_v21 = vrot.slane %v1852_v20, %v10410_v18  ;;  %v9754_v62 = vpop.eup %9753 }
 0x77a   :  { %v2210_v0 = vmul.f32 %v9754_v62, %v10671_v56 }
 0x77b   :  { %v1867_v27 = vcombine.low %v1843_v23, %v1859_v37  ;;  %v1868_v28 = vcombine.high %v1843_v23, %v1859_v37  ;;  %v1883_v2 = vcombine.low %v1850_v24, %v1866_v21  ;;  %v1884_v4 = vcombine.high %v1850_v24, %v1866_v21 }
 0x77c   :  { %v9756_v57 = vpop.eup %9755  ;;  %v2217_v12 = vpack.c.bf16 %v2210_v0, %v2210_v0 }
 0x77d   :  { %v1875_v30 = vrot.slane %v1867_v27, %v10413_v25  ;;  %v1882_v7 = vrot.slane %v1868_v28, %v10413_v25  ;;  %v1891_v17 = vrot.slane %v1883_v2, %v10413_v25  ;;  %v1898_v32 = vrot.slane %v1884_v4, %v10413_v25  ;;  %v9645_v27 = vld [vmem:[#allocation5 + $0xc0] sm:$0xff]   ;;  %v9646_v28 = vld [vmem:[#allocation5 + $0xc8] sm:$0xff]  }
 0x77e   :  { %v2212_v1 = vmul.f32 %v9756_v57, %v10675_v58  ;;  %v9649_v2 = vld [vmem:[#allocation5 + $0xe0] sm:$0xff]   ;;  %v9650_v4 = vld [vmem:[#allocation5 + $0xe8] sm:$0xff]  }
 0x77f   :  { %v1903_v26 = vcombine.low %v1875_v30, %v1882_v7  ;;  %v8926_v39 = vcombine.high %v1875_v30, %v1882_v7  ;;  %v1919_v40 = vcombine.low %v1891_v17, %v1898_v32  ;;  %v8927_v41 = vcombine.high %v1891_v17, %v1898_v32 }
 0x780   :  { %v2218_v13 = vpack.c.bf16 %v2212_v1, %v2212_v1 }
 0x781   :  { %v1910_v42 = vrot.slane %v1903_v26, %v10410_v18  ;;  %v1918_v38 = vrot.slane %v8926_v39, %v10410_v18  ;;  %v1926_v45 = vrot.slane %v1919_v40, %v10410_v18  ;;  %v1934_v49 = vrot.slane %v8927_v41, %v10410_v18 }
 0x783   :  { %v1935_v50 = vcombine.low %v1910_v42, %v1918_v38  ;;  %v1936_v22 = vcombine.high %v1910_v42, %v1918_v38  ;;  %v1951_v29 = vcombine.low %v1926_v45, %v1934_v49  ;;  %v1952_v51 = vcombine.high %v1926_v45, %v1934_v49 }
 0x785   :  { %v1943_v52 = vrot.slane %v1935_v50, %v10413_v25  ;;  %v1950_v53 = vrot.slane %v1936_v22, %v10413_v25  ;;  %v1959_v54 = vrot.slane %v1951_v29, %v10413_v25  ;;  %v1966_v55 = vrot.slane %v1952_v51, %v10413_v25 }
 0x787   :  { %v1967_v48 = vcombine.low %v1943_v52, %v1959_v54  ;;  %v1968_v59 = vcombine.high %v1943_v52, %v1959_v54  ;;  %v1969_v60 = vcombine.low %v1950_v53, %v1966_v55  ;;  %v1970_v63 = vcombine.high %v1950_v53, %v1966_v55 }
 0x789   :  { %v2221_v3 = vpack.c.bf16 %v1967_v48, %v1967_v48  ;;  %v2222_v31 = vpack.c.bf16 %v1968_v59, %v1968_v59  ;;  %v2223_v10 = vpack.c.bf16 %v1969_v60, %v1969_v60  ;;  %v2224_v11 = vpack.c.bf16 %v1970_v63, %v1970_v63 }
 0x78b   :  { %v2229_v33 = vsel %vm1198_vm4, %v2221_v3, 0  ;;  %v2275_v9 = vsel %vm1198_vm4, %v2222_v31, 0  ;;  %v2321_v56 = vsel %vm1198_vm4, %v2223_v10, 0  ;;  %v2367_v58 = vsel %vm1198_vm4, %v2224_v11, 0 }
 0x78c   :  { %9353 = vmatpush3.bf16.msra.mxu0 %v2229_v33  ;;  %9359 = vmatpush3.bf16.msra.mxu1 %v2275_v9 }
 0x78d   :  { %9364 = vmatprep.subr.bf16.mxu0 %v12709_v5  ;;  %9370 = vmatprep.subr.bf16.mxu1 %v12709_v5 }
 0x78f   :  { %9355 = vmatmul.mubr.msk.bf16.vlgmr.msra.gmra.mrb[16].mxu0 %vm1142_vm3, %v2217_v12  ;;  %9361 = vmatmul.mubr.msk.bf16.vlgmr.msra.gmra.mrb[44].mxu1 %vm1142_vm3, %v2218_v13 }
 0x790   :  { %9365 = vmatpush3.bf16.msra.mxu0 %v2321_v56  ;;  %9371 = vmatpush3.bf16.msra.mxu1 %v2367_v58  ;;  %v9651_v56 = vld [vmem:[#allocation5 + $0xf0] sm:$0xff]  }
 0x791   :  { %9372 = vmatprep.mubr.msk.bf16.mxu1 %vm10202_vm0, %v12709_v5  ;;  %9366 = vmatprep.mubr.msk.bf16.mxu0 %vm10202_vm0, %v12709_v5 }
 0x792   :  { %9376 = vmatprep.subr.bf16.mxu0 %v12709_v5  ;;  %9396 = vmatprep.subr.bf16.mxu1 %v12709_v5 }
 0x7a6   :  { %v2208_v14 = vpop.xlane.xlu0 %2207 }
 0x7a7   :  { %9757 = vrcp.f32 %v2208_v14  ;;  %v2205_v16 = vpop.xlane.xlu1 %2204 }
 0x7a8   :  { %9759 = vrcp.f32 %v2205_v16 }
 0x7b1   :  { %v9758_v19 = vpop.eup %9757 }
 0x7b2   :  { %v9760_v20 = vpop.eup %9759  ;;  %v2216_v23 = vmul.f32 %v9758_v19, %v10685_v6  ;;  %v9647_v6 = vld [vmem:[#allocation5 + $0xd0] sm:$0xff]  }
 0x7b3   :  { %v2214_v24 = vmul.f32 %v9760_v20, %v10687_v8  ;;  %v9648_v8 = vld [vmem:[#allocation5 + $0xd8] sm:$0xff]  }
 0x7b4   :  { %v2220_v37 = vpack.c.bf16 %v2216_v23, %v2216_v23 }
 0x7b5   :  { %v2219_v21 = vpack.c.bf16 %v2214_v24, %v2214_v24 }
 0x7b6   :  { %9373 = vmatmul.mubr.msk.bf16.vlgmr.msra.gmra.mrb[48].mxu1 %vm1142_vm3, %v2220_v37 }
 0x7b7   :  { %9367 = vmatmul.mubr.msk.bf16.vlgmr.msra.gmra.mrb[20].mxu0 %vm1142_vm3, %v2219_v21  ;;  %9412 = vmatprep.mubr.msk.bf16.mxu1 %vm10202_vm0, %v12709_v5  ;;  %v9652_v21 = vld [vmem:[#allocation5 + $0xf8] sm:$0xff]  }
 0x7b8   :  { %9392 = vmatprep.mubr.msk.bf16.mxu0 %vm10202_vm0, %v12709_v5  ;;  %9377 = vmatpush3.bf16.msra.mxu0 %v9645_v27 }
 0x7b9   :  { %9378 = vmatprep.subr.bf16.mxu0 %v12709_v5 }
 0x7bc   :  { %9379 = vmatpush3.bf16.msra.mxu0 %v9646_v28 }
 0x7bd   :  { %9380 = vmatprep.subr.bf16.mxu0 %v12709_v5 }
 0x7c0   :  { %9381 = vmatpush3.bf16.msra.mxu0 %v9647_v6 }
 0x7c1   :  { %9382 = vmatprep.subr.bf16.mxu0 %v12709_v5 }
 0x7c4   :  { %9383 = vmatpush3.bf16.msra.mxu0 %v9648_v8 }
 0x7c5   :  { %9384 = vmatprep.subr.bf16.mxu0 %v12709_v5 }
 0x7c8   :  { %9385 = vmatpush3.bf16.msra.mxu0 %v9649_v2 }
 0x7c9   :  { %9386 = vmatprep.subr.bf16.mxu0 %v12709_v5 }
 0x7cc   :  { %9387 = vmatpush3.bf16.msra.mxu0 %v9650_v4 }
 0x7cd   :  { %9388 = vmatprep.subr.bf16.mxu0 %v12709_v5 }
 0x7d0   :  { %9389 = vmatpush3.bf16.msra.mxu0 %v9651_v56  ;;  %v128_v56 = vld [vmem:[#allocation11 + $0x10] sm:$0xff] }
 0x7d1   :  { %9390 = vmatprep.subr.bf16.mxu0 %v12709_v5 }
 0x7d4   :  { %9391 = vmatpush3.bf16.msra.mxu0 %v9652_v21 }
 0x7d5   :  { %9416 = vmatprep.subr.bf16.mxu0 %v9653_v36 }
 0x862   :  { %v2265_v30 = vpop.f32.mrb[16].mxu0  ;;  %v2311_v7 = vpop.f32.mrb[44].mxu1 }
 0x863   :  { %v9356_v17 = vpop.f32.mrb[17].mxu0  ;;  %v9362_v32 = vpop.f32.mrb[45].mxu1 }
 0x864   :  { %v2268_v26 = vpop.f32.mrb[18].mxu0  ;;  %v2314_v39 = vpop.f32.mrb[46].mxu1 }
 0x865   :  { %v9357_v40 = vpop.f32.mrb[19].mxu0  ;;  %v9363_v41 = vpop.f32.mrb[47].mxu1 }
 0x889   :  { %v2403_v42 = vpop.f32.mrb[48].mxu1 }
 0x88a   :  { %v2425_v38 = vcombine.low %v2311_v7, %v2403_v42  ;;  %v2426_v45 = vcombine.high %v2311_v7, %v2403_v42  ;;  %v2357_v49 = vpop.f32.mrb[20].mxu0  ;;  %v9374_v50 = vpop.f32.mrb[49].mxu1 }
 0x88b   :  { %v2409_v22 = vcombine.low %v2265_v30, %v2357_v49  ;;  %v2410_v29 = vcombine.high %v2265_v30, %v2357_v49  ;;  %v9368_v51 = vpop.f32.mrb[21].mxu0  ;;  %v2406_v52 = vpop.f32.mrb[50].mxu1 }
 0x88c   :  { %v2433_v53 = vrot.slane %v2425_v38, %v10410_v18  ;;  %v2440_v62 = vrot.slane %v2426_v45, %v10410_v18  ;;  %v2360_v54 = vpop.f32.mrb[22].mxu0  ;;  %v9375_v55 = vpop.f32.mrb[51].mxu1 }
 0x88d   :  { %v2417_v57 = vrot.slane %v2409_v22, %v10410_v18  ;;  %v2424_v48 = vrot.slane %v2410_v29, %v10410_v18  ;;  %v9369_v59 = vpop.f32.mrb[23].mxu0  ;;  %v10025_v54 = vld [vmem:[%s12704_s5] sm:$0xff] }
 0x88e   :  { %v10026_v59 = vld [vmem:[%s12704_s5 + $0x8] sm:$0xff] }
 0x88f   :  { %v2441_v60 = vcombine.low %v2417_v57, %v2433_v53  ;;  %v2442_v63 = vcombine.high %v2417_v57, %v2433_v53  ;;  %v2457_v0 = vcombine.low %v2424_v48, %v2440_v62  ;;  %v2458_v1 = vcombine.high %v2424_v48, %v2440_v62 }
 0x891   :  { %v2449_v3 = vrot.slane %v2441_v60, %v10413_v25  ;;  %v2456_v31 = vrot.slane %v2442_v63, %v10413_v25  ;;  %v2465_v33 = vrot.slane %v2457_v0, %v10413_v25  ;;  %v2472_v9 = vrot.slane %v2458_v1, %v10413_v25  ;;  %v9654_v63 = vld [vmem:[#allocation5 + $0x148] sm:$0xff]   ;;  %v9655_v0 = vld [vmem:[#allocation5 + $0x150] sm:$0xff]   ;;  %v9656_v1 = vld [vmem:[#allocation5 + $0x158] sm:$0xff]  }
 0x893   :  { %v2477_v10 = vcombine.low %v2449_v3, %v2456_v31  ;;  %v8936_v11 = vcombine.high %v2449_v3, %v2456_v31  ;;  %v2493_v12 = vcombine.low %v2465_v33, %v2472_v9  ;;  %v8937_v13 = vcombine.high %v2465_v33, %v2472_v9  ;;  %v9657_v3 = vld [vmem:[#allocation5 + $0x160] sm:$0xff]   ;;  %v126_v31 = vld [vmem:[#allocation11] sm:$0xff]  ;;  %v127_v33 = vld [vmem:[#allocation11 + $0x8] sm:$0xff] }
 0x894   :  { %v10791_v9 = vpack.c.bf16 %v127_v33, %v126_v31  ;;  %v9676_v31 = vld [vmem:[#allocation5 + $0x1b8] sm:$0xff]  }
 0x895   :  { %v2484_v58 = vrot.slane %v2477_v10, %v10410_v18  ;;  %v2492_v14 = vrot.slane %v8936_v11, %v10410_v18  ;;  %v2500_v16 = vrot.slane %v2493_v12, %v10410_v18  ;;  %v2508_v19 = vrot.slane %v8937_v13, %v10410_v18  ;;  %v9661_v10 = vld [vmem:[#allocation5 + $0x100] sm:$0xff]   ;;  %v9658_v11 = vld [vmem:[#allocation5 + $0x168] sm:$0xff]   ;;  %v9659_v12 = vld [vmem:[#allocation5 + $0x170] sm:$0xff]  }
 0x896   :  { %9397 = vmatpush3.bf16.msra.mxu1 %v9661_v10  ;;  %v9660_v13 = vld [vmem:[#allocation5 + $0x178] sm:$0xff]  }
 0x897   :  { %v2510_v20 = vcombine.high %v2484_v58, %v2492_v14  ;;  %v2526_v23 = vcombine.high %v2500_v16, %v2508_v19  ;;  %v2509_v24 = vcombine.low %v2484_v58, %v2492_v14  ;;  %v2525_v37 = vcombine.low %v2500_v16, %v2508_v19  ;;  %9398 = vmatprep.subr.bf16.mxu1 %v12709_v5  ;;  %v129_v58 = vld [vmem:[#allocation11 + $0x18] sm:$0xff] }
 0x898   :  { %v10795_v14 = vpack.c.bf16 %v129_v58, %v128_v56 }
 0x899   :  { %v2524_v27 = vrot.slane %v2510_v20, %v10413_v25  ;;  %v2540_v28 = vrot.slane %v2526_v23, %v10413_v25  ;;  %v2517_v6 = vrot.slane %v2509_v24, %v10413_v25  ;;  %v2533_v8 = vrot.slane %v2525_v37, %v10413_v25 }
 0x89b   :  { %v2543_v2 = vcombine.low %v2524_v27, %v2540_v28  ;;  %v2542_v4 = vcombine.high %v2517_v6, %v2533_v8  ;;  %v2541_v30 = vcombine.low %v2517_v6, %v2533_v8  ;;  %v2544_v7 = vcombine.high %v2524_v27, %v2540_v28  ;;  %v9662_v28 = vld [vmem:[#allocation5 + $0x108] sm:$0xff]   ;;  %v9663_v6 = vld [vmem:[#allocation5 + $0x110] sm:$0xff]   ;;  %v9664_v8 = vld [vmem:[#allocation5 + $0x118] sm:$0xff]  }
 0x89c   :  { %9399 = vmatpush3.bf16.msra.mxu1 %v9662_v28 }
 0x89d   :  { %v9596_v17 = vpack.i.bf16 %v2543_v2, %v1514_v43  ;;  %v9591_v32 = vpack.i.bf16 %v2542_v4, %v1513_v47  ;;  %v9601_v26 = vpack.i.bf16 %v2544_v7, %v1515_v44  ;;  %9400 = vmatprep.subr.bf16.mxu1 %v12709_v5  ;;  %v9665_v2 = vld [vmem:[#allocation5 + $0x120] sm:$0xff]   ;;  %v9666_v4 = vld [vmem:[#allocation5 + $0x128] sm:$0xff]   ;;  %v9668_v7 = vld [vmem:[#allocation5 + $0x138] sm:$0xff]  }
 0x89f   :  { %9597 = vrot.lane.b32.xlu1 %v9596_v17, %s10192_s19  ;;  %9592 = vrot.lane.b32.xlu0 %v9591_v32, %s10204_s23  ;;  %v9669_v17 = vld [vmem:[#allocation5 + $0x180] sm:$0xff]   ;;  %v8958_v32 = vld [vmem:[#allocation2 + $0x9] ss:$0 sm:$0xff] }
 0x8a0   :  { %9401 = vmatpush3.bf16.msra.mxu1 %v9663_v6 }
 0x8a1   :  { %9402 = vmatprep.subr.bf16.mxu1 %v12709_v5 }
 0x8a3   :  { %9602 = vrot.lane.b32.xlu1 %v9601_v26, %s10203_s7 }
 0x8a4   :  { %9403 = vmatpush3.bf16.msra.mxu1 %v9664_v8 }
 0x8a5   :  { %9404 = vmatprep.subr.bf16.mxu1 %v12709_v5 }
 0x8a8   :  { %9405 = vmatpush3.bf16.msra.mxu1 %v9665_v2 }
 0x8a9   :  { %9406 = vmatprep.subr.bf16.mxu1 %v12709_v5 }
 0x8ac   :  { %9407 = vmatpush3.bf16.msra.mxu1 %v9666_v4 }
 0x8ad   :  { %9408 = vmatprep.subr.bf16.mxu1 %v12709_v5 }
 0x911   :  { %v9598_v39 = vpop.permute.xlu1 %9597  ;;  %v9593_v40 = vpop.permute.xlu0 %9592 }
 0x912   :  { %v9595_v41 = vunpack.i.h.bf16 %v9593_v40  ;;  %v9594_v42 = vunpack.i.l.bf16 %v9593_v40  ;;  %v9600_v38 = vunpack.i.h.bf16 %v9598_v39  ;;  %v9599_v43 = vunpack.i.l.bf16 %v9598_v39 }
 0x914   :  { %v1528_v47 = vsel %vm947_vm1, %v1512_v46, %v9594_v42  ;;  %v2557_v34 = vsel %vm947_vm1, %v2541_v30, %v9595_v41  ;;  %v9667_v30 = vld [vmem:[#allocation5 + $0x130] sm:$0xff]  }
 0x915   :  { %v9603_v35 = vpop.permute.xlu1 %9602  ;;  %v1530_v49 = vsel %vm1529_vm6, %v1528_v47, %v9599_v43  ;;  %v2558_v50 = vsel %vm1529_vm6, %v2557_v34, %v9600_v38  ;;  %9409 = vmatpush3.bf16.msra.mxu1 %v9667_v30 }
 0x916   :  { %v9605_v44 = vunpack.i.h.bf16 %v9603_v35  ;;  %v9604_v45 = vunpack.i.l.bf16 %v9603_v35  ;;  %9410 = vmatprep.subr.bf16.mxu1 %v12709_v5 }
 0x918   :  { %v1532_v22 = vsel %vm1531_vm7, %v1530_v49, %v9604_v45  ;;  %v2559_v29 = vsel %vm1531_vm7, %v2558_v50, %v9605_v44 }
 0x919   :  { %v2560_v51 = vpack.c.bf16 %v2559_v29, %v1532_v22  ;;  %9411 = vmatpush3.bf16.msra.mxu1 %v9668_v7 }
 0x91a   :  { %9436 = vmatprep.subr.bf16.mxu1 %v9669_v17 }
 0x91b   :  { %9393 = vmatmul.mubr.bf16.vlgmr.msra.gmra.mrb[24].mxu0 %v2560_v51  ;;  %v8947_v51 = vld [vmem:[#allocation2 + $0x6] ss:$0 sm:$0xff] }
 0x91c   :  { %9417 = vmatpush3.bf16.msra.mxu0 %v9653_v36  ;;  %9432 = vmatprep.mubr.bf16.mxu0 %v10791_v9 }
 0x91d   :  { %9418 = vmatprep.subr.bf16.mxu0 %v9654_v63 }
 0x920   :  { %9419 = vmatpush3.bf16.msra.mxu0 %v9654_v63  ;;  %v9672_v63 = vld [vmem:[#allocation5 + $0x198] sm:$0xff]  }
 0x921   :  { %9420 = vmatprep.subr.bf16.mxu0 %v9655_v0 }
 0x924   :  { %9421 = vmatpush3.bf16.msra.mxu0 %v9655_v0  ;;  %v9673_v0 = vld [vmem:[#allocation5 + $0x1a0] sm:$0xff]  }
 0x925   :  { %9422 = vmatprep.subr.bf16.mxu0 %v9656_v1 }
 0x928   :  { %9423 = vmatpush3.bf16.msra.mxu0 %v9656_v1  ;;  %v9674_v1 = vld [vmem:[#allocation5 + $0x1a8] sm:$0xff]  }
 0x929   :  { %9424 = vmatprep.subr.bf16.mxu0 %v9657_v3 }
 0x92c   :  { %9425 = vmatpush3.bf16.msra.mxu0 %v9657_v3  ;;  %v9675_v3 = vld [vmem:[#allocation5 + $0x1b0] sm:$0xff]  }
 0x92d   :  { %9426 = vmatprep.subr.bf16.mxu0 %v9658_v11 }
 0x930   :  { %9427 = vmatpush3.bf16.msra.mxu0 %v9658_v11 }
 0x931   :  { %9428 = vmatprep.subr.bf16.mxu0 %v9659_v12 }
 0x934   :  { %9429 = vmatpush3.bf16.msra.mxu0 %v9659_v12 }
 0x935   :  { %9430 = vmatprep.subr.bf16.mxu0 %v9660_v13 }
 0x938   :  { %9431 = vmatpush3.bf16.msra.mxu0 %v9660_v13 }
 0x939   :  { %9456 = vmatprep.subr.bf16.mxu0 %v12709_v5 }
 0x93b   :  { %9433 = vmatmul.mubr.bf16.vlgmr.msra.gmra.mrb[28].mxu0 %v10795_v14 }
 0x93c   :  { %9458 = vmatprep.mubr.msk.bf16.mxu0 %vm10202_vm0, %v12709_v5 }
 0x9ee   :  { %v2664_v46 = vpop.f32.mrb[24].mxu0 }
 0x9ef   :  { %v2665_v52 = vadd.f32 %v8938_v61, %v2664_v46  ;;  %v9394_v53 = vpop.f32.mrb[25].mxu0 }
 0x9f0   :  { %v2667_v62 = vpop.f32.mrb[26].mxu0 }
 0x9f1   :  { %v10782_v55 = vadd.f32 %v10025_v54, %v2665_v52  ;;  %v2668_v57 = vadd.f32 %v8938_v61, %v2667_v62  ;;  %v9395_v48 = vpop.f32.mrb[27].mxu0  ;;  %v8948_v52 = vld [vmem:[#allocation2 + $0x7] ss:$0 sm:$0xff] }
 0x9f2   :  { %v9670_v48 = vld [vmem:[#allocation5 + $0x188] sm:$0xff]  }
 0x9f3   :  { %12756 = vst [vmem:[#allocation19_spill] sm:$0xff] %v10782_v55  ;;  %v10787_v60 = vadd.f32 %v10026_v59, %v2668_v57  ;;  %2675 = vadd.xlane.f32.xlu1 %v10782_v55  ;;  %v9671_v59 = vld [vmem:[#allocation5 + $0x190] sm:$0xff]  }
 0x9f5   :  { %12757 = vst [vmem:[#allocation20_spill] sm:$0xff] %v10787_v60  ;;  %2677 = vadd.xlane.f32.xlu0 %v10787_v60 }
 0xa0e   :  { %v9434_v26 = vpop.f32.mrb[28].mxu0 }
 0xa0f   :  { %v10809_v39 = vadd.f32 %v9434_v26, %v8958_v32  ;;  %v2929_v40 = vpop.f32.mrb[29].mxu0 }
 0xa10   :  { %v10811_v41 = vadd.f32 %v8958_v32, %v2929_v40  ;;  %v9435_v42 = vpop.f32.mrb[30].mxu0 }
 0xa11   :  { %12758 = vst [vmem:[#allocation21_spill] sm:$0xff] %v10809_v39  ;;  %v10813_v38 = vadd.f32 %v9435_v42, %v8958_v32  ;;  %v2932_v43 = vpop.f32.mrb[31].mxu0 }
 0xa12   :  { %3210 = vrot.lane.b32.xlu1 %v10811_v41, %s10203_s7  ;;  %v10817_v47 = vadd.f32 %v8958_v32, %v2932_v43 }
 0xa16   :  { %3216 = vrot.lane.b32.xlu1 %v10811_v41, %s10192_s19 }
 0xa1a   :  { %3218 = vrot.lane.b32.xlu1 %v10817_v47, %s10192_s19 }
 0xa1e   :  { %3222 = vrot.lane.b32.xlu1 %v10811_v41, %s10204_s23 }
 0xa80   :  { %v2676_v16 = vpop.xlane.xlu1 %2675 }
 0xa81   :  { %v2679_v19 = vmul.f32 0.0078125, %v2676_v16 }
 0xa82   :  { %v2678_v20 = vpop.xlane.xlu0 %2677 }
 0xa83   :  { %v2681_v23 = vsub.f32 %v10782_v55, %v2679_v19  ;;  %v2680_v24 = vmul.f32 0.0078125, %v2678_v20 }
 0xa84   :  { %v3211_v33 = vpop.permute.xlu1 %3210 }
 0xa85   :  { %v2682_v37 = vsub.f32 %v10787_v60, %v2680_v24  ;;  %v2683_v21 = vmul.f32 %v2681_v23, %v2681_v23 }
 0xa87   :  { %2685 = vadd.xlane.f32.xlu0 %v2683_v21  ;;  %v2684_v27 = vmul.f32 %v2682_v37, %v2682_v37 }
 0xa88   :  { %v3217_v10 = vpop.permute.xlu1 %3216 }
 0xa8b   :  { %2687 = vadd.xlane.f32.xlu0 %v2684_v27 }
 0xa8c   :  { %v3219_v56 = vpop.permute.xlu1 %3218 }
 0xa8d   :  { %v3296_v58 = vcombine.low %v10817_v47, %v3219_v56  ;;  %v3297_v16 = vcombine.high %v10817_v47, %v3219_v56 }
 0xa8f   :  { %v3304_v24 = vrot.slane %v3296_v58, %v10410_v18 }
 0xa90   :  { %v3223_v21 = vpop.permute.xlu1 %3222 }
 0xa91   :  { %v3244_v30 = vcombine.low %v3211_v33, %v3223_v21  ;;  %v3245_v7 = vcombine.high %v3211_v33, %v3223_v21 }
 0xa93   :  { %v3259_v42 = vrot.slane %v3245_v7, %v10410_v18 }
 0xaa1   :  { %3212 = vrot.lane.b32.xlu0 %v10817_v47, %s10203_s7 }
 0xaa5   :  { %3224 = vrot.lane.b32.xlu0 %v10817_v47, %s10204_s23 }
 0xb14   :  { %v2686_v34 = vpop.xlane.xlu0 %2685 }
 0xb15   :  { %v2689_v35 = vmul.f32 0.0078125, %v2686_v34 }
 0xb17   :  { %v2691_v44 = vadd.f32 1e-05, %v2689_v35 }
 0xb18   :  { %v2688_v45 = vpop.xlane.xlu0 %2687 }
 0xb19   :  { %9761 = vrsqrt.f32 %v2691_v44  ;;  %v2690_v49 = vmul.f32 0.0078125, %v2688_v45 }
 0xb1b   :  { %v2692_v50 = vadd.f32 1e-05, %v2690_v49 }
 0xb1d   :  { %9763 = vrsqrt.f32 %v2692_v50 }
 0xb23   :  { %v9762_v22 = vpop.eup %9761 }
 0xb24   :  { %v2695_v29 = vmul.f32 %v9762_v22, %v2681_v23  ;;  %v3229_v23 = vcombine.high %v10811_v41, %v3217_v10 }
 0xb26   :  { %v2701_v46 = vmul.f32 %v8947_v51, %v2695_v29  ;;  %v3243_v4 = vrot.slane %v3229_v23, %v10410_v18 }
 0xb27   :  { %v9764_v36 = vpop.eup %9763 }
 0xb28   :  { %v2696_v61 = vmul.f32 %v9764_v36, %v2682_v37  ;;  %v2707_v62 = vadd.f32 %v8948_v52, %v2701_v46  ;;  %v3311_v37 = vrot.slane %v3297_v16, %v10410_v18  ;;  %v3276_v49 = vcombine.low %v3243_v4, %v3259_v42 }
 0xb29   :  { %v3277_v50 = vcombine.high %v3243_v4, %v3259_v42 }
 0xb2a   :  { %v2702_v53 = vmul.f32 %v8947_v51, %v2696_v61  ;;  %v3284_v51 = vrot.slane %v3276_v49, %v10413_v25  ;;  %v10883_v49 = vld [vmem:[#allocation2 + $0xa] ss:$0 sm:$0xff] }
 0xb2b   :  { %v3291_v36 = vrot.slane %v3277_v50, %v10413_v25 }
 0xb2c   :  { %v2708_v54 = vadd.f32 %v8948_v52, %v2702_v53 }
 0xb2e   :  { %v2713_v57 = vpack.c.bf16 %v2708_v54, %v2707_v62 }
 0xb30   :  { %9413 = vmatmul.mubr.bf16.vlgmr.msra.gmra.mrb[52].mxu1 %v2713_v57  ;;  %v3380_v57 = vcombine.low %v3284_v51, %v3291_v36 }
 0xb31   :  { %9437 = vmatpush3.bf16.msra.mxu1 %v9669_v17  ;;  %9452 = vmatprep.mubr.bf16.mxu1 %v10791_v9  ;;  %v3213_v9 = vpop.permute.xlu0 %3212 }
 0xb32   :  { %9438 = vmatprep.subr.bf16.mxu1 %v9670_v48 }
 0xb35   :  { %9439 = vmatpush3.bf16.msra.mxu1 %v9670_v48  ;;  %v3225_v11 = vpop.permute.xlu0 %3224  ;;  %v8979_v48 = vcombine.high %v3284_v51, %v3291_v36 }
 0xb36   :  { %9440 = vmatprep.subr.bf16.mxu1 %v9671_v59  ;;  %v3312_v12 = vcombine.low %v3213_v9, %v3225_v11  ;;  %v3313_v13 = vcombine.high %v3213_v9, %v3225_v11 }
 0xb38   :  { %v3320_v19 = vrot.slane %v3312_v12, %v10410_v18  ;;  %v3327_v20 = vrot.slane %v3313_v13, %v10410_v18 }
 0xb39   :  { %9441 = vmatpush3.bf16.msra.mxu1 %v9671_v59 }
 0xb3a   :  { %9442 = vmatprep.subr.bf16.mxu1 %v9672_v63  ;;  %v3328_v27 = vcombine.low %v3304_v24, %v3320_v19  ;;  %v3329_v28 = vcombine.high %v3304_v24, %v3320_v19  ;;  %v3344_v6 = vcombine.low %v3311_v37, %v3327_v20  ;;  %v3345_v8 = vcombine.high %v3311_v37, %v3327_v20 }
 0xb3c   :  { %v3336_v17 = vrot.slane %v3328_v27, %v10413_v25  ;;  %v3343_v32 = vrot.slane %v3329_v28, %v10413_v25  ;;  %v3352_v26 = vrot.slane %v3344_v6, %v10413_v25  ;;  %v3359_v40 = vrot.slane %v3345_v8, %v10413_v25 }
 0xb3d   :  { %9443 = vmatpush3.bf16.msra.mxu1 %v9672_v63 }
 0xb3e   :  { %9444 = vmatprep.subr.bf16.mxu1 %v9673_v0  ;;  %v3432_v43 = vcombine.low %v3336_v17, %v3343_v32  ;;  %v8980_v47 = vcombine.high %v3336_v17, %v3343_v32  ;;  %v3448_v34 = vcombine.low %v3352_v26, %v3359_v40  ;;  %v8981_v35 = vcombine.high %v3352_v26, %v3359_v40 }
 0xb40   :  { %v3439_v61 = vrot.slane %v3432_v43, %v10410_v18  ;;  %v3447_v46 = vrot.slane %v8980_v47, %v10410_v18  ;;  %v3455_v52 = vrot.slane %v3448_v34, %v10410_v18  ;;  %v3463_v53 = vrot.slane %v8981_v35, %v10410_v18 }
 0xb41   :  { %9445 = vmatpush3.bf16.msra.mxu1 %v9673_v0  ;;  %v3387_v0 = vrot.slane %v3380_v57, %v10410_v18 }
 0xb42   :  { %9446 = vmatprep.subr.bf16.mxu1 %v9674_v1  ;;  %v3465_v33 = vcombine.high %v3439_v61, %v3447_v46  ;;  %v3481_v9 = vcombine.high %v3455_v52, %v3463_v53 }
 0xb44   :  { %v3479_v16 = vrot.slane %v3465_v33, %v10413_v25  ;;  %v3495_v19 = vrot.slane %v3481_v9, %v10413_v25 }
 0xb45   :  { %9447 = vmatpush3.bf16.msra.mxu1 %v9674_v1  ;;  %v3395_v1 = vrot.slane %v8979_v48, %v10410_v18 }
 0xb46   :  { %9448 = vmatprep.subr.bf16.mxu1 %v9675_v3  ;;  %v3498_v27 = vcombine.low %v3479_v16, %v3495_v19  ;;  %v3499_v28 = vcombine.high %v3479_v16, %v3495_v19 }
 0xb47   :  { %v3412_v11 = vcombine.low %v3387_v0, %v3395_v1  ;;  %v3413_v13 = vcombine.high %v3387_v0, %v3395_v1 }
 0xb49   :  { %9449 = vmatpush3.bf16.msra.mxu1 %v9675_v3  ;;  %v3464_v3 = vcombine.low %v3439_v61, %v3447_v46  ;;  %v3427_v24 = vrot.slane %v3413_v13, %v10413_v25 }
 0xb4a   :  { %9450 = vmatprep.subr.bf16.mxu1 %v9676_v31 }
 0xb4b   :  { %v3472_v56 = vrot.slane %v3464_v3, %v10413_v25 }
 0xb4d   :  { %9451 = vmatpush3.bf16.msra.mxu1 %v9676_v31  ;;  %v3480_v31 = vcombine.low %v3455_v52, %v3463_v53 }
 0xb4e   :  { %9462 = vmatprep.subr.bf16.mxu1 %v12709_v5 }
 0xb4f   :  { %v3488_v58 = vrot.slane %v3480_v31, %v10413_v25 }
 0xb50   :  { %9453 = vmatmul.mubr.bf16.vlgmr.msra.gmra.mrb[56].mxu1 %v10795_v14  ;;  %v3228_v14 = vcombine.low %v10811_v41, %v3217_v10  ;;  %v3252_v41 = vrot.slane %v3244_v30, %v10410_v18 }
 0xb51   :  { %9464 = vmatprep.mubr.msk.bf16.mxu1 %vm10202_vm0, %v12709_v5  ;;  %v3496_v37 = vcombine.low %v3472_v56, %v3488_v58  ;;  %v3497_v21 = vcombine.high %v3472_v56, %v3488_v58 }
 0xb52   :  { %v3236_v2 = vrot.slane %v3228_v14, %v10410_v18  ;;  %v3420_v14 = vrot.slane %v3412_v11, %v10413_v25 }
 0xb54   :  { %v3260_v44 = vcombine.low %v3236_v2, %v3252_v41  ;;  %v3261_v45 = vcombine.high %v3236_v2, %v3252_v41  ;;  %v8949_v41 = vld [vmem:[#allocation2 + $0x8] ss:$0 sm:$0xff] }
 0xb56   :  { %v3268_v22 = vrot.slane %v3260_v44, %v10413_v25  ;;  %v3275_v29 = vrot.slane %v3261_v45, %v10413_v25 }
 0xb58   :  { %v3364_v62 = vcombine.low %v3268_v22, %v3275_v29  ;;  %v8978_v54 = vcombine.high %v3268_v22, %v3275_v29 }
 0xb5a   :  { %v3371_v59 = vrot.slane %v3364_v62, %v10410_v18  ;;  %v3379_v63 = vrot.slane %v8978_v54, %v10410_v18 }
 0xb5c   :  { %v3396_v10 = vcombine.low %v3371_v59, %v3379_v63  ;;  %v3397_v12 = vcombine.high %v3371_v59, %v3379_v63 }
 0xb5e   :  { %v3404_v20 = vrot.slane %v3396_v10, %v10413_v25  ;;  %v3411_v23 = vrot.slane %v3397_v12, %v10413_v25 }
 0xb60   :  { %v3428_v6 = vcombine.low %v3404_v20, %v3420_v14  ;;  %v3429_v8 = vcombine.high %v3404_v20, %v3420_v14  ;;  %v3430_v2 = vcombine.low %v3411_v23, %v3427_v24  ;;  %v3431_v4 = vcombine.high %v3411_v23, %v3427_v24 }
 0xb62   :  { %v3796_v30 = vpack.c.bf16 %v3496_v37, %v3428_v6  ;;  %v3797_v7 = vpack.c.bf16 %v3497_v21, %v3429_v8  ;;  %v10870_v17 = vpack.c.bf16 %v3498_v27, %v3430_v2  ;;  %v10872_v32 = vpack.c.bf16 %v3499_v28, %v3431_v4 }
 0xb64   :  { %v3804_v26 = vsel %vm947_vm1, %v3796_v30, 0  ;;  %v3850_v40 = vsel %vm947_vm1, %v3797_v7, 0 }
 0xb65   :  { %9457 = vmatpush3.bf16.xpose.msra.mxu0 %v3804_v26  ;;  %9463 = vmatpush3.bf16.xpose.msra.mxu1 %v3850_v40  ;;  %v3896_v40 = vsel %vm947_vm1, %v10870_v17, 0  ;;  %v10207_v17 = vmov 1966171168  }
 0xb66   :  { %9468 = vmatprep.subr.bf16.mxu0 %v12709_v5  ;;  %9474 = vmatprep.subr.bf16.mxu1 %v12709_v5 }
 0xc03   :  { %v2819_v42 = vpop.f32.mrb[52].mxu1 }
 0xc04   :  { %v2820_v43 = vadd.f32 %v8949_v41, %v2819_v42  ;;  %v9414_v47 = vpop.f32.mrb[53].mxu1 }
 0xc05   :  { %v2822_v34 = vpop.f32.mrb[54].mxu1 }
 0xc06   :  { %v10878_v35 = vadd.f32 %v8949_v41, %v2822_v34  ;;  %v9415_v44 = vpop.f32.mrb[55].mxu1  ;;  %3066 = vrot.lane.b32.xlu0 %v2820_v43, %s10192_s19  ;;  %3063 = vrot.lane.b32.xlu1 %v2820_v43, %s10203_s7  ;;  %v3942_v41 = vsel %vm947_vm1, %v10872_v32, 0  ;;  %v3996_v32 = vunpack.c.l.s4 %v10207_v17 }
 0xc08   :  { %12759 = vst [vmem:[#allocation22_spill] sm:$0xff] %v10878_v35  ;;  %v3997_v44 = vunpack.c.0.s8 %v3996_v32 }
 0xc0a   :  { %3069 = vrot.lane.b32.xlu1 %v2820_v43, %s10204_s23 }
 0xc23   :  { %v9454_v45 = vpop.f32.mrb[56].mxu1 }
 0xc24   :  { %v10886_v50 = vadd.f32 %v9454_v45, %v10883_v49  ;;  %v10888_v22 = vpop.f32.mrb[57].mxu1  ;;  %v10930_v45 = vsub.s32 %v3997_v44, %v10407_v15 }
 0xc25   :  { %v9455_v29 = vpop.f32.mrb[58].mxu1 }
 0xc26   :  { %12760 = vst [vmem:[#allocation23_spill] sm:$0xff] %v10886_v50  ;;  %v10891_v51 = vadd.f32 %v9455_v29, %v10883_v49  ;;  %v10893_v36 = vpop.f32.mrb[59].mxu1  ;;  %12762 = vst [vmem:[#allocation25_spill] sm:$0xff] %v10930_v45 }
 0xc28   :  { %12761 = vst [vmem:[#allocation24_spill] sm:$0xff] %v10891_v51 }
 0xc78   :  { %v3067_v61 = vpop.permute.xlu0 %3066  ;;  %v3064_v46 = vpop.permute.xlu1 %3063 }
 0xc79   :  { %v3072_v52 = vcombine.low %v2820_v43, %v3067_v61  ;;  %v3073_v53 = vcombine.high %v2820_v43, %v3067_v61 }
 0xc7b   :  { %v3080_v48 = vrot.slane %v3072_v52, %v10410_v18  ;;  %v3087_v59 = vrot.slane %v3073_v53, %v10410_v18 }
 0xc7c   :  { %v3070_v62 = vpop.permute.xlu1 %3069 }
 0xc7d   :  { %v3088_v54 = vcombine.low %v3064_v46, %v3070_v62  ;;  %v3089_v57 = vcombine.high %v3064_v46, %v3070_v62 }
 0xc7f   :  { %v3096_v63 = vrot.slane %v3088_v54, %v10410_v18  ;;  %v3103_v0 = vrot.slane %v3089_v57, %v10410_v18 }
 0xc81   :  { %v3104_v1 = vcombine.low %v3080_v48, %v3096_v63  ;;  %v3105_v3 = vcombine.high %v3080_v48, %v3096_v63  ;;  %v3120_v31 = vcombine.low %v3087_v59, %v3103_v0  ;;  %v3121_v33 = vcombine.high %v3087_v59, %v3103_v0 }
 0xc83   :  { %v3112_v9 = vrot.slane %v3104_v1, %v10413_v25  ;;  %v3119_v10 = vrot.slane %v3105_v3, %v10413_v25  ;;  %v3128_v11 = vrot.slane %v3120_v31, %v10413_v25  ;;  %v3135_v12 = vrot.slane %v3121_v33, %v10413_v25  ;;  %v10937_v31 = vld [vmem:[%s12707_s8] sm:$0x1] }
 0xc84   :  { %vm122_vm8 = vcmp.gt.f32.partialorder %v10937_v31, 0.0  ;;  %v11134_v31 = vadd.f32 %v10883_v49, %v10888_v22 }
 0xc85   :  { %v3140_v13 = vcombine.low %v3112_v9, %v3119_v10  ;;  %v8976_v56 = vcombine.high %v3112_v9, %v3119_v10  ;;  %v3156_v58 = vcombine.low %v3128_v11, %v3135_v12  ;;  %v8977_v16 = vcombine.high %v3128_v11, %v3135_v12 }
 0xc87   :  { %v3147_v19 = vrot.slane %v3140_v13, %v10410_v18  ;;  %v3155_v20 = vrot.slane %v8976_v56, %v10410_v18  ;;  %v3163_v14 = vrot.slane %v3156_v58, %v10410_v18  ;;  %v3171_v23 = vrot.slane %v8977_v16, %v10410_v18 }
 0xc89   :  { %v3172_v24 = vcombine.low %v3147_v19, %v3155_v20  ;;  %v3188_v37 = vcombine.low %v3163_v14, %v3171_v23  ;;  %v3173_v21 = vcombine.high %v3147_v19, %v3155_v20  ;;  %v3189_v27 = vcombine.high %v3163_v14, %v3171_v23 }
 0xc8b   :  { %v3180_v28 = vrot.slane %v3172_v24, %v10413_v25  ;;  %v3196_v6 = vrot.slane %v3188_v37, %v10413_v25  ;;  %v3187_v7 = vrot.slane %v3173_v21, %v10413_v25  ;;  %v3203_v26 = vrot.slane %v3189_v27, %v10413_v25 }
 0xc8d   :  { %v3204_v8 = vcombine.low %v3180_v28, %v3196_v6  ;;  %v3205_v2 = vcombine.high %v3180_v28, %v3196_v6  ;;  %v3206_v42 = vcombine.low %v3187_v7, %v3203_v26  ;;  %v3207_v43 = vcombine.high %v3187_v7, %v3203_v26 }
 0xc8f   :  { %v3792_v4 = vpack.c.bf16 %v3204_v8, %v3204_v8  ;;  %v3793_v30 = vpack.c.bf16 %v3205_v2, %v3205_v2  ;;  %v3794_v47 = vpack.c.bf16 %v3206_v42, %v3206_v42  ;;  %v3795_v34 = vpack.c.bf16 %v3207_v43, %v3207_v43 }
 0xc91   :  { %9459 = vmatmul.mubr.msk.bf16.vlgmr.msra.gmra.mrb[32].mxu0 %vm947_vm1, %v3792_v4  ;;  %9465 = vmatmul.mubr.msk.bf16.vlgmr.msra.gmra.mrb[60].mxu1 %vm947_vm1, %v3793_v30 }
 0xc92   :  { %9469 = vmatpush3.bf16.xpose.msra.mxu0 %v3896_v40  ;;  %9475 = vmatpush3.bf16.xpose.msra.mxu1 %v3942_v41 }
 0xc93   :  { %9470 = vmatprep.mubr.msk.bf16.mxu0 %vm10202_vm0, %v12709_v5  ;;  %9476 = vmatprep.mubr.msk.bf16.mxu1 %vm10202_vm0, %v12709_v5 }
 0xc94   :  { %9480 = vmatprep.subr.bf16.mxu0 %v12709_v5  ;;  %9486 = vmatprep.subr.bf16.mxu1 %v12709_v5 }
 0xc99   :  { %9471 = vmatmul.mubr.msk.bf16.vlgmr.msra.gmra.mrb[36].mxu0 %vm947_vm1, %v3794_v47  ;;  %9477 = vmatmul.mubr.msk.bf16.vlgmr.msra.gmra.mrb[64].mxu1 %vm947_vm1, %v3795_v34 }
 0xc9a   :  { %9482 = vmatprep.mubr.msk.bf16.mxu0 %vm10202_vm0, %v12709_v5  ;;  %9488 = vmatprep.mubr.msk.bf16.mxu1 %vm10202_vm0, %v12709_v5 }
 0xd64   :  { %v3840_v29 = vpop.f32.mrb[32].mxu0  ;;  %v3886_v61 = vpop.f32.mrb[60].mxu1 }
 0xd65   :  { %v3984_v46 = vmul.f32 0.17677669, %v3840_v29  ;;  %v3985_v52 = vmul.f32 0.17677669, %v3886_v61  ;;  %v9460_v53 = vpop.f32.mrb[33].mxu0  ;;  %v9466_v62 = vpop.f32.mrb[61].mxu1 }
 0xd66   :  { %v3843_v54 = vpop.f32.mrb[34].mxu0  ;;  %v3889_v57 = vpop.f32.mrb[62].mxu1 }
 0xd67   :  { %v3994_v48 = vcombine.high %v3984_v46, %v3984_v46  ;;  %v4001_v59 = vrot.slane %v3984_v46, %v10930_v45  ;;  %v4043_v63 = vcombine.high %v3985_v52, %v3985_v52  ;;  %v4050_v0 = vrot.slane %v3985_v52, %v10930_v45  ;;  %v9461_v1 = vpop.f32.mrb[35].mxu0  ;;  %v9467_v3 = vpop.f32.mrb[63].mxu1 }
 0xd69   :  { %v4008_v33 = vrot.slane %v3994_v48, %v10930_v45  ;;  %v4009_v9 = vcombine.high %v4001_v59, %v4001_v59  ;;  %v4017_v10 = vrot.slane %v4001_v59, %v10930_v45  ;;  %v4057_v11 = vrot.slane %v4043_v63, %v10930_v45 }
 0xd6a   :  { %v4058_v12 = vcombine.high %v4050_v0, %v4050_v0  ;;  %v4066_v20 = vrot.slane %v4050_v0, %v10930_v45 }
 0xd6b   :  { %v4010_v13 = vcombine.high %v4008_v33, %v4008_v33  ;;  %v4024_v56 = vrot.slane %v4008_v33, %v10930_v45  ;;  %v4031_v58 = vrot.slane %v4009_v9, %v10930_v45  ;;  %v4039_v16 = vcombine.high %v4017_v10, %v4017_v10 }
 0xd6c   :  { %v4059_v19 = vcombine.high %v4057_v11, %v4057_v11  ;;  %v4073_v14 = vrot.slane %v4057_v11, %v10930_v45  ;;  %v3932_v23 = vpop.f32.mrb[36].mxu0  ;;  %v3978_v24 = vpop.f32.mrb[64].mxu1  ;;  %v4080_v27 = vrot.slane %v4058_v12, %v10930_v45  ;;  %v10958_v26 = vsel %vm122_vm8, %v4017_v10, -1e+30 }
 0xd6d   :  { %v4041_v37 = vcombine.high %v4031_v58, %v4031_v58  ;;  %v10949_v21 = vsel %vm122_vm8, %v4031_v58, -1e+30  ;;  %v9472_v28 = vpop.f32.mrb[37].mxu0  ;;  %v9478_v6 = vpop.f32.mrb[65].mxu1  ;;  %v10953_v8 = vrot.slane %v4010_v13, %v10930_v45  ;;  %v4040_v2 = vcombine.high %v4024_v56, %v4024_v56 }
 0xd6e   :  { %v4087_v4 = vrot.slane %v4059_v19, %v10930_v45  ;;  %v3935_v30 = vpop.f32.mrb[38].mxu0  ;;  %v3981_v7 = vpop.f32.mrb[66].mxu1  ;;  %v10962_v40 = vsel %vm122_vm8, %v4039_v16, -1e+30  ;;  %v10966_v41 = vsel %vm122_vm8, %v4024_v56, -1e+30  ;;  %v4286_v43 = vcombine.low %v10958_v26, %v10949_v21 }
 0xd6f   :  { %v10970_v42 = vsel %vm122_vm8, %v4041_v37, -1e+30  ;;  %v4088_v47 = vcombine.high %v4066_v20, %v4066_v20  ;;  %v4089_v34 = vcombine.high %v4073_v14, %v4073_v14  ;;  %v9473_v17 = vpop.f32.mrb[39].mxu0  ;;  %v9479_v32 = vpop.f32.mrb[67].mxu1  ;;  %v4090_v44 = vcombine.high %v4080_v27, %v4080_v27 }
 0xd70   :  { %v4091_v29 = vcombine.high %v4087_v4, %v4087_v4  ;;  %v10976_v61 = vsel %vm122_vm8, %v4066_v20, -1e+30  ;;  %v10980_v46 = vsel %vm122_vm8, %v4080_v27, -1e+30  ;;  %v10985_v52 = vsel %vm122_vm8, %v10953_v8, -1e+30 }
 0xd71   :  { %v10989_v53 = vsel %vm122_vm8, %v4040_v2, -1e+30  ;;  %v10993_v62 = vsel %vm122_vm8, %v4088_v47, -1e+30  ;;  %v4335_v54 = vcombine.low %v10976_v61, %v10980_v46  ;;  %v4042_v57 = vcombine.high %v10953_v8, %v10953_v8 }
 0xd72   :  { %v11001_v48 = vsel %vm122_vm8, %v4090_v44, -1e+30  ;;  %v11005_v59 = vsel %vm122_vm8, %v4087_v4, -1e+30  ;;  %v3986_v63 = vmul.f32 0.17677669, %v3932_v23  ;;  %v4287_v0 = vcombine.low %v10962_v40, %v10970_v42 }
 0xd73   :  { %v4336_v1 = vcombine.low %v10993_v62, %v11001_v48  ;;  %v3987_v3 = vmul.f32 0.17677669, %v3978_v24  ;;  %v11013_v33 = vsel %vm122_vm8, %v4091_v29, -1e+30  ;;  %v11017_v9 = vsel %vm122_vm8, %v4073_v14, -1e+30 }
 0xd74   :  { %v11021_v10 = vsel %vm122_vm8, %v4089_v34, -1e+30  ;;  %v4092_v11 = vcombine.high %v3986_v63, %v3986_v63  ;;  %v4099_v12 = vrot.slane %v3986_v63, %v10930_v45  ;;  %v4337_v13 = vcombine.low %v11017_v9, %v11005_v59 }
 0xd75   :  { %v4141_v56 = vcombine.high %v3987_v3, %v3987_v3  ;;  %v4148_v58 = vrot.slane %v3987_v3, %v10930_v45  ;;  %v4345_v16 = vrot.slane %v4335_v54, %v10930_v45  ;;  %v4338_v23 = vcombine.low %v11021_v10, %v11013_v33 }
 0xd76   :  { %v4106_v19 = vrot.slane %v4092_v11, %v10930_v45  ;;  %v4107_v20 = vcombine.high %v4099_v12, %v4099_v12  ;;  %v4115_v14 = vrot.slane %v4099_v12, %v10930_v45  ;;  %v4352_v28 = vrot.slane %v4336_v1, %v10930_v45 }
 0xd77   :  { %v4155_v24 = vrot.slane %v4141_v56, %v10930_v45  ;;  %v4156_v37 = vcombine.high %v4148_v58, %v4148_v58  ;;  %v4164_v27 = vrot.slane %v4148_v58, %v10930_v45  ;;  %v4359_v3 = vrot.slane %v4337_v13, %v10930_v45 }
 0xd78   :  { %v4108_v6 = vcombine.high %v4106_v19, %v4106_v19  ;;  %v4122_v8 = vrot.slane %v4106_v19, %v10930_v45  ;;  %v4129_v2 = vrot.slane %v4107_v20, %v10930_v45  ;;  %v4137_v4 = vcombine.high %v4115_v14, %v4115_v14 }
 0xd79   :  { %v11039_v30 = vsel %vm122_vm8, %v4115_v14, -1e+30  ;;  %v4157_v7 = vcombine.high %v4155_v24, %v4155_v24  ;;  %v4171_v47 = vrot.slane %v4155_v24, %v10930_v45  ;;  %v4178_v34 = vrot.slane %v4156_v37, %v10930_v45 }
 0xd7a   :  { %v4136_v17 = vrot.slane %v4108_v6, %v10930_v45  ;;  %v4138_v32 = vcombine.high %v4122_v8, %v4122_v8  ;;  %v4139_v44 = vcombine.high %v4129_v2, %v4129_v2  ;;  %v11046_v29 = vsel %vm122_vm8, %v4129_v2, -1e+30 }
 0xd7b   :  { %v11050_v54 = vsel %vm122_vm8, %v4137_v4, -1e+30  ;;  %v11054_v63 = vsel %vm122_vm8, %v4122_v8, -1e+30  ;;  %v4185_v1 = vrot.slane %v4157_v7, %v10930_v45  ;;  %v4366_v58 = vrot.slane %v4338_v23, %v10930_v45 }
 0xd7c   :  { %v11060_v11 = vsel %vm122_vm8, %v4139_v44, -1e+30  ;;  %v11064_v12 = vsel %vm122_vm8, %v4136_v17, -1e+30  ;;  %v11068_v56 = vsel %vm122_vm8, %v4138_v32, -1e+30  ;;  %v4186_v19 = vcombine.high %v4164_v27, %v4164_v27 }
 0xd7d   :  { %v4187_v20 = vcombine.high %v4171_v47, %v4171_v47  ;;  %v4367_v14 = vcombine.low %v4345_v16, %v4352_v28  ;;  %v11073_v13 = vsel %vm122_vm8, %v4042_v57, -1e+30  ;;  %v4140_v24 = vcombine.high %v4136_v17, %v4136_v17 }
 0xd7e   :  { %v4188_v37 = vcombine.high %v4178_v34, %v4178_v34  ;;  %v11077_v6 = vsel %vm122_vm8, %v4164_v27, -1e+30  ;;  %v11081_v8 = vsel %vm122_vm8, %v4178_v34, -1e+30  ;;  %v4288_v23 = vcombine.low %v10966_v41, %v10985_v52 }
 0xd7f   :  { %v11087_v16 = vsel %vm122_vm8, %v4186_v19, -1e+30  ;;  %v11091_v57 = vsel %vm122_vm8, %v4171_v47, -1e+30  ;;  %v11095_v28 = vsel %vm122_vm8, %v4185_v1, -1e+30  ;;  %v4189_v27 = vcombine.high %v4185_v1, %v4185_v1 }
 0xd80   :  { %v11099_v2 = vsel %vm122_vm8, %v4188_v37, -1e+30  ;;  %v11103_v4 = vsel %vm122_vm8, %v4187_v20, -1e+30  ;;  %v4368_v7 = vcombine.low %v4359_v3, %v4366_v58  ;;  %v4375_v34 = vrot.slane %v4367_v14, %v10930_v45 }
 0xd81   :  { %12763 = vst [vmem:[#allocation26_spill] sm:$0xff] %v11103_v4  ;;  %v4289_v47 = vcombine.low %v10989_v53, %v11073_v13  ;;  %v4296_v32 = vrot.slane %v4286_v43, %v10930_v45  ;;  %v4303_v44 = vrot.slane %v4287_v0, %v10930_v45  ;;  %v11116_v1 = vsel %vm122_vm8, %v4140_v24, -1e+30 }
 0xd82   :  { %v4382_v17 = vrot.slane %v4368_v7, %v10930_v45  ;;  %v4310_v3 = vrot.slane %v4288_v23, %v10930_v45  ;;  %v11122_v14 = vsel %vm122_vm8, %v4189_v27, -1e+30  ;;  %v11130_v23 = vadd.f32 %v10883_v49, %v10893_v36 }
 0xd83   :  { %v4317_v58 = vrot.slane %v4289_v47, %v10930_v45  ;;  %v4318_v20 = vcombine.low %v4296_v32, %v4303_v44  ;;  %12764 = vst [vmem:[#allocation27_spill] sm:$0xff] %v11122_v14  ;;  %v4385_v49 = vcombine.low %v11050_v54, %v11060_v11  ;;  %v4386_v22 = vcombine.low %v11054_v63, %v11064_v12 }
 0xd84   :  { %v4383_v19 = vcombine.low %v4375_v34, %v4382_v17  ;;  %v4384_v36 = vcombine.low %v11039_v30, %v11046_v29  ;;  %v4436_v34 = vcombine.low %v11103_v4, %v11122_v14  ;;  %v4434_v47 = vcombine.low %v11087_v16, %v11099_v2 }
 0xd85   :  { %v4319_v37 = vcombine.low %v4310_v3, %v4317_v58  ;;  %v4326_v0 = vrot.slane %v4318_v20, %v10930_v45  ;;  %v4435_v17 = vcombine.low %v11091_v57, %v11095_v28  ;;  %v4401_v32 = vrot.slane %v4385_v49, %v10930_v45 }
 0xd86   :  { %v4490_v43 = vsel %vm4486_vm9, %v4383_v19, -inf  ;;  %v4408_v44 = vrot.slane %v4386_v22, %v10930_v45  ;;  %v4433_v3 = vcombine.low %v11077_v6, %v11081_v8  ;;  %v4394_v58 = vrot.slane %v4384_v36, %v10930_v45 }
 0xd87   :  { %4491 = vmax.xlane.f32.xlu1 %v4490_v43  ;;  %v4333_v24 = vrot.slane %v4319_v37, %v10930_v45  ;;  %v4464_v20 = vrot.slane %v4436_v34, %v10930_v45  ;;  %v4450_v43 = vrot.slane %v4434_v47, %v10930_v45 }
 0xd88   :  { %v4416_v37 = vcombine.low %v4394_v58, %v4401_v32  ;;  %v11192_v32 = vsub.s32 1, %v10407_v15  ;;  %v11207_v58 = vsub.s32 6, %v10407_v15 }
 0xd89   :  { %v4334_v7 = vcombine.low %v4326_v0, %v4333_v24  ;;  %v4457_v0 = vrot.slane %v4435_v17, %v10930_v45  ;;  %v11189_v17 = vsub.s32 0, %v10407_v15 }
 0xd8a   :  { %v4424_v49 = vrot.slane %v4416_v37, %v10930_v45  ;;  %12766 = vst [vmem:[#allocation29_spill] sm:$0xff] %v11192_v32 }
 0xd8b   :  { %v4487_v5 = vsel %vm4486_vm9, %v4334_v7, -inf  ;;  %v4443_v7 = vrot.slane %v4433_v3, %v10930_v45  ;;  %12765 = vst [vmem:[#allocation28_spill] sm:$0xff] %v11189_v17  ;;  %v11198_v3 = vsub.s32 3, %v10407_v15 }
 0xd8c   :  { %4488 = vmax.xlane.f32.xlu0 %v4487_v5  ;;  %v4387_v5 = vcombine.low %v11068_v56, %v11116_v1 }
 0xd8d   :  { %v4465_v22 = vcombine.low %v4443_v7, %v4450_v43 }
 0xd8e   :  { %v4415_v27 = vrot.slane %v4387_v5, %v10930_v45  ;;  %v4466_v5 = vcombine.low %v4457_v0, %v4464_v20 }
 0xd8f   :  { %v4473_v36 = vrot.slane %v4465_v22, %v10930_v45 }
 0xd90   :  { %v4417_v19 = vcombine.low %v4408_v44, %v4415_v27  ;;  %v4480_v55 = vrot.slane %v4466_v5, %v10930_v45  ;;  %v11195_v44 = vsub.s32 2, %v10407_v15 }
 0xd92   :  { %v4431_v24 = vrot.slane %v4417_v19, %v10930_v45  ;;  %v4481_v34 = vcombine.low %v4473_v36, %v4480_v55  ;;  %v11201_v55 = vsub.s32 4, %v10407_v15  ;;  %v11210_v19 = vsub.s32 7, %v10407_v15 }
 0xd94   :  { %v4432_v60 = vcombine.low %v4424_v49, %v4431_v24  ;;  %v4496_v47 = vsel %vm4486_vm9, %v4481_v34, -inf }
 0xd96   :  { %v4493_v27 = vsel %vm4486_vm9, %v4432_v60, -inf  ;;  %v11204_v60 = vsub.s32 5, %v10407_v15 }
 0xd98   :  { %3504 = vrot.lane.b32.xlu1 %v11130_v23, %s10203_s7 }
 0xd9c   :  { %3508 = vrot.lane.b32.xlu1 %v11134_v31, %s10192_s19 }
 0xda0   :  { %3510 = vrot.lane.b32.xlu1 %v11130_v23, %s10192_s19 }
 0xda2   :  { %3502 = vrot.lane.b32.xlu0 %v11134_v31, %s10203_s7 }
 0xda4   :  { %3516 = vrot.lane.b32.xlu1 %v11130_v23, %s10204_s23 }
 0xda6   :  { %3514 = vrot.lane.b32.xlu0 %v11134_v31, %s10204_s23 }
 0xda8   :  { %5871 = vrot.lane.b32.xlu1 %v10813_v38, %s10203_s7 }
 0xdaa   :  { %5869 = vrot.lane.b32.xlu0 %v10809_v39, %s10203_s7 }
 0xdac   :  { %5877 = vrot.lane.b32.xlu1 %v10813_v38, %s10192_s19 }
 0xdb0   :  { %5883 = vrot.lane.b32.xlu1 %v10813_v38, %s10204_s23 }
 0xdc9   :  { %4494 = vmax.xlane.f32.xlu0 %v4493_v27 }
 0xdcd   :  { %4497 = vmax.xlane.f32.xlu0 %v4496_v47 }
 0xde3   :  { %5875 = vrot.lane.b32.xlu0 %v10809_v39, %s10192_s19 }
 0xe14   :  { %v4492_v20 = vpop.xlane.xlu1 %4491 }
 0xe15   :  { %v4538_v37 = vrot.slane %v4492_v20, %v11189_v17  ;;  %v4542_v43 = vrot.slane %v4492_v20, %v11192_v32  ;;  %v4546_v0 = vrot.slane %v4492_v20, %v11195_v44  ;;  %v4550_v24 = vrot.slane %v4492_v20, %v11198_v3 }
 0xe16   :  { %v4554_v7 = vrot.slane %v4492_v20, %v11201_v55  ;;  %v4558_v5 = vrot.slane %v4492_v20, %v11204_v60  ;;  %v4562_v49 = vrot.slane %v4492_v20, %v11207_v58  ;;  %v4566_v22 = vrot.slane %v4492_v20, %v11210_v19 }
 0xe17   :  { %v4671_v15 = vsub.f32 %v10976_v61, %v4538_v37  ;;  %v4672_v36 = vsub.f32 %v10980_v46, %v4542_v43  ;;  %v4673_v27 = vsub.f32 %v10993_v62, %v4546_v0  ;;  %v4674_v34 = vsub.f32 %v11001_v48, %v4550_v24 }
 0xe18   :  { %v4675_v47 = vsub.f32 %v11017_v9, %v4554_v7  ;;  %v4676_v51 = vsub.f32 %v11005_v59, %v4558_v5  ;;  %v4677_v50 = vsub.f32 %v11021_v10, %v4562_v49  ;;  %v11227_v35 = vpop.permute.xlu1 %3504  ;;  %v4678_v14 = vsub.f32 %v11013_v33, %v4566_v22 }
 0xe19   :  { %v4489_v39 = vpop.xlane.xlu0 %4488  ;;  %v4711_v20 = vmul.f32 1.442695, %v4671_v15  ;;  %v4713_v4 = vmul.f32 1.442695, %v4672_v36  ;;  %v4715_v61 = vmul.f32 1.442695, %v4673_v27 }
 0xe1a   :  { %v4506_v46 = vrot.slane %v4489_v39, %v11189_v17  ;;  %v4510_v62 = vrot.slane %v4489_v39, %v11192_v32  ;;  %v4514_v48 = vrot.slane %v4489_v39, %v11195_v44  ;;  %v4518_v9 = vrot.slane %v4489_v39, %v11198_v3 }
 0xe1b   :  { %v4522_v59 = vrot.slane %v4489_v39, %v11201_v55  ;;  %v4526_v10 = vrot.slane %v4489_v39, %v11204_v60  ;;  %v4530_v37 = vrot.slane %v4489_v39, %v11207_v58  ;;  %v4534_v33 = vrot.slane %v4489_v39, %v11210_v19 }
 0xe1c   :  { %v4663_v43 = vsub.f32 %v10958_v26, %v4506_v46  ;;  %v4664_v0 = vsub.f32 %v10949_v21, %v4510_v62  ;;  %v4665_v24 = vsub.f32 %v10962_v40, %v4514_v48  ;;  %v4666_v7 = vsub.f32 %v10970_v42, %v4518_v9  ;;  %v3509_v5 = vpop.permute.xlu1 %3508 }
 0xe1d   :  { %v4667_v49 = vsub.f32 %v10966_v41, %v4522_v59  ;;  %v4668_v22 = vsub.f32 %v10985_v52, %v4526_v10  ;;  %v11245_v15 = vsub.f32 %v10989_v53, %v4530_v37  ;;  %v11248_v36 = vsub.f32 %v11073_v13, %v4534_v33  ;;  %v3503_v39 = vpop.permute.xlu0 %3502 }
 0xe1e   :  { %v3520_v26 = vcombine.low %v11134_v31, %v3509_v5  ;;  %v3521_v21 = vcombine.high %v11134_v31, %v3509_v5  ;;  %9765 = vpow2.f32 %v4711_v20  ;;  %v4717_v40 = vmul.f32 1.442695, %v4674_v34 }
 0xe1f   :  { %9767 = vpow2.f32 %v4713_v4  ;;  %v4719_v42 = vmul.f32 1.442695, %v4675_v47  ;;  %v4721_v27 = vmul.f32 1.442695, %v4676_v51  ;;  %v4723_v46 = vmul.f32 1.442695, %v4677_v50 }
 0xe20   :  { %v3528_v41 = vrot.slane %v3520_v26, %v10410_v18  ;;  %v3535_v52 = vrot.slane %v3521_v21, %v10410_v18  ;;  %v3511_v53 = vpop.permute.xlu1 %3510  ;;  %9769 = vpow2.f32 %v4715_v61  ;;  %v4725_v62 = vmul.f32 1.442695, %v4678_v14 }
 0xe21   :  { %v3515_v13 = vpop.permute.xlu0 %3514  ;;  %v3588_v48 = vcombine.low %v11130_v23, %v3511_v53  ;;  %v3589_v9 = vcombine.high %v11130_v23, %v3511_v53  ;;  %9771 = vpow2.f32 %v4717_v40  ;;  %v4695_v31 = vmul.f32 1.442695, %v4663_v43 }
 0xe22   :  { %v3536_v20 = vcombine.low %v3503_v39, %v3515_v13  ;;  %v3537_v34 = vcombine.high %v3503_v39, %v3515_v13  ;;  %9773 = vpow2.f32 %v4719_v42  ;;  %v11256_v4 = vmul.f32 1.442695, %v4664_v0 }
 0xe23   :  { %v3596_v50 = vrot.slane %v3588_v48, %v10410_v18  ;;  %v3603_v51 = vrot.slane %v3589_v9, %v10410_v18  ;;  %9775 = vpow2.f32 %v4721_v27  ;;  %v11260_v47 = vmul.f32 1.442695, %v4665_v24 }
 0xe24   :  { %v3544_v14 = vrot.slane %v3536_v20, %v10410_v18  ;;  %v3551_v61 = vrot.slane %v3537_v34, %v10410_v18  ;;  %v3517_v59 = vpop.permute.xlu1 %3516  ;;  %9777 = vpow2.f32 %v4723_v46  ;;  %v11264_v23 = vmul.f32 1.442695, %v4666_v7 }
 0xe25   :  { %v3604_v10 = vcombine.low %v11227_v35, %v3517_v59  ;;  %v3605_v37 = vcombine.high %v11227_v35, %v3517_v59  ;;  %9779 = vpow2.f32 %v4725_v62  ;;  %v11268_v33 = vmul.f32 1.442695, %v4667_v49 }
 0xe26   :  { %v3552_v43 = vcombine.low %v3528_v41, %v3544_v14  ;;  %v3553_v0 = vcombine.high %v3528_v41, %v3544_v14  ;;  %v3568_v5 = vcombine.low %v3535_v52, %v3551_v61  ;;  %v3569_v24 = vcombine.high %v3535_v52, %v3551_v61 }
 0xe27   :  { %v3612_v39 = vrot.slane %v3604_v10, %v10410_v18  ;;  %v3619_v26 = vrot.slane %v3605_v37, %v10410_v18  ;;  %9781 = vpow2.f32 %v4695_v31  ;;  %v11272_v21 = vmul.f32 1.442695, %v4668_v22 }
 0xe28   :  { %v11274_v7 = vpop.eup %9765  ;;  %v3560_v40 = vrot.slane %v3552_v43, %v10413_v25  ;;  %v3567_v35 = vrot.slane %v3553_v0, %v10413_v25  ;;  %v3576_v49 = vrot.slane %v3568_v5, %v10413_v25  ;;  %v3583_v42 = vrot.slane %v3569_v24, %v10413_v25  ;;  %v5872_v27 = vpop.permute.xlu1 %5871 }
 0xe29   :  { %v11280_v46 = vpop.eup %9767  ;;  %v3620_v41 = vcombine.low %v3596_v50, %v3612_v39  ;;  %v3621_v52 = vcombine.high %v3596_v50, %v3612_v39  ;;  %v3636_v53 = vcombine.low %v3603_v51, %v3619_v26  ;;  %v3637_v62 = vcombine.high %v3603_v51, %v3619_v26 }
 0xe2a   :  { %v11282_v13 = vpop.eup %9769  ;;  %v3656_v22 = vcombine.low %v3560_v40, %v3567_v35  ;;  %v8982_v48 = vcombine.high %v3560_v40, %v3567_v35  ;;  %v3672_v9 = vcombine.low %v3576_v49, %v3583_v42  ;;  %v8983_v31 = vcombine.high %v3576_v49, %v3583_v42 }
 0xe2b   :  { %v11284_v20 = vpop.eup %9771  ;;  %v3628_v34 = vrot.slane %v3620_v41, %v10413_v25  ;;  %v3635_v14 = vrot.slane %v3621_v52, %v10413_v25  ;;  %v3644_v61 = vrot.slane %v3636_v53, %v10413_v25  ;;  %v3651_v59 = vrot.slane %v3637_v62, %v10413_v25 }
 0xe2c   :  { %v11290_v10 = vpop.eup %9773  ;;  %v11293_v50 = vrot.slane %v3656_v22, %v10410_v18  ;;  %v11296_v51 = vrot.slane %v8982_v48, %v10410_v18  ;;  %v11299_v37 = vrot.slane %v3672_v9, %v10410_v18  ;;  %v11302_v43 = vrot.slane %v8983_v31, %v10410_v18  ;;  %v5878_v0 = vpop.permute.xlu1 %5877 }
 0xe2d   :  { %v11304_v5 = vpop.eup %9775  ;;  %v3724_v24 = vcombine.low %v3628_v34, %v3635_v14  ;;  %v8984_v39 = vcombine.high %v3628_v34, %v3635_v14  ;;  %v3740_v26 = vcombine.low %v3644_v61, %v3651_v59  ;;  %v8985_v40 = vcombine.high %v3644_v61, %v3651_v59 }
 0xe2e   :  { %12767 = vst [vmem:[#allocation30_spill] sm:$0xff] %v11304_v5  ;;  %v11306_v35 = vpop.eup %9777  ;;  %v5955_v49 = vcombine.low %v10813_v38, %v5878_v0  ;;  %v5956_v42 = vcombine.high %v10813_v38, %v5878_v0  ;;  %v4840_v41 = vcombine.low %v11274_v7, %v11280_v46  ;;  %v4841_v52 = vcombine.low %v11282_v13, %v11284_v20 }
 0xe2f   :  { %12768 = vst [vmem:[#allocation31_spill] sm:$0xff] %v11306_v35  ;;  %v11314_v53 = vpop.eup %9779  ;;  %v11317_v62 = vrot.slane %v3724_v24, %v10410_v18  ;;  %v11320_v22 = vrot.slane %v8984_v39, %v10410_v18  ;;  %v11323_v48 = vrot.slane %v3740_v26, %v10410_v18  ;;  %v11326_v9 = vrot.slane %v8985_v40, %v10410_v18 }
 0xe30   :  { %12769 = vst [vmem:[#allocation32_spill] sm:$0xff] %v11314_v53  ;;  %v5963_v38 = vrot.slane %v5955_v49, %v10410_v18  ;;  %v5970_v31 = vrot.slane %v5956_v42, %v10410_v18  ;;  %v5884_v34 = vpop.permute.xlu1 %5883  ;;  %v4842_v14 = vcombine.low %v11290_v10, %v11304_v5  ;;  %v4843_v61 = vcombine.low %v11306_v35, %v11314_v53 }
 0xe31   :  { %v11334_v59 = vpop.eup %9781  ;;  %v5971_v0 = vcombine.low %v5872_v27, %v5884_v34  ;;  %v5972_v24 = vcombine.high %v5872_v27, %v5884_v34  ;;  %v4850_v39 = vrot.slane %v4840_v41, %v10930_v45  ;;  %v4857_v26 = vrot.slane %v4841_v52, %v10930_v45 }
 0xe32   :  { %v4864_v40 = vrot.slane %v4842_v14, %v10930_v45  ;;  %v4871_v49 = vrot.slane %v4843_v61, %v10930_v45  ;;  %9783 = vpow2.f32 %v11256_v4  ;;  %v4707_v42 = vmul.f32 1.442695, %v11245_v15 }
 0xe33   :  { %v5979_v5 = vrot.slane %v5971_v0, %v10410_v18  ;;  %v5986_v53 = vrot.slane %v5972_v24, %v10410_v18  ;;  %v4872_v35 = vcombine.low %v4850_v39, %v4857_v26  ;;  %9785 = vpow2.f32 %v11260_v47 }
 0xe34   :  { %v4873_v27 = vcombine.low %v4864_v40, %v4871_v49  ;;  %9787 = vpow2.f32 %v11264_v23  ;;  %v4709_v41 = vmul.f32 1.442695, %v11248_v36  ;;  %v3688_v52 = vcombine.low %v11293_v50, %v11296_v51 }
 0xe35   :  { %v5987_v34 = vcombine.low %v5963_v38, %v5979_v5  ;;  %v5988_v14 = vcombine.high %v5963_v38, %v5979_v5  ;;  %v6003_v4 = vcombine.low %v5970_v31, %v5986_v53  ;;  %v6004_v61 = vcombine.high %v5970_v31, %v5986_v53 }
 0xe36   :  { %v4880_v15 = vrot.slane %v4872_v35, %v10930_v45  ;;  %v4887_v0 = vrot.slane %v4873_v27, %v10930_v45  ;;  %9789 = vpow2.f32 %v11268_v33  ;;  %v3696_v47 = vrot.slane %v3688_v52, %v10413_v25 }
 0xe37   :  { %v5995_v24 = vrot.slane %v5987_v34, %v10413_v25  ;;  %v6002_v23 = vrot.slane %v5988_v14, %v10413_v25  ;;  %v6011_v36 = vrot.slane %v6003_v4, %v10413_v25  ;;  %v6018_v39 = vrot.slane %v6004_v61, %v10413_v25 }
 0xe38   :  { %v4888_v26 = vcombine.low %v4880_v15, %v4887_v0  ;;  %9791 = vpow2.f32 %v11272_v21  ;;  %v3704_v5 = vcombine.low %v11299_v37, %v11302_v43  ;;  %v3756_v35 = vcombine.low %v11317_v62, %v11320_v22 }
 0xe39   :  { %v6091_v33 = vcombine.low %v5995_v24, %v6002_v23  ;;  %v9000_v53 = vcombine.high %v5995_v24, %v6002_v23  ;;  %v6107_v38 = vcombine.low %v6011_v36, %v6018_v39  ;;  %v9001_v31 = vcombine.high %v6011_v36, %v6018_v39 }
 0xe3a   :  { %v4994_v40 = vsel %vm4486_vm9, %v4888_v26, 0.0  ;;  %9793 = vpow2.f32 %v4707_v42  ;;  %v3712_v49 = vrot.slane %v3704_v5, %v10413_v25  ;;  %v3764_v61 = vrot.slane %v3756_v35, %v10413_v25 }
 0xe3b   :  { %v6098_v27 = vrot.slane %v6091_v33, %v10410_v18  ;;  %v6106_v52 = vrot.slane %v9000_v53, %v10410_v18  ;;  %v6114_v21 = vrot.slane %v6107_v38, %v10410_v18  ;;  %v6122_v34 = vrot.slane %v9001_v31, %v10410_v18  ;;  %4995 = vadd.xlane.f32.xlu1 %v4994_v40 }
 0xe3c   :  { %v11368_v14 = vpop.eup %9783  ;;  %9795 = vpow2.f32 %v4709_v41  ;;  %v3720_v4 = vcombine.low %v3696_v47, %v3712_v49  ;;  %v3772_v42 = vcombine.low %v11323_v48, %v11326_v9  ;;  %v3689_v24 = vcombine.high %v11293_v50, %v11296_v51 }
 0xe3d   :  { %v11373_v15 = vpop.eup %9785  ;;  %v4791_v0 = vcombine.low %v11334_v59, %v11368_v14  ;;  %v3705_v23 = vcombine.high %v11299_v37, %v11302_v43  ;;  %v3757_v41 = vcombine.high %v11317_v62, %v11320_v22  ;;  %v3773_v26 = vcombine.high %v11323_v48, %v11326_v9 }
 0xe3e   :  { %v11383_v36 = vpop.eup %9787  ;;  %v3780_v39 = vrot.slane %v3772_v42, %v10413_v25  ;;  %v6123_v5 = vcombine.low %v6098_v27, %v6106_v52  ;;  %v6139_v35 = vcombine.low %v6114_v21, %v6122_v34  ;;  %v3721_v53 = vcombine.high %v3696_v47, %v3712_v49 }
 0xe3f   :  { %v4792_v33 = vcombine.low %v11373_v15, %v11383_v36  ;;  %v3703_v50 = vrot.slane %v3689_v24, %v10413_v25  ;;  %v3719_v51 = vrot.slane %v3705_v23, %v10413_v25  ;;  %v3771_v22 = vrot.slane %v3757_v41, %v10413_v25 }
 0xe40   :  { %v11392_v37 = vpop.eup %9789  ;;  %v3788_v43 = vcombine.low %v3764_v61, %v3780_v39  ;;  %v3789_v62 = vcombine.high %v3764_v61, %v3780_v39  ;;  %v3787_v38 = vrot.slane %v3773_v26, %v10413_v25  ;;  %v4801_v48 = vrot.slane %v4791_v0, %v10930_v45 }
 0xe41   :  { %v3722_v9 = vcombine.low %v3703_v50, %v3719_v51  ;;  %v3723_v31 = vcombine.high %v3703_v50, %v3719_v51  ;;  %v11398_v40 = vrot.slane %v6123_v5, %v10413_v25  ;;  %v4808_v41 = vrot.slane %v4792_v33, %v10930_v45 }
 0xe42   :  { %v11400_v47 = vpop.eup %9791  ;;  %v5263_v49 = vpack.c.bf16 %v3788_v43, %v3720_v4  ;;  %v5264_v42 = vpack.c.bf16 %v3789_v62, %v3721_v53  ;;  %v3790_v24 = vcombine.low %v3771_v22, %v3787_v38  ;;  %v3791_v23 = vcombine.high %v3771_v22, %v3787_v38 }
 0xe43   :  { %v4793_v61 = vcombine.low %v11392_v37, %v11400_v47  ;;  %v11406_v39 = vrot.slane %v6139_v35, %v10413_v25  ;;  %v6124_v0 = vcombine.high %v6098_v27, %v6106_v52  ;;  %v6140_v4 = vcombine.high %v6114_v21, %v6122_v34 }
 0xe44   :  { %v11408_v26 = vpop.eup %9793  ;;  %9481 = vmatpush3.bf16.msra.mxu0 %v5263_v49  ;;  %9487 = vmatpush3.bf16.msra.mxu1 %v5264_v42  ;;  %v11410_v5 = vpack.c.bf16 %v3790_v24, %v3722_v9  ;;  %v11412_v50 = vpack.c.bf16 %v3791_v23, %v3723_v31  ;;  %v12770_v53 = vmov 0.0   ;;  %v4823_v43 = vcombine.low %v4801_v48, %v4808_v41  ;;  %v11439_v23 = vpop.permute.xlu0 %5869 }
 0xe45   :  { %9492 = vmatprep.subr.bf16.mxu0 %v12770_v53  ;;  %9498 = vmatprep.subr.bf16.mxu1 %v12770_v53  ;;  %v11423_v52 = vrot.slane %v6124_v0, %v10413_v25  ;;  %v11426_v35 = vrot.slane %v6140_v4, %v10413_v25  ;;  %v4815_v34 = vrot.slane %v4793_v61, %v10930_v45 }
 0xe46   :  { %v11418_v51 = vpop.eup %9795  ;;  %v4831_v31 = vrot.slane %v4823_v43, %v10930_v45 }
 0xe47   :  { %12771 = vst [vmem:[#allocation33_spill] sm:$0xff] %v11423_v52  ;;  %12772 = vst [vmem:[#allocation34_spill] sm:$0xff] %v11426_v35  ;;  %v4794_v21 = vcombine.low %v11408_v26, %v11418_v51 }
 0xe49   :  { %v4822_v38 = vrot.slane %v4794_v21, %v10930_v45 }
 0xe4b   :  { %v4824_v9 = vcombine.low %v4815_v34, %v4822_v38 }
 0xe4d   :  { %v4838_v49 = vrot.slane %v4824_v9, %v10930_v45 }
 0xe4f   :  { %v4839_v42 = vcombine.low %v4831_v31, %v4838_v49 }
 0xe51   :  { %v4991_v24 = vsel %vm4486_vm9, %v4839_v42, 0.0 }
 0xe52   :  { %4992 = vadd.xlane.f32.xlu0 %v4991_v24 }
 0xe56   :  { %v4495_v48 = vpop.xlane.xlu0 %4494 }
 0xe57   :  { %v4570_v61 = vrot.slane %v4495_v48, %v11189_v17  ;;  %v4574_v41 = vrot.slane %v4495_v48, %v11192_v32  ;;  %v4578_v0 = vrot.slane %v4495_v48, %v11195_v44  ;;  %v4582_v4 = vrot.slane %v4495_v48, %v11198_v3 }
 0xe58   :  { %v4586_v21 = vrot.slane %v4495_v48, %v11201_v55  ;;  %v4590_v34 = vrot.slane %v4495_v48, %v11204_v60  ;;  %v4594_v38 = vrot.slane %v4495_v48, %v11207_v58  ;;  %v4598_v49 = vrot.slane %v4495_v48, %v11210_v19 }
 0xe59   :  { %v4679_v9 = vsub.f32 %v11039_v30, %v4570_v61  ;;  %v4680_v31 = vsub.f32 %v11046_v29, %v4574_v41  ;;  %v4681_v42 = vsub.f32 %v11050_v54, %v4578_v0  ;;  %v4682_v24 = vsub.f32 %v11060_v11, %v4582_v4 }
 0xe5a   :  { %v4498_v43 = vpop.xlane.xlu0 %4497  ;;  %v4683_v22 = vsub.f32 %v11054_v63, %v4586_v21  ;;  %v4684_v62 = vsub.f32 %v11064_v12, %v4590_v34  ;;  %v4685_v35 = vsub.f32 %v11068_v56, %v4594_v38  ;;  %v4686_v48 = vsub.f32 %v11116_v1, %v4598_v49 }
 0xe5b   :  { %v4602_v27 = vrot.slane %v4498_v43, %v11189_v17  ;;  %v4606_v33 = vrot.slane %v4498_v43, %v11192_v32  ;;  %v4610_v30 = vrot.slane %v4498_v43, %v11195_v44  ;;  %v4727_v61 = vmul.f32 1.442695, %v4679_v9 }
 0xe5c   :  { %v4729_v29 = vmul.f32 1.442695, %v4680_v31  ;;  %v4614_v54 = vrot.slane %v4498_v43, %v11198_v3  ;;  %v4731_v41 = vmul.f32 1.442695, %v4681_v42  ;;  %v4733_v11 = vmul.f32 1.442695, %v4682_v24 }
 0xe5d   :  { %v4618_v63 = vrot.slane %v4498_v43, %v11201_v55  ;;  %v4687_v0 = vsub.f32 %v11077_v6, %v4602_v27  ;;  %9797 = vpow2.f32 %v4727_v61  ;;  %v4735_v12 = vmul.f32 1.442695, %v4683_v22 }
 0xe5e   :  { %v4622_v4 = vrot.slane %v4498_v43, %v11204_v60  ;;  %v4688_v56 = vsub.f32 %v11081_v8, %v4606_v33  ;;  %9799 = vpow2.f32 %v4729_v29  ;;  %v4737_v21 = vmul.f32 1.442695, %v4684_v62  ;;  %v12773_v62 = vld [vmem:[#allocation26_spill] sm:$0xff] }
 0xe5f   :  { %v4626_v34 = vrot.slane %v4498_v43, %v11207_v58  ;;  %v4689_v1 = vsub.f32 %v11087_v16, %v4610_v30  ;;  %9801 = vpow2.f32 %v4731_v41  ;;  %v4739_v38 = vmul.f32 1.442695, %v4685_v35  ;;  %v12774_v35 = vld [vmem:[#allocation21_spill] sm:$0xff] }
 0xe60   :  { %v4630_v9 = vrot.slane %v4498_v43, %v11210_v19  ;;  %v4690_v31 = vsub.f32 %v11099_v2, %v4614_v54  ;;  %9803 = vpow2.f32 %v4733_v11  ;;  %v4741_v6 = vmul.f32 1.442695, %v4686_v48  ;;  %v12775_v43 = vld [vmem:[#allocation27_spill] sm:$0xff] }
 0xe61   :  { %v4691_v27 = vsub.f32 %v11091_v57, %v4618_v63  ;;  %9805 = vpow2.f32 %v4735_v12  ;;  %v4743_v22 = vmul.f32 1.442695, %v4687_v0  ;;  %v4692_v8 = vsub.f32 %v11095_v28, %v4622_v4 }
 0xe62   :  { %9807 = vpow2.f32 %v4737_v21  ;;  %v4745_v33 = vmul.f32 1.442695, %v4688_v56  ;;  %v4693_v49 = vsub.f32 %v12773_v62, %v4626_v34  ;;  %v4747_v16 = vmul.f32 1.442695, %v4689_v1 }
 0xe63   :  { %9809 = vpow2.f32 %v4739_v38  ;;  %v4694_v42 = vsub.f32 %v12775_v43, %v4630_v9  ;;  %v4749_v2 = vmul.f32 1.442695, %v4690_v31  ;;  %v4751_v24 = vmul.f32 1.442695, %v4691_v27 }
 0xe64   :  { %9811 = vpow2.f32 %v4741_v6  ;;  %v4753_v57 = vmul.f32 1.442695, %v4692_v8  ;;  %v4755_v28 = vmul.f32 1.442695, %v4693_v49 }
 0xe65   :  { %9813 = vpow2.f32 %v4743_v22  ;;  %v4757_v29 = vmul.f32 1.442695, %v4694_v42 }
 0xe66   :  { %9815 = vpow2.f32 %v4745_v33 }
 0xe67   :  { %v11475_v30 = vpop.eup %9797  ;;  %9817 = vpow2.f32 %v4747_v16 }
 0xe68   :  { %5881 = vrot.lane.b32.xlu0 %v12774_v35, %s10204_s23  ;;  %v11477_v61 = vpop.eup %9799  ;;  %9819 = vpow2.f32 %v4749_v2 }
 0xe69   :  { %v11479_v48 = vpop.eup %9801  ;;  %9821 = vpow2.f32 %v4751_v24  ;;  %v4889_v63 = vcombine.low %v11475_v30, %v11477_v61 }
 0xe6a   :  { %v11481_v54 = vpop.eup %9803  ;;  %9823 = vpow2.f32 %v4753_v57 }
 0xe6b   :  { %v11483_v41 = vpop.eup %9805  ;;  %9825 = vpow2.f32 %v4755_v28  ;;  %v4890_v0 = vcombine.low %v11479_v48, %v11481_v54  ;;  %v4899_v38 = vrot.slane %v4889_v63, %v10930_v45 }
 0xe6c   :  { %v11485_v11 = vpop.eup %9807  ;;  %9827 = vpow2.f32 %v4757_v29 }
 0xe6d   :  { %v11491_v12 = vpop.eup %9809  ;;  %v4891_v4 = vcombine.low %v11483_v41, %v11485_v11  ;;  %v4906_v9 = vrot.slane %v4890_v0, %v10930_v45 }
 0xe6e   :  { %v11495_v56 = vpop.eup %9811 }
 0xe6f   :  { %v11497_v21 = vpop.eup %9813  ;;  %v4892_v34 = vcombine.low %v11491_v12, %v11495_v56  ;;  %v4913_v31 = vrot.slane %v4891_v4, %v10930_v45  ;;  %v4921_v43 = vcombine.low %v4899_v38, %v4906_v9 }
 0xe70   :  { %v11501_v1 = vpop.eup %9815 }
 0xe71   :  { %v11506_v6 = vpop.eup %9817  ;;  %v4920_v27 = vrot.slane %v4892_v34, %v10930_v45  ;;  %v4938_v22 = vcombine.low %v11497_v21, %v11501_v1  ;;  %v4929_v4 = vrot.slane %v4921_v43, %v10930_v45 }
 0xe72   :  { %v11511_v8 = vpop.eup %9819 }
 0xe73   :  { %v11513_v33 = vpop.eup %9821  ;;  %v4939_v62 = vcombine.low %v11506_v6, %v11511_v8  ;;  %v4948_v49 = vrot.slane %v4938_v22, %v10930_v45  ;;  %v4922_v42 = vcombine.low %v4913_v31, %v4920_v27 }
 0xe74   :  { %12776 = vst [vmem:[#allocation26_spill] sm:$0xff] %v11513_v33  ;;  %v11518_v16 = vpop.eup %9823 }
 0xe75   :  { %12777 = vst [vmem:[#allocation21_spill] sm:$0xff] %v11518_v16  ;;  %v11520_v2 = vpop.eup %9825  ;;  %v4940_v24 = vcombine.low %v11513_v33, %v11518_v16  ;;  %v4955_v57 = vrot.slane %v4939_v62, %v10930_v45  ;;  %v4936_v34 = vrot.slane %v4922_v42, %v10930_v45 }
 0xe76   :  { %12778 = vst [vmem:[#allocation27_spill] sm:$0xff] %v11520_v2  ;;  %v11525_v28 = vpop.eup %9827 }
 0xe77   :  { %12779 = vst [vmem:[#allocation35_spill] sm:$0xff] %v11525_v28  ;;  %v4941_v29 = vcombine.low %v11520_v2, %v11525_v28  ;;  %v4962_v63 = vrot.slane %v4940_v24, %v10930_v45  ;;  %v4970_v0 = vcombine.low %v4948_v49, %v4955_v57  ;;  %v4937_v27 = vcombine.low %v4929_v4, %v4936_v34  ;;  %v12780_v49 = vld [vmem:[#allocation22_spill] sm:$0xff] }
 0xe79   :  { %v4969_v38 = vrot.slane %v4941_v29, %v10930_v45  ;;  %v4978_v31 = vrot.slane %v4970_v0, %v10930_v45  ;;  %v4997_v52 = vsel %vm4486_vm9, %v4937_v27, 0.0 }
 0xe7b   :  { %v4971_v9 = vcombine.low %v4962_v63, %v4969_v38 }
 0xe7d   :  { %v4985_v22 = vrot.slane %v4971_v9, %v10930_v45  ;;  %v12782_v45 = vld [vmem:[#allocation31_spill] sm:$0xff] }
 0xe7f   :  { %v4986_v62 = vcombine.low %v4978_v31, %v4985_v22 }
 0xe81   :  { %v5000_v28 = vsel %vm4486_vm9, %v4986_v62, 0.0 }
 0xe82   :  { %5001 = vadd.xlane.f32.xlu1 %v5000_v28 }
 0xe87   :  { %4998 = vadd.xlane.f32.xlu0 %v4997_v52 }
 0xe93   :  { %5725 = vrot.lane.b32.xlu1 %v12780_v49, %s10192_s19 }
 0xe9d   :  { %5722 = vrot.lane.b32.xlu0 %v12780_v49, %s10203_s7 }
 0xea1   :  { %5728 = vrot.lane.b32.xlu0 %v12780_v49, %s10204_s23 }
 0xec8   :  { %v4996_v43 = vpop.xlane.xlu1 %4995 }
 0xec9   :  { %v5042_v42 = vrot.slane %v4996_v43, %v11189_v17  ;;  %v5046_v24 = vrot.slane %v4996_v43, %v11192_v32  ;;  %v5050_v57 = vrot.slane %v4996_v43, %v11195_v44  ;;  %v5054_v29 = vrot.slane %v4996_v43, %v11198_v3 }
 0xeca   :  { %v5058_v52 = vrot.slane %v4996_v43, %v11201_v55  ;;  %v5062_v28 = vrot.slane %v4996_v43, %v11204_v60  ;;  %v5066_v63 = vrot.slane %v4996_v43, %v11207_v58  ;;  %v5070_v0 = vrot.slane %v4996_v43, %v11210_v19 }
 0xecb   :  { %9829 = vrcp.f32 %v5042_v42 }
 0xecc   :  { %9831 = vrcp.f32 %v5046_v24 }
 0xecd   :  { %9833 = vrcp.f32 %v5050_v57 }
 0xece   :  { %9835 = vrcp.f32 %v5054_v29 }
 0xecf   :  { %9837 = vrcp.f32 %v5058_v52 }
 0xed0   :  { %9839 = vrcp.f32 %v5062_v28 }
 0xed1   :  { %9841 = vrcp.f32 %v5066_v63  ;;  %v11556_v63 = vpop.permute.xlu0 %5875 }
 0xed2   :  { %9843 = vrcp.f32 %v5070_v0 }
 0xed5   :  { %v9830_v4 = vpop.eup %9829 }
 0xed6   :  { %v9832_v34 = vpop.eup %9831  ;;  %v5184_v38 = vmul.f32 %v9830_v4, %v11274_v7  ;;  %v12781_v7 = vld [vmem:[#allocation30_spill] sm:$0xff] }
 0xed7   :  { %v9834_v9 = vpop.eup %9833  ;;  %v5186_v31 = vmul.f32 %v9832_v34, %v11280_v46 }
 0xed8   :  { %v9836_v27 = vpop.eup %9835  ;;  %v5188_v22 = vmul.f32 %v9834_v9, %v11282_v13  ;;  %v5239_v62 = vpack.c.bf16 %v5184_v38, %v5184_v38 }
 0xed9   :  { %v9838_v42 = vpop.eup %9837  ;;  %v5190_v24 = vmul.f32 %v9836_v27, %v11284_v20  ;;  %v5240_v43 = vpack.c.bf16 %v5186_v31, %v5186_v31  ;;  %v12783_v20 = vld [vmem:[#allocation32_spill] sm:$0xff] }
 0xeda   :  { %v9840_v57 = vpop.eup %9839  ;;  %v5192_v29 = vmul.f32 %v9838_v42, %v11290_v10  ;;  %v5241_v52 = vpack.c.bf16 %v5188_v22, %v5188_v22  ;;  %v5356_v9 = vunpack.c.l.b16 %v5239_v62 }
 0xedb   :  { %v9842_v28 = vpop.eup %9841  ;;  %v5194_v0 = vmul.f32 %v9840_v57, %v12781_v7  ;;  %v5242_v4 = vpack.c.bf16 %v5190_v24, %v5190_v24  ;;  %v5357_v46 = vunpack.c.l.b16 %v5240_v43 }
 0xedc   :  { %v9844_v34 = vpop.eup %9843  ;;  %v5196_v13 = vmul.f32 %v9842_v28, %v12782_v45  ;;  %v5243_v38 = vpack.c.bf16 %v5192_v29, %v5192_v29  ;;  %v5358_v2 = vunpack.c.l.b16 %v5241_v52 }
 0xedd   :  { %v5198_v31 = vmul.f32 %v9844_v34, %v12783_v20  ;;  %v5244_v27 = vpack.c.bf16 %v5194_v0, %v5194_v0  ;;  %v5359_v16 = vunpack.c.l.b16 %v5242_v4  ;;  %v5364_v10 = vrot.slane %v5357_v46, 7 }
 0xede   :  { %v5245_v22 = vpack.c.bf16 %v5196_v13, %v5196_v13  ;;  %v5366_v42 = vrot.slane %v5358_v2, 6  ;;  %v5360_v24 = vunpack.c.l.b16 %v5243_v38 }
 0xedf   :  { %v4993_v33 = vpop.xlane.xlu0 %4992  ;;  %v5246_v57 = vpack.c.bf16 %v5198_v31, %v5198_v31  ;;  %v5365_v43 = vsel %vm5284_vm10, %v5364_v10, %v5356_v9  ;;  %v5361_v52 = vunpack.c.l.b16 %v5244_v27  ;;  %v5368_v0 = vrot.slane %v5359_v16, 5 }
 0xee0   :  { %v5010_v45 = vrot.slane %v4993_v33, %v11189_v17  ;;  %v5014_v62 = vrot.slane %v4993_v33, %v11192_v32  ;;  %v5018_v29 = vrot.slane %v4993_v33, %v11195_v44  ;;  %v5022_v28 = vrot.slane %v4993_v33, %v11198_v3 }
 0xee1   :  { %v5026_v7 = vrot.slane %v4993_v33, %v11201_v55  ;;  %v5030_v2 = vrot.slane %v4993_v33, %v11204_v60  ;;  %v5362_v4 = vunpack.c.l.b16 %v5245_v22  ;;  %v5367_v46 = vsel %vm5287_vm11, %v5366_v42, %v5365_v43 }
 0xee2   :  { %9845 = vrcp.f32 %v5010_v45  ;;  %v5363_v34 = vunpack.c.l.b16 %v5246_v57  ;;  %v5369_v13 = vsel %vm5290_vm12, %v5368_v0, %v5367_v46  ;;  %v5370_v38 = vrot.slane %v5360_v24, 4 }
 0xee3   :  { %9847 = vrcp.f32 %v5014_v62  ;;  %v5034_v9 = vrot.slane %v4993_v33, %v11207_v58  ;;  %v5372_v20 = vrot.slane %v5361_v52, 3  ;;  %v5038_v31 = vrot.slane %v4993_v33, %v11210_v19 }
 0xee4   :  { %9849 = vrcp.f32 %v5018_v29  ;;  %v5371_v16 = vsel %vm5293_vm13, %v5370_v38, %v5369_v13  ;;  %v5374_v27 = vrot.slane %v5362_v4, 2  ;;  %v5376_v42 = vrot.slane %v5363_v34, 1 }
 0xee5   :  { %9851 = vrcp.f32 %v5022_v28  ;;  %v5373_v10 = vsel %vm5296_vm14, %v5372_v20, %v5371_v16 }
 0xee6   :  { %9853 = vrcp.f32 %v5026_v7  ;;  %v5375_v22 = vsel %vm5299_vm15, %v5374_v27, %v5373_v10 }
 0xee7   :  { %9855 = vrcp.f32 %v5030_v2  ;;  %v5377_v57 = vsel %vm5302_vm2, %v5376_v42, %v5375_v22 }
 0xee8   :  { %9857 = vrcp.f32 %v5034_v9  ;;  %v5378_v24 = vpack.c.b16 %v5377_v57, %v5377_v57 }
 0xee9   :  { %9859 = vrcp.f32 %v5038_v31 }
 0xeea   :  { %9489 = vmatmul.mubr.msk.bf16.vlgmr.msra.gmra.mrb[68].mxu1 %vm4486_vm9, %v5378_v24 }
 0xeeb   :  { %9499 = vmatpush3.bf16.msra.mxu1 %v11412_v50  ;;  %9500 = vmatprep.mubr.msk.bf16.mxu1 %vm10202_vm0, %v12770_v53 }
 0xeec   :  { %v9846_v43 = vpop.eup %9845  ;;  %9510 = vmatprep.subr.bf16.mxu1 %v12770_v53 }
 0xeed   :  { %v9848_v33 = vpop.eup %9847  ;;  %v5168_v45 = vmul.f32 %v9846_v43, %v11334_v59 }
 0xeee   :  { %v9850_v62 = vpop.eup %9849  ;;  %v5170_v29 = vmul.f32 %v9848_v33, %v11368_v14 }
 0xeef   :  { %v9852_v52 = vpop.eup %9851  ;;  %v5172_v28 = vmul.f32 %v9850_v62, %v11373_v15  ;;  %v5231_v7 = vpack.c.bf16 %v5168_v45, %v5168_v45 }
 0xef0   :  { %v9854_v0 = vpop.eup %9853  ;;  %v5174_v2 = vmul.f32 %v9852_v52, %v11383_v36  ;;  %v5232_v4 = vpack.c.bf16 %v5170_v29, %v5170_v29 }
 0xef1   :  { %v9856_v46 = vpop.eup %9855  ;;  %v5176_v59 = vmul.f32 %v9854_v0, %v11392_v37  ;;  %v5233_v50 = vpack.c.bf16 %v5172_v28, %v5172_v28  ;;  %v5275_v16 = vunpack.c.l.b16 %v5231_v7 }
 0xef2   :  { %v9858_v34 = vpop.eup %9857  ;;  %v5178_v13 = vmul.f32 %v9856_v46, %v11400_v47  ;;  %v5234_v38 = vpack.c.bf16 %v5174_v2, %v5174_v2  ;;  %v5276_v9 = vunpack.c.l.b16 %v5232_v4  ;;  %v5882_v4 = vpop.permute.xlu0 %5881 }
 0xef3   :  { %v9860_v14 = vpop.eup %9859  ;;  %v5180_v20 = vmul.f32 %v9858_v34, %v11408_v26  ;;  %v5235_v31 = vpack.c.bf16 %v5176_v59, %v5176_v59  ;;  %v5277_v15 = vunpack.c.l.b16 %v5233_v50  ;;  %v5903_v34 = vcombine.low %v11439_v23, %v5882_v4 }
 0xef4   :  { %v5182_v27 = vmul.f32 %v9860_v14, %v11418_v51  ;;  %v5236_v10 = vpack.c.bf16 %v5178_v13, %v5178_v13  ;;  %v5278_v36 = vunpack.c.l.b16 %v5234_v38  ;;  %v5283_v22 = vrot.slane %v5276_v9, 7 }
 0xef5   :  { %v5237_v42 = vpack.c.bf16 %v5180_v20, %v5180_v20  ;;  %v5279_v57 = vunpack.c.l.b16 %v5235_v31  ;;  %v5286_v37 = vrot.slane %v5277_v15, 6  ;;  %v5904_v13 = vcombine.high %v11439_v23, %v5882_v4 }
 0xef6   :  { %v5238_v24 = vpack.c.bf16 %v5182_v27, %v5182_v27  ;;  %v5280_v43 = vunpack.c.l.b16 %v5236_v10  ;;  %v5285_v47 = vsel %vm5284_vm10, %v5283_v22, %v5275_v16  ;;  %v5289_v33 = vrot.slane %v5278_v36, 5 }
 0xef7   :  { %v5281_v45 = vunpack.c.l.b16 %v5237_v42  ;;  %v5288_v62 = vsel %vm5287_vm11, %v5286_v37, %v5285_v47  ;;  %v5292_v26 = vrot.slane %v5279_v57, 4  ;;  %v5887_v38 = vcombine.low %v12774_v35, %v11556_v63 }
 0xef8   :  { %v5282_v29 = vunpack.c.l.b16 %v5238_v24  ;;  %v5291_v52 = vsel %vm5290_vm12, %v5289_v33, %v5288_v62  ;;  %v5295_v28 = vrot.slane %v5280_v43, 3  ;;  %v5888_v9 = vcombine.high %v12774_v35, %v11556_v63 }
 0xef9   :  { %v5294_v51 = vsel %vm5293_vm13, %v5292_v26, %v5291_v52  ;;  %v5298_v7 = vrot.slane %v5281_v45, 2  ;;  %v5911_v14 = vrot.slane %v5903_v34, %v10410_v18  ;;  %v5918_v20 = vrot.slane %v5904_v13, %v10410_v18 }
 0xefa   :  { %v5297_v0 = vsel %vm5296_vm14, %v5295_v28, %v5294_v51  ;;  %v5301_v2 = vrot.slane %v5282_v29, 1  ;;  %v5895_v23 = vrot.slane %v5887_v38, %v10410_v18  ;;  %v5902_v31 = vrot.slane %v5888_v9, %v10410_v18 }
 0xefb   :  { %v5300_v46 = vsel %vm5299_vm15, %v5298_v7, %v5297_v0 }
 0xefc   :  { %v5303_v59 = vsel %vm5302_vm2, %v5301_v2, %v5300_v46  ;;  %v5919_v16 = vcombine.low %v5895_v23, %v5911_v14  ;;  %v5920_v15 = vcombine.high %v5895_v23, %v5911_v14  ;;  %v5935_v27 = vcombine.low %v5902_v31, %v5918_v20 }
 0xefd   :  { %v5304_v50 = vpack.c.b16 %v5303_v59, %v5303_v59  ;;  %v5936_v10 = vcombine.high %v5902_v31, %v5918_v20 }
 0xefe   :  { %v5927_v35 = vrot.slane %v5919_v16, %v10413_v25  ;;  %v5943_v63 = vrot.slane %v5935_v27, %v10413_v25 }
 0xeff   :  { %9483 = vmatmul.mubr.msk.bf16.vlgmr.msra.gmra.mrb[40].mxu0 %vm4486_vm9, %v5304_v50  ;;  %v5950_v36 = vrot.slane %v5936_v10, %v10413_v25 }
 0xf00   :  { %9493 = vmatpush3.bf16.msra.mxu0 %v11410_v5  ;;  %9494 = vmatprep.mubr.msk.bf16.mxu0 %vm10202_vm0, %v12770_v53  ;;  %v5934_v5 = vrot.slane %v5920_v15, %v10413_v25 }
 0xf01   :  { %9504 = vmatprep.subr.bf16.mxu0 %v12770_v53  ;;  %v6039_v57 = vcombine.low %v5943_v63, %v5950_v36  ;;  %v8999_v37 = vcombine.high %v5943_v63, %v5950_v36 }
 0xf02   :  { %v6023_v22 = vcombine.low %v5927_v35, %v5934_v5  ;;  %v8998_v42 = vcombine.high %v5927_v35, %v5934_v5 }
 0xf03   :  { %v11622_v47 = vrot.slane %v6039_v57, %v10410_v18  ;;  %v11625_v33 = vrot.slane %v8999_v37, %v10410_v18 }
 0xf04   :  { %v11616_v24 = vrot.slane %v6023_v22, %v10410_v18  ;;  %v11619_v43 = vrot.slane %v8998_v42, %v10410_v18 }
 0xf05   :  { %v6071_v7 = vcombine.low %v11622_v47, %v11625_v33  ;;  %v6072_v37 = vcombine.high %v11622_v47, %v11625_v33 }
 0xf06   :  { %v6055_v51 = vcombine.low %v11616_v24, %v11619_v43  ;;  %v6056_v5 = vcombine.high %v11616_v24, %v11619_v43 }
 0xf07   :  { %v11647_v9 = vrot.slane %v6071_v7, %v10413_v25 }
 0xf08   :  { %v11644_v38 = vrot.slane %v6055_v51, %v10413_v25 }
 0xf0a   :  { %v6087_v35 = vcombine.low %v11644_v38, %v11647_v9 }
 0xf0f   :  { %v11627_v45 = vpop.xlane.xlu1 %5001 }
 0xf10   :  { %v5106_v14 = vrot.slane %v11627_v45, %v11189_v17  ;;  %v5110_v20 = vrot.slane %v11627_v45, %v11192_v32  ;;  %v5118_v10 = vrot.slane %v11627_v45, %v11198_v3  ;;  %v5122_v63 = vrot.slane %v11627_v45, %v11201_v55 }
 0xf11   :  { %v5126_v42 = vrot.slane %v11627_v45, %v11204_v60  ;;  %v5130_v57 = vrot.slane %v11627_v45, %v11207_v58 }
 0xf13   :  { %v5726_v2 = vpop.permute.xlu1 %5725 }
 0xf14   :  { %v4999_v62 = vpop.xlane.xlu0 %4998  ;;  %v5731_v59 = vcombine.low %v12780_v49, %v5726_v2  ;;  %v5732_v34 = vcombine.high %v12780_v49, %v5726_v2  ;;  %v5114_v49 = vrot.slane %v11627_v45, %v11195_v44 }
 0xf15   :  { %v5074_v26 = vrot.slane %v4999_v62, %v11189_v17  ;;  %v5078_v29 = vrot.slane %v4999_v62, %v11192_v32  ;;  %v5082_v52 = vrot.slane %v4999_v62, %v11195_v44  ;;  %v5086_v28 = vrot.slane %v4999_v62, %v11198_v3 }
 0xf16   :  { %v5090_v0 = vrot.slane %v4999_v62, %v11201_v55  ;;  %v5094_v4 = vrot.slane %v4999_v62, %v11204_v60  ;;  %v5098_v50 = vrot.slane %v4999_v62, %v11207_v58  ;;  %v5102_v13 = vrot.slane %v4999_v62, %v11210_v19 }
 0xf17   :  { %9861 = vrcp.f32 %v5074_v26  ;;  %v5739_v23 = vrot.slane %v5731_v59, %v10410_v18  ;;  %v5746_v16 = vrot.slane %v5732_v34, %v10410_v18 }
 0xf18   :  { %9863 = vrcp.f32 %v5078_v29  ;;  %v5723_v46 = vpop.permute.xlu0 %5722 }
 0xf19   :  { %9865 = vrcp.f32 %v5082_v52  ;;  %v5134_v52 = vrot.slane %v11627_v45, %v11210_v19 }
 0xf1a   :  { %9867 = vrcp.f32 %v5086_v28 }
 0xf1b   :  { %9869 = vrcp.f32 %v5090_v0 }
 0xf1c   :  { %9871 = vrcp.f32 %v5094_v4  ;;  %v5729_v31 = vpop.permute.xlu0 %5728 }
 0xf1d   :  { %9873 = vrcp.f32 %v5098_v50  ;;  %v5747_v15 = vcombine.low %v5723_v46, %v5729_v31  ;;  %v5748_v27 = vcombine.high %v5723_v46, %v5729_v31 }
 0xf1e   :  { %9875 = vrcp.f32 %v5102_v13 }
 0xf1f   :  { %9877 = vrcp.f32 %v5106_v14  ;;  %v5755_v36 = vrot.slane %v5747_v15, %v10410_v18  ;;  %v5762_v22 = vrot.slane %v5748_v27, %v10410_v18 }
 0xf20   :  { %9879 = vrcp.f32 %v5110_v20 }
 0xf21   :  { %v9862_v62 = vpop.eup %9861  ;;  %9881 = vrcp.f32 %v5114_v49  ;;  %v5763_v24 = vcombine.low %v5739_v23, %v5755_v36  ;;  %v5764_v43 = vcombine.high %v5739_v23, %v5755_v36  ;;  %v5779_v26 = vcombine.low %v5746_v16, %v5762_v22 }
 0xf22   :  { %v9864_v29 = vpop.eup %9863  ;;  %9883 = vrcp.f32 %v5118_v10  ;;  %v5780_v28 = vcombine.high %v5746_v16, %v5762_v22  ;;  %v5200_v51 = vmul.f32 %v9862_v62, %v11475_v30  ;;  %v12784_v16 = vcombine.low %v11398_v40, %v11406_v39 }
 0xf23   :  { %v9866_v7 = vpop.eup %9865  ;;  %v5202_v0 = vmul.f32 %v9864_v29, %v11477_v61  ;;  %9885 = vrcp.f32 %v5122_v63  ;;  %v5771_v2 = vrot.slane %v5763_v24, %v10413_v25  ;;  %v5778_v47 = vrot.slane %v5764_v43, %v10413_v25 }
 0xf24   :  { %v9868_v33 = vpop.eup %9867  ;;  %9887 = vrcp.f32 %v5126_v42  ;;  %v5787_v4 = vrot.slane %v5779_v26, %v10413_v25  ;;  %v5794_v46 = vrot.slane %v5780_v28, %v10413_v25  ;;  %v5204_v45 = vmul.f32 %v9866_v7, %v11479_v48 }
 0xf25   :  { %v9870_v59 = vpop.eup %9869  ;;  %9889 = vrcp.f32 %v5130_v57  ;;  %v5799_v50 = vcombine.low %v5771_v2, %v5778_v47  ;;  %v8996_v30 = vcombine.high %v5771_v2, %v5778_v47  ;;  %v5206_v34 = vmul.f32 %v9868_v33, %v11481_v54 }
 0xf26   :  { %v9872_v61 = vpop.eup %9871  ;;  %9891 = vrcp.f32 %v5134_v52  ;;  %v5815_v13 = vcombine.low %v5787_v4, %v5794_v46  ;;  %v8997_v14 = vcombine.high %v5787_v4, %v5794_v46  ;;  %v5208_v20 = vmul.f32 %v9870_v59, %v11483_v41 }
 0xf27   :  { %v9874_v49 = vpop.eup %9873  ;;  %v11685_v23 = vrot.slane %v5799_v50, %v10410_v18  ;;  %v11688_v31 = vrot.slane %v8996_v30, %v10410_v18  ;;  %v5210_v48 = vmul.f32 %v9872_v61, %v11485_v11  ;;  %v11694_v15 = vpack.c.bf16 %v12784_v16, %v6087_v35 }
 0xf28   :  { %v9876_v54 = vpop.eup %9875  ;;  %v11697_v27 = vrot.slane %v5815_v13, %v10410_v18  ;;  %v11700_v41 = vrot.slane %v8997_v14, %v10410_v18  ;;  %v5212_v10 = vmul.f32 %v9874_v49, %v11491_v12  ;;  %v5248_v63 = vpack.c.bf16 %v5202_v0, %v5202_v0 }
 0xf29   :  { %v9878_v36 = vpop.eup %9877  ;;  %v5214_v22 = vmul.f32 %v9876_v54, %v11495_v56  ;;  %v5247_v42 = vpack.c.bf16 %v5200_v51, %v5200_v51  ;;  %v5249_v11 = vpack.c.bf16 %v5204_v45, %v5204_v45  ;;  %v11705_v57 = vrot.slane %v6056_v5, %v10413_v25 }
 0xf2a   :  { %v9880_v35 = vpop.eup %9879  ;;  %v5831_v62 = vcombine.low %v11685_v23, %v11688_v31  ;;  %v5250_v24 = vpack.c.bf16 %v5206_v34, %v5206_v34  ;;  %v5251_v43 = vpack.c.bf16 %v5208_v20, %v5208_v20  ;;  %v11710_v26 = vrot.slane %v6072_v37, %v10413_v25 }
 0xf2b   :  { %v9882_v29 = vpop.eup %9881  ;;  %v5847_v12 = vcombine.low %v11697_v27, %v11700_v41  ;;  %v5252_v52 = vpack.c.bf16 %v5210_v48, %v5210_v48  ;;  %v5253_v56 = vpack.c.bf16 %v5212_v10, %v5212_v10  ;;  %v5254_v28 = vpack.c.bf16 %v5214_v22, %v5214_v22  ;;  %v12785_v10 = vld [vmem:[#allocation26_spill] sm:$0xff] }
 0xf2c   :  { %v9884_v51 = vpop.eup %9883  ;;  %v5218_v5 = vmul.f32 %v9880_v35, %v11501_v1  ;;  %v5431_v7 = vunpack.c.l.b16 %v5248_v63  ;;  %v5432_v0 = vunpack.c.l.b16 %v5249_v11  ;;  %v5433_v2 = vunpack.c.l.b16 %v5250_v24  ;;  %v12787_v35 = vld [vmem:[#allocation27_spill] sm:$0xff] }
 0xf2d   :  { %v9886_v47 = vpop.eup %9885  ;;  %v5430_v33 = vunpack.c.l.b16 %v5247_v42  ;;  %v5434_v4 = vunpack.c.l.b16 %v5251_v43  ;;  %v5435_v46 = vunpack.c.l.b16 %v5252_v52  ;;  %v5436_v45 = vunpack.c.l.b16 %v5253_v56  ;;  %v12786_v42 = vld [vmem:[#allocation21_spill] sm:$0xff] }
 0xf2e   :  { %v9888_v37 = vpop.eup %9887  ;;  %v5437_v59 = vunpack.c.l.b16 %v5254_v28  ;;  %v5438_v50 = vrot.slane %v5431_v7, 7  ;;  %v5440_v30 = vrot.slane %v5432_v0, 6  ;;  %v5216_v34 = vmul.f32 %v9878_v36, %v11497_v21  ;;  %v12788_v36 = vld [vmem:[#allocation35_spill] sm:$0xff] }
 0xf2f   :  { %v9890_v61 = vpop.eup %9889  ;;  %v5442_v13 = vrot.slane %v5433_v2, 5  ;;  %v5444_v14 = vrot.slane %v5434_v4, 4  ;;  %v5446_v20 = vrot.slane %v5435_v46, 3  ;;  %v5448_v49 = vrot.slane %v5436_v45, 2 }
 0xf30   :  { %v9892_v1 = vpop.eup %9891  ;;  %v5439_v48 = vsel %vm5284_vm10, %v5438_v50, %v5430_v33  ;;  %v5220_v16 = vmul.f32 %v9882_v29, %v11506_v6  ;;  %v5222_v54 = vmul.f32 %v9884_v51, %v11511_v8  ;;  %v5224_v63 = vmul.f32 %v9886_v47, %v12785_v10 }
 0xf31   :  { %v5441_v22 = vsel %vm5287_vm11, %v5440_v30, %v5439_v48  ;;  %v5226_v11 = vmul.f32 %v9888_v37, %v12786_v42  ;;  %v5228_v21 = vmul.f32 %v9890_v61, %v12787_v35  ;;  %v5230_v24 = vmul.f32 %v9892_v1, %v12788_v36  ;;  %v12789_v36 = vld [vmem:[#allocation33_spill] sm:$0xff] }
 0xf32   :  { %v5443_v43 = vsel %vm5290_vm12, %v5442_v13, %v5441_v22  ;;  %v5255_v52 = vpack.c.bf16 %v5216_v34, %v5216_v34  ;;  %v5256_v56 = vpack.c.bf16 %v5218_v5, %v5218_v5  ;;  %v5257_v28 = vpack.c.bf16 %v5220_v16, %v5220_v16 }
 0xf33   :  { %v5445_v7 = vsel %vm5293_vm13, %v5444_v14, %v5443_v43  ;;  %v5258_v6 = vpack.c.bf16 %v5222_v54, %v5222_v54  ;;  %v5259_v29 = vpack.c.bf16 %v5224_v63, %v5224_v63  ;;  %v5260_v8 = vpack.c.bf16 %v5226_v11, %v5226_v11 }
 0xf34   :  { %v5447_v51 = vsel %vm5296_vm14, %v5446_v20, %v5445_v7  ;;  %v5450_v0 = vrot.slane %v5437_v59, 1  ;;  %v5261_v2 = vpack.c.bf16 %v5228_v21, %v5228_v21  ;;  %v5262_v47 = vpack.c.bf16 %v5230_v24, %v5230_v24 }
 0xf35   :  { %v5449_v33 = vsel %vm5299_vm15, %v5448_v49, %v5447_v51  ;;  %v5505_v4 = vunpack.c.l.b16 %v5256_v56  ;;  %v5506_v46 = vunpack.c.l.b16 %v5257_v28  ;;  %v5507_v45 = vunpack.c.l.b16 %v5258_v6 }
 0xf36   :  { %v5451_v37 = vsel %vm5302_vm2, %v5450_v0, %v5449_v33  ;;  %v5504_v50 = vunpack.c.l.b16 %v5255_v52  ;;  %v5508_v5 = vunpack.c.l.b16 %v5259_v29  ;;  %v5509_v34 = vunpack.c.l.b16 %v5260_v8 }
 0xf37   :  { %v5452_v30 = vpack.c.b16 %v5451_v37, %v5451_v37  ;;  %v5512_v61 = vrot.slane %v5505_v4, 7  ;;  %v5514_v13 = vrot.slane %v5506_v46, 6  ;;  %v6463_v14 = vsel %vm947_vm1, %v11694_v15, 0 }
 0xf38   :  { %v5510_v20 = vunpack.c.l.b16 %v5261_v2  ;;  %v5511_v59 = vunpack.c.l.b16 %v5262_v47  ;;  %v6089_v1 = vcombine.low %v11705_v57, %v11710_v26  ;;  %v5516_v48 = vrot.slane %v5507_v45, 5 }
 0xf39   :  { %9495 = vmatmul.mubr.msk.bf16.vlgmr.msra.gmra.mrb[44].mxu0 %vm4486_vm9, %v5452_v30  ;;  %v5513_v49 = vsel %vm5284_vm10, %v5512_v61, %v5504_v50  ;;  %v5839_v16 = vrot.slane %v5831_v62, %v10413_v25  ;;  %v5855_v15 = vrot.slane %v5847_v12, %v10413_v25  ;;  %v5832_v54 = vcombine.high %v11685_v23, %v11688_v31 }
 0xf3a   :  { %9505 = vmatpush3.bf16.xpose.msra.mxu0 %v6463_v14  ;;  %v5515_v10 = vsel %vm5287_vm11, %v5514_v13, %v5513_v49  ;;  %v5518_v63 = vrot.slane %v5508_v5, 4  ;;  %v6088_v22 = vcombine.high %v11644_v38, %v11647_v9  ;;  %9506 = vmatprep.mubr.msk.bf16.mxu0 %vm10202_vm0, %v12770_v53  ;;  %v5848_v62 = vcombine.high %v11697_v27, %v11700_v41  ;;  %v12790_v38 = vld [vmem:[#allocation34_spill] sm:$0xff] }
 0xf3b   :  { %v5517_v42 = vsel %vm5290_vm12, %v5516_v48, %v5515_v10  ;;  %v5520_v11 = vrot.slane %v5509_v34, 3  ;;  %9516 = vmatprep.subr.bf16.mxu0 %v12770_v53  ;;  %v5863_v12 = vcombine.low %v5839_v16, %v5855_v15  ;;  %v5522_v31 = vrot.slane %v5510_v20, 2 }
 0xf3c   :  { %v5519_v23 = vsel %vm5293_vm13, %v5518_v63, %v5517_v42  ;;  %v5524_v21 = vrot.slane %v5511_v59, 1  ;;  %v12791_v9 = vcombine.low %v12789_v36, %v12790_v38  ;;  %v12792_v27 = vcombine.high %v11398_v40, %v11406_v39 }
 0xf3d   :  { %v5521_v35 = vsel %vm5296_vm14, %v5520_v11, %v5519_v23  ;;  %v6451_v56 = vpack.c.bf16 %v5863_v12, %v5863_v12  ;;  %v5846_v28 = vrot.slane %v5832_v54, %v10413_v25  ;;  %v5862_v7 = vrot.slane %v5848_v62, %v10413_v25  ;;  %v11795_v62 = vld [vmem:[%s12707_s8 + $0x1] sm:$0x1] }
 0xf3e   :  { %v6457_v24 = vpack.c.bf16 %v12791_v9, %v6089_v1  ;;  %v5523_v43 = vsel %vm5299_vm15, %v5522_v31, %v5521_v35  ;;  %v6456_v41 = vpack.c.bf16 %v12792_v27, %v6088_v22  ;;  %v6090_v40 = vcombine.high %v11705_v57, %v11710_v26  ;;  %v12794_v23 = vld [vmem:[#allocation25_spill] sm:$0xff] }
 0xf3f   :  { %v5525_v52 = vsel %vm5302_vm2, %v5524_v21, %v5523_v43  ;;  %v5865_v39 = vcombine.low %v5846_v28, %v5862_v7  ;;  %v5864_v51 = vcombine.high %v5839_v16, %v5855_v15  ;;  %v12793_v0 = vcombine.high %v12789_v36, %v12790_v38 }
 0xf40   :  { %v5526_v6 = vpack.c.b16 %v5525_v52, %v5525_v52  ;;  %v6555_v29 = vsel %vm947_vm1, %v6457_v24, 0  ;;  %v6509_v8 = vsel %vm947_vm1, %v6456_v41, 0  ;;  %v5866_v26 = vcombine.high %v5846_v28, %v5862_v7 }
 0xf41   :  { %9507 = vmatmul.mubr.msk.bf16.vlgmr.msra.gmra.mrb[48].mxu0 %vm947_vm1, %v6451_v56  ;;  %v6458_v2 = vpack.c.bf16 %v12793_v0, %v6090_v40  ;;  %v6453_v47 = vpack.c.bf16 %v5865_v39, %v5865_v39  ;;  %v6452_v33 = vpack.c.bf16 %v5864_v51, %v5864_v51  ;;  %vm123_vm3 = vcmp.gt.f32.partialorder %v11795_v62, 0.0 }
 0xf42   :  { %9501 = vmatmul.mubr.msk.bf16.vlgmr.msra.gmra.mrb[72].mxu1 %vm4486_vm9, %v5526_v6  ;;  %9517 = vmatpush3.bf16.xpose.msra.mxu0 %v6555_v29  ;;  %v6454_v4 = vpack.c.bf16 %v5866_v26, %v5866_v26 }
 0xf43   :  { %9511 = vmatpush3.bf16.xpose.msra.mxu1 %v6509_v8  ;;  %9512 = vmatprep.mubr.msk.bf16.mxu1 %vm10202_vm0, %v12770_v53  ;;  %v6601_v57 = vsel %vm947_vm1, %v6458_v2, 0 }
 0xf44   :  { %9522 = vmatprep.subr.bf16.mxu1 %v12770_v53  ;;  %9518 = vmatprep.mubr.msk.bf16.mxu0 %vm10202_vm0, %v12770_v53 }
 0xf45   :  { %9528 = vmatprep.subr.bf16.mxu0 %v12770_v53 }
 0xf49   :  { %9519 = vmatmul.mubr.msk.bf16.vlgmr.msra.gmra.mrb[52].mxu0 %vm947_vm1, %v6453_v47 }
 0xf4a   :  { %9513 = vmatmul.mubr.msk.bf16.vlgmr.msra.gmra.mrb[76].mxu1 %vm947_vm1, %v6452_v33  ;;  %9530 = vmatprep.mubr.msk.bf16.mxu0 %vm10202_vm0, %v12770_v53 }
 0xf4b   :  { %9523 = vmatpush3.bf16.xpose.msra.mxu1 %v6601_v57  ;;  %9524 = vmatprep.mubr.msk.bf16.mxu1 %vm10202_vm0, %v12770_v53 }
 0xf4c   :  { %9534 = vmatprep.subr.bf16.mxu1 %v12770_v53 }
 0xf52   :  { %9525 = vmatmul.mubr.msk.bf16.vlgmr.msra.gmra.mrb[80].mxu1 %vm947_vm1, %v6454_v4 }
 0xf53   :  { %9536 = vmatprep.mubr.msk.bf16.mxu1 %vm10202_vm0, %v12770_v53 }
 0xfbd   :  { %v5416_v46 = vpop.f32.mrb[68].mxu1 }
 0xfbe   :  { %v9490_v45 = vpop.f32.mrb[69].mxu1 }
 0xfbf   :  { %v5419_v37 = vpop.f32.mrb[70].mxu1 }
 0xfc0   :  { %v9491_v50 = vpop.f32.mrb[71].mxu1 }
 0xfd2   :  { %v5342_v5 = vpop.f32.mrb[40].mxu0 }
 0xfd3   :  { %v9484_v30 = vpop.f32.mrb[41].mxu0 }
 0xfd4   :  { %v5345_v34 = vpop.f32.mrb[42].mxu0 }
 0xfd5   :  { %v9485_v61 = vpop.f32.mrb[43].mxu0 }
0x100c   :  { %v5490_v13 = vpop.f32.mrb[44].mxu0 }
0x100d   :  { %v5570_v14 = vcombine.low %v5342_v5, %v5490_v13  ;;  %v5571_v20 = vcombine.high %v5342_v5, %v5490_v13  ;;  %v9496_v59 = vpop.f32.mrb[45].mxu0 }
0x100e   :  { %v5493_v1 = vpop.f32.mrb[46].mxu0 }
0x100f   :  { %v9497_v49 = vpop.f32.mrb[47].mxu0  ;;  %v5578_v21 = vrot.slane %v5570_v14, %v10410_v18  ;;  %v5585_v36 = vrot.slane %v5571_v20, %v10410_v18 }
0x1014   :  { %v6499_v48 = vpop.f32.mrb[48].mxu0 }
0x1015   :  { %v5564_v16 = vpop.f32.mrb[72].mxu1  ;;  %v6643_v15 = vmul.f32 0.17677669, %v6499_v48  ;;  %v9508_v54 = vpop.f32.mrb[49].mxu0 }
0x1016   :  { %v5586_v10 = vcombine.low %v5416_v46, %v5564_v16  ;;  %v5587_v63 = vcombine.high %v5416_v46, %v5564_v16  ;;  %v9502_v22 = vpop.f32.mrb[73].mxu1  ;;  %v6502_v42 = vpop.f32.mrb[50].mxu0 }
0x1017   :  { %v5567_v11 = vpop.f32.mrb[74].mxu1  ;;  %v6653_v12 = vcombine.high %v6643_v15, %v6643_v15  ;;  %v6660_v31 = vrot.slane %v6643_v15, %v12794_v23  ;;  %v9509_v35 = vpop.f32.mrb[51].mxu0 }
0x1018   :  { %v5594_v38 = vrot.slane %v5586_v10, %v10410_v18  ;;  %v5601_v9 = vrot.slane %v5587_v63, %v10410_v18  ;;  %v9503_v24 = vpop.f32.mrb[75].mxu1 }
0x1019   :  { %v6667_v43 = vrot.slane %v6653_v12, %v12794_v23  ;;  %v6668_v27 = vcombine.high %v6660_v31, %v6660_v31  ;;  %v6676_v41 = vrot.slane %v6660_v31, %v12794_v23 }
0x101a   :  { %v5602_v52 = vcombine.low %v5578_v21, %v5594_v38  ;;  %v5603_v56 = vcombine.high %v5578_v21, %v5594_v38  ;;  %v5618_v28 = vcombine.low %v5585_v36, %v5601_v9  ;;  %v5619_v7 = vcombine.high %v5585_v36, %v5601_v9 }
0x101b   :  { %v6669_v6 = vcombine.high %v6667_v43, %v6667_v43  ;;  %v6683_v29 = vrot.slane %v6667_v43, %v12794_v23  ;;  %v6690_v8 = vrot.slane %v6668_v27, %v12794_v23  ;;  %v6698_v40 = vcombine.high %v6676_v41, %v6676_v41 }
0x101c   :  { %v5610_v39 = vrot.slane %v5602_v52, %v10413_v25  ;;  %v5617_v51 = vrot.slane %v5603_v56, %v10413_v25  ;;  %v11810_v0 = vrot.slane %v5618_v28, %v10413_v25  ;;  %v11813_v2 = vrot.slane %v5619_v7, %v10413_v25  ;;  %v6591_v47 = vpop.f32.mrb[52].mxu0 }
0x101d   :  { %v6697_v33 = vrot.slane %v6669_v6, %v12794_v23  ;;  %v6699_v57 = vcombine.high %v6683_v29, %v6683_v29  ;;  %v6700_v26 = vcombine.high %v6690_v8, %v6690_v8  ;;  %v6545_v4 = vpop.f32.mrb[76].mxu1  ;;  %v9520_v46 = vpop.f32.mrb[53].mxu0  ;;  %v11822_v13 = vsel %vm123_vm3, %v6676_v41, -1e+30 }
0x101e   :  { %v5638_v45 = vcombine.low %v5610_v39, %v5617_v51  ;;  %v8994_v37 = vcombine.high %v5610_v39, %v5617_v51  ;;  %v5654_v50 = vcombine.low %v11810_v0, %v11813_v2  ;;  %v9514_v30 = vpop.f32.mrb[77].mxu1  ;;  %v6594_v34 = vpop.f32.mrb[54].mxu0  ;;  %v11826_v14 = vsel %vm123_vm3, %v6690_v8, -1e+30 }
0x101f   :  { %v6701_v61 = vcombine.high %v6697_v33, %v6697_v33  ;;  %v11830_v20 = vsel %vm123_vm3, %v6700_v26, -1e+30  ;;  %v11834_v59 = vsel %vm123_vm3, %v6698_v40, -1e+30  ;;  %v11838_v1 = vsel %vm123_vm3, %v6683_v29, -1e+30 }
0x1020   :  { %v11842_v49 = vsel %vm123_vm3, %v6697_v33, -1e+30  ;;  %v6945_v48 = vcombine.low %v11822_v13, %v11826_v14  ;;  %v6946_v16 = vcombine.low %v11834_v59, %v11830_v20  ;;  %v6644_v54 = vmul.f32 0.17677669, %v6545_v4  ;;  %v6548_v10 = vpop.f32.mrb[78].mxu1  ;;  %v9521_v22 = vpop.f32.mrb[55].mxu0 }
0x1021   :  { %v6947_v15 = vcombine.low %v11838_v1, %v11842_v49  ;;  %v6645_v63 = vmul.f32 0.17677669, %v6591_v47  ;;  %v11852_v42 = vsel %vm123_vm3, %v6699_v57, -1e+30  ;;  %v9515_v11 = vpop.f32.mrb[79].mxu1  ;;  %v11862_v35 = vrot.slane %v5638_v45, %v10410_v18 }
0x1022   :  { %v11856_v12 = vsel %vm123_vm3, %v6701_v61, -1e+30  ;;  %v11859_v31 = vrot.slane %v6945_v48, %v12794_v23  ;;  %v6702_v21 = vcombine.high %v6644_v54, %v6644_v54  ;;  %v6709_v36 = vrot.slane %v6644_v54, %v12794_v23 }
0x1023   :  { %v6751_v38 = vcombine.high %v6645_v63, %v6645_v63  ;;  %v6758_v9 = vrot.slane %v6645_v63, %v12794_v23  ;;  %v6948_v24 = vcombine.low %v11852_v42, %v11856_v12  ;;  %v6962_v43 = vrot.slane %v6946_v16, %v12794_v23 }
0x1024   :  { %v6969_v27 = vrot.slane %v6947_v15, %v12794_v23  ;;  %v11871_v41 = vrot.slane %v8994_v37, %v10410_v18  ;;  %v6716_v52 = vrot.slane %v6702_v21, %v12794_v23  ;;  %v6717_v56 = vcombine.high %v6709_v36, %v6709_v36 }
0x1025   :  { %v6725_v28 = vrot.slane %v6709_v36, %v12794_v23  ;;  %v6765_v7 = vrot.slane %v6751_v38, %v12794_v23  ;;  %v6637_v6 = vpop.f32.mrb[80].mxu1  ;;  %v6766_v29 = vcombine.high %v6758_v9, %v6758_v9  ;;  %v6774_v8 = vrot.slane %v6758_v9, %v12794_v23 }
0x1026   :  { %v6646_v40 = vmul.f32 0.17677669, %v6637_v6  ;;  %v9526_v39 = vpop.f32.mrb[81].mxu1  ;;  %v11878_v51 = vrot.slane %v5654_v50, %v10410_v18  ;;  %v6718_v47 = vcombine.high %v6716_v52, %v6716_v52  ;;  %v6732_v33 = vrot.slane %v6716_v52, %v12794_v23 }
0x1027   :  { %v6739_v57 = vrot.slane %v6717_v56, %v12794_v23  ;;  %v6747_v26 = vcombine.high %v6725_v28, %v6725_v28  ;;  %v6640_v4 = vpop.f32.mrb[82].mxu1  ;;  %v6767_v46 = vcombine.high %v6765_v7, %v6765_v7  ;;  %v6781_v45 = vrot.slane %v6765_v7, %v12794_v23 }
0x1028   :  { %v6788_v37 = vrot.slane %v6766_v29, %v12794_v23  ;;  %v9527_v30 = vpop.f32.mrb[83].mxu1  ;;  %v6976_v34 = vrot.slane %v6948_v24, %v12794_v23  ;;  %v6746_v61 = vrot.slane %v6718_v47, %v12794_v23  ;;  %v6748_v48 = vcombine.high %v6732_v33, %v6732_v33 }
0x1029   :  { %v6749_v50 = vcombine.high %v6739_v57, %v6739_v57  ;;  %v11888_v16 = vsel %vm123_vm3, %v6739_v57, -1e+30  ;;  %v11892_v15 = vsel %vm123_vm3, %v6725_v28, -1e+30  ;;  %v11896_v54 = vsel %vm123_vm3, %v6747_v26, -1e+30 }
0x102a   :  { %v11900_v10 = vsel %vm123_vm3, %v6732_v33, -1e+30  ;;  %v6795_v63 = vrot.slane %v6767_v46, %v12794_v23  ;;  %v6750_v22 = vcombine.high %v6746_v61, %v6746_v61  ;;  %v11909_v21 = vsel %vm123_vm3, %v6746_v61, -1e+30 }
0x102b   :  { %v11905_v11 = vsel %vm123_vm3, %v6749_v50, -1e+30  ;;  %v6994_v36 = vcombine.low %v11892_v15, %v11888_v16  ;;  %v11915_v38 = vsel %vm123_vm3, %v6748_v48, -1e+30  ;;  %v6796_v24 = vcombine.high %v6774_v8, %v6774_v8 }
0x102c   :  { %v6995_v9 = vcombine.low %v11896_v54, %v11905_v11  ;;  %v6797_v52 = vcombine.high %v6781_v45, %v6781_v45  ;;  %v6996_v56 = vcombine.low %v11900_v10, %v11909_v21  ;;  %v6798_v28 = vcombine.high %v6788_v37, %v6788_v37 }
0x102d   :  { %v11923_v7 = vsel %vm123_vm3, %v6774_v8, -1e+30  ;;  %v11927_v6 = vsel %vm123_vm3, %v6788_v37, -1e+30  ;;  %v6799_v29 = vcombine.high %v6795_v63, %v6795_v63  ;;  %v11931_v39 = vsel %vm123_vm3, %v6796_v24, -1e+30 }
0x102e   :  { %v11935_v47 = vsel %vm123_vm3, %v6781_v45, -1e+30  ;;  %v11939_v33 = vsel %vm123_vm3, %v6795_v63, -1e+30  ;;  %v11943_v8 = vsel %vm123_vm3, %v6798_v28, -1e+30  ;;  %v7043_v26 = vcombine.low %v11923_v7, %v11927_v6 }
0x102f   :  { %12795 = vst [vmem:[#allocation22_spill] sm:$0xff] %v11939_v33  ;;  %v11947_v57 = vsel %vm123_vm3, %v6797_v52, -1e+30  ;;  %v6800_v4 = vcombine.high %v6646_v40, %v6646_v40  ;;  %v7045_v46 = vcombine.low %v11935_v47, %v11939_v33  ;;  %v6807_v45 = vrot.slane %v6646_v40, %v12794_v23 }
0x1030   :  { %v6977_v37 = vcombine.low %v11859_v31, %v6962_v43  ;;  %v6978_v30 = vcombine.low %v6969_v27, %v6976_v34  ;;  %v7044_v61 = vcombine.low %v11931_v39, %v11943_v8  ;;  %v11960_v50 = vsel %vm123_vm3, %v6750_v22, -1e+30 }
0x1031   :  { %v6814_v48 = vrot.slane %v6800_v4, %v12794_v23  ;;  %v7004_v63 = vrot.slane %v6994_v36, %v12794_v23  ;;  %v6815_v24 = vcombine.high %v6807_v45, %v6807_v45  ;;  %v6823_v52 = vrot.slane %v6807_v45, %v12794_v23 }
0x1032   :  { %v6985_v28 = vrot.slane %v6977_v37, %v12794_v23  ;;  %v6992_v40 = vrot.slane %v6978_v30, %v12794_v23  ;;  %v6997_v27 = vcombine.low %v11915_v38, %v11960_v50  ;;  %v7011_v34 = vrot.slane %v6995_v9, %v12794_v23 }
0x1033   :  { %v6816_v31 = vcombine.high %v6814_v48, %v6814_v48  ;;  %v6830_v43 = vrot.slane %v6814_v48, %v12794_v23  ;;  %v6837_v22 = vrot.slane %v6815_v24, %v12794_v23  ;;  %v6845_v4 = vcombine.high %v6823_v52, %v6823_v52 }
0x1034   :  { %v6993_v5 = vcombine.low %v6985_v28, %v6992_v40  ;;  %v7018_v36 = vrot.slane %v6996_v56, %v12794_v23  ;;  %v11975_v37 = vsel %vm123_vm3, %v6823_v52, -1e+30  ;;  %v7025_v30 = vrot.slane %v6997_v27, %v12794_v23 }
0x1035   :  { %v6844_v45 = vrot.slane %v6816_v31, %v12794_v23  ;;  %v6846_v53 = vcombine.high %v6830_v43, %v6830_v43  ;;  %v6847_v48 = vcombine.high %v6837_v22, %v6837_v22  ;;  %v11980_v33 = vsel %vm123_vm3, %v6837_v22, -1e+30 }
0x1036   :  { %12796 = vst [vmem:[#allocation30_spill] sm:$0xff] %v11980_v33  ;;  %v11984_v9 = vsel %vm123_vm3, %v6830_v43, -1e+30  ;;  %v7145_v56 = vsel %vm4486_vm9, %v6993_v5, -inf  ;;  %v11989_v28 = vsel %vm123_vm3, %v6845_v4, -1e+30  ;;  %v7092_v40 = vcombine.low %v11975_v37, %v11980_v33 }
0x1037   :  { %12797 = vst [vmem:[#allocation31_spill] sm:$0xff] %v11984_v9  ;;  %v6848_v24 = vcombine.high %v6844_v45, %v6844_v45  ;;  %v11993_v52 = vsel %vm123_vm3, %v6844_v45, -1e+30  ;;  %7146 = vmax.xlane.f32.xlu1 %v7145_v56  ;;  %v11999_v31 = vsel %vm123_vm3, %v6847_v48, -1e+30  ;;  %v7026_v43 = vcombine.low %v7004_v63, %v7011_v34 }
0x1038   :  { %12798 = vst [vmem:[#allocation32_spill] sm:$0xff] %v11993_v52  ;;  %v12003_v5 = vsel %vm123_vm3, %v6846_v53, -1e+30  ;;  %v7027_v27 = vcombine.low %v7018_v36, %v7025_v30  ;;  %v7093_v22 = vcombine.low %v11989_v28, %v11999_v31  ;;  %v7094_v4 = vcombine.low %v11984_v9, %v11993_v52 }
0x1039   :  { %v12011_v45 = vsel %vm123_vm3, %v6799_v29, -1e+30  ;;  %v7060_v56 = vrot.slane %v7044_v61, %v12794_v23  ;;  %v7034_v48 = vrot.slane %v7026_v43, %v12794_v23  ;;  %v7053_v63 = vrot.slane %v7043_v26, %v12794_v23 }
0x103a   :  { %v7041_v33 = vrot.slane %v7027_v27, %v12794_v23  ;;  %v7046_v53 = vcombine.low %v11947_v57, %v12011_v45  ;;  %v7067_v34 = vrot.slane %v7045_v46, %v12794_v23  ;;  %v12022_v36 = vsel %vm123_vm3, %v6848_v24, -1e+30 }
0x103b   :  { %v7102_v29 = vrot.slane %v7092_v40, %v12794_v23  ;;  %v7109_v30 = vrot.slane %v7093_v22, %v12794_v23  ;;  %v7075_v52 = vcombine.low %v7053_v63, %v7060_v56  ;;  %v7095_v27 = vcombine.low %v12003_v5, %v12022_v36 }
0x103c   :  { %v7042_v61 = vcombine.low %v7034_v48, %v7041_v33  ;;  %v7074_v43 = vrot.slane %v7046_v53, %v12794_v23  ;;  %v7116_v9 = vrot.slane %v7094_v4, %v12794_v23  ;;  %v12799_v62 = vcombine.high %v11810_v0, %v11813_v2 }
0x103d   :  { %v7124_v26 = vcombine.low %v7102_v29, %v7109_v30  ;;  %v5671_v24 = vcombine.high %v11862_v35, %v11871_v41  ;;  %v7123_v22 = vrot.slane %v7095_v27, %v12794_v23  ;;  %v5670_v56 = vcombine.low %v11862_v35, %v11871_v41 }
0x103e   :  { %v5669_v46 = vrot.slane %v12799_v62, %v10410_v18  ;;  %v7148_v40 = vsel %vm4486_vm9, %v7042_v61, -inf  ;;  %v7076_v33 = vcombine.low %v7067_v34, %v7074_v43  ;;  %v7083_v2 = vrot.slane %v7075_v52, %v12794_v23 }
0x103f   :  { %7149 = vmax.xlane.f32.xlu0 %v7148_v40  ;;  %v12041_v4 = vrot.slane %v5671_v24, %v10413_v25  ;;  %v7125_v63 = vcombine.low %v7116_v9, %v7123_v22  ;;  %v12048_v34 = vrot.slane %v5670_v56, %v10413_v25  ;;  %v7132_v30 = vrot.slane %v7124_v26, %v12794_v23  ;;  %v12805_v24 = vld [vmem:[#allocation24_spill] sm:$0xff] }
0x1040   :  { %v5687_v48 = vcombine.high %v11878_v51, %v5669_v46  ;;  %v5686_v0 = vcombine.low %v11878_v51, %v5669_v46  ;;  %v7090_v53 = vrot.slane %v7076_v33, %v12794_v23  ;;  %v12804_v46 = vld [vmem:[#allocation23_spill] sm:$0xff] }
0x1041   :  { %12800 = vst [vmem:[#allocation26_spill] sm:$0xff] %v12041_v4  ;;  %12801 = vst [vmem:[#allocation21_spill] sm:$0xff] %v12048_v34  ;;  %v7139_v61 = vrot.slane %v7125_v63, %v12794_v23 }
0x1042   :  { %v12051_v29 = vrot.slane %v5687_v48, %v10413_v25  ;;  %v12054_v35 = vrot.slane %v5686_v0, %v10413_v25  ;;  %v7091_v41 = vcombine.low %v7083_v2, %v7090_v53 }
0x1043   :  { %v7140_v62 = vcombine.low %v7132_v30, %v7139_v61 }
0x1044   :  { %12802 = vst [vmem:[#allocation27_spill] sm:$0xff] %v12051_v29  ;;  %12803 = vst [vmem:[#allocation35_spill] sm:$0xff] %v12054_v35  ;;  %v7151_v27 = vsel %vm4486_vm9, %v7091_v41, -inf }
0x1045   :  { %7152 = vmax.xlane.f32.xlu0 %v7151_v27  ;;  %v7154_v26 = vsel %vm4486_vm9, %v7140_v62, -inf }
0x1048   :  { %6161 = vrot.lane.b32.xlu1 %v12804_v46, %s10203_s7 }
0x1049   :  { %7155 = vmax.xlane.f32.xlu0 %v7154_v26 }
0x104c   :  { %6167 = vrot.lane.b32.xlu1 %v12804_v46, %s10192_s19 }
0x1050   :  { %6169 = vrot.lane.b32.xlu1 %v12805_v24, %s10192_s19 }
0x105f   :  { %6163 = vrot.lane.b32.xlu0 %v12805_v24, %s10203_s7 }
0x10c4   :  { %v7147_v40 = vpop.xlane.xlu1 %7146 }
0x10c5   :  { %v7164_v33 = vrot.slane %v7147_v40, %v11189_v17  ;;  %v7168_v22 = vrot.slane %v7147_v40, %v11192_v32  ;;  %v7172_v56 = vrot.slane %v7147_v40, %v11195_v44  ;;  %v7176_v2 = vrot.slane %v7147_v40, %v11198_v3 }
0x10c6   :  { %v7180_v53 = vrot.slane %v7147_v40, %v11201_v55  ;;  %v7184_v63 = vrot.slane %v7147_v40, %v11204_v60  ;;  %v7188_v41 = vrot.slane %v7147_v40, %v11207_v58  ;;  %v7192_v30 = vrot.slane %v7147_v40, %v11210_v19 }
0x10c7   :  { %v7321_v48 = vsub.f32 %v11822_v13, %v7164_v33  ;;  %v7322_v0 = vsub.f32 %v11826_v14, %v7168_v22  ;;  %v7323_v61 = vsub.f32 %v11834_v59, %v7172_v56  ;;  %v7324_v9 = vsub.f32 %v11830_v20, %v7176_v2 }
0x10c8   :  { %v7325_v13 = vsub.f32 %v11838_v1, %v7180_v53  ;;  %v7326_v14 = vsub.f32 %v11842_v49, %v7184_v63  ;;  %v7327_v33 = vsub.f32 %v11852_v42, %v7188_v41  ;;  %v7328_v22 = vsub.f32 %v11856_v12, %v7192_v30 }
0x10c9   :  { %v7353_v27 = vmul.f32 1.442695, %v7321_v48  ;;  %v7355_v26 = vmul.f32 1.442695, %v7322_v0  ;;  %v7357_v40 = vmul.f32 1.442695, %v7323_v61 }
0x10ca   :  { %v7359_v48 = vmul.f32 1.442695, %v7324_v9  ;;  %v7361_v0 = vmul.f32 1.442695, %v7325_v13  ;;  %v7363_v2 = vmul.f32 1.442695, %v7326_v14 }
0x10cb   :  { %9893 = vpow2.f32 %v7353_v27  ;;  %v7365_v41 = vmul.f32 1.442695, %v7327_v33  ;;  %v7367_v30 = vmul.f32 1.442695, %v7328_v22 }
0x10cc   :  { %v7150_v62 = vpop.xlane.xlu0 %7149  ;;  %9895 = vpow2.f32 %v7355_v26 }
0x10cd   :  { %v7196_v43 = vrot.slane %v7150_v62, %v11189_v17  ;;  %v7200_v52 = vrot.slane %v7150_v62, %v11192_v32  ;;  %v7204_v59 = vrot.slane %v7150_v62, %v11195_v44  ;;  %v7208_v56 = vrot.slane %v7150_v62, %v11198_v3 }
0x10ce   :  { %v7212_v20 = vrot.slane %v7150_v62, %v11201_v55  ;;  %v7216_v1 = vrot.slane %v7150_v62, %v11204_v60  ;;  %v7220_v49 = vrot.slane %v7150_v62, %v11207_v58  ;;  %v7224_v42 = vrot.slane %v7150_v62, %v11210_v19 }
0x10cf   :  { %v7329_v53 = vsub.f32 %v11892_v15, %v7196_v43  ;;  %v7330_v63 = vsub.f32 %v11888_v16, %v7200_v52  ;;  %v7331_v61 = vsub.f32 %v11896_v54, %v7204_v59  ;;  %v7332_v27 = vsub.f32 %v11905_v11, %v7208_v56 }
0x10d0   :  { %v7333_v26 = vsub.f32 %v11900_v10, %v7212_v20  ;;  %9897 = vpow2.f32 %v7357_v40  ;;  %v7334_v51 = vsub.f32 %v11909_v21, %v7216_v1  ;;  %v7335_v62 = vsub.f32 %v11915_v38, %v7220_v49 }
0x10d1   :  { %v7336_v15 = vsub.f32 %v11960_v50, %v7224_v42  ;;  %9899 = vpow2.f32 %v7359_v48  ;;  %v7369_v11 = vmul.f32 1.442695, %v7329_v53  ;;  %v7371_v43 = vmul.f32 1.442695, %v7330_v63  ;;  %v12806_v42 = vld [vmem:[#allocation22_spill] sm:$0xff] }
0x10d2   :  { %v7153_v12 = vpop.xlane.xlu0 %7152  ;;  %9901 = vpow2.f32 %v7361_v0  ;;  %v7373_v22 = vmul.f32 1.442695, %v7331_v61  ;;  %v7375_v1 = vmul.f32 1.442695, %v7332_v27  ;;  %v7379_v0 = vmul.f32 1.442695, %v7334_v51 }
0x10d3   :  { %v7228_v9 = vrot.slane %v7153_v12, %v11189_v17  ;;  %v7232_v13 = vrot.slane %v7153_v12, %v11192_v32  ;;  %v7236_v16 = vrot.slane %v7153_v12, %v11195_v44  ;;  %v7240_v52 = vrot.slane %v7153_v12, %v11198_v3 }
0x10d4   :  { %v7244_v54 = vrot.slane %v7153_v12, %v11201_v55  ;;  %v7248_v10 = vrot.slane %v7153_v12, %v11204_v60  ;;  %v7252_v21 = vrot.slane %v7153_v12, %v11207_v58  ;;  %v7256_v38 = vrot.slane %v7153_v12, %v11210_v19 }
0x10d5   :  { %9903 = vpow2.f32 %v7363_v2  ;;  %v12116_v14 = vpop.eup %9893  ;;  %v7337_v50 = vsub.f32 %v11923_v7, %v7228_v9  ;;  %v7338_v33 = vsub.f32 %v11927_v6, %v7232_v13  ;;  %v7339_v59 = vsub.f32 %v11931_v39, %v7236_v16 }
0x10d6   :  { %9905 = vpow2.f32 %v7365_v41  ;;  %v12120_v40 = vpop.eup %9895  ;;  %v7340_v56 = vsub.f32 %v11943_v8, %v7240_v52  ;;  %v12124_v20 = vpop.xlane.xlu0 %7155  ;;  %v7341_v49 = vsub.f32 %v11935_v47, %v7244_v54  ;;  %v7342_v12 = vsub.f32 %v12806_v42, %v7248_v10 }
0x10d7   :  { %9907 = vpow2.f32 %v7367_v30  ;;  %v7377_v7 = vmul.f32 1.442695, %v7333_v26  ;;  %v7343_v6 = vsub.f32 %v11947_v57, %v7252_v21  ;;  %v7344_v48 = vsub.f32 %v12011_v45, %v7256_v38 }
0x10d8   :  { %9909 = vpow2.f32 %v7369_v11  ;;  %v7260_v39 = vrot.slane %v12124_v20, %v11189_v17  ;;  %v7449_v8 = vcombine.low %v12116_v14, %v12120_v40  ;;  %v7381_v2 = vmul.f32 1.442695, %v7335_v62 }
0x10d9   :  { %9911 = vpow2.f32 %v7371_v43  ;;  %v7264_v47 = vrot.slane %v12124_v20, %v11192_v32  ;;  %v7268_v57 = vrot.slane %v12124_v20, %v11195_v44  ;;  %v7383_v45 = vmul.f32 1.442695, %v7336_v15 }
0x10da   :  { %9913 = vpow2.f32 %v7373_v22  ;;  %v12134_v53 = vpop.eup %9897  ;;  %v7272_v51 = vrot.slane %v12124_v20, %v11198_v3  ;;  %v7276_v63 = vrot.slane %v12124_v20, %v11201_v55  ;;  %v7385_v41 = vmul.f32 1.442695, %v7337_v50 }
0x10db   :  { %9915 = vpow2.f32 %v7375_v1  ;;  %v12144_v30 = vpop.eup %9899  ;;  %v7280_v61 = vrot.slane %v12124_v20, %v11204_v60  ;;  %v7284_v27 = vrot.slane %v12124_v20, %v11207_v58  ;;  %v7387_v26 = vmul.f32 1.442695, %v7338_v33  ;;  %v12807_v33 = vld [vmem:[#allocation30_spill] sm:$0xff] }
0x10dc   :  { %9917 = vpow2.f32 %v7377_v7  ;;  %v12150_v62 = vpop.eup %9901  ;;  %v7450_v9 = vcombine.low %v12134_v53, %v12144_v30  ;;  %v7459_v13 = vrot.slane %v7449_v8, %v12794_v23  ;;  %v7389_v15 = vmul.f32 1.442695, %v7339_v59 }
0x10dd   :  { %9919 = vpow2.f32 %v7379_v0  ;;  %v7288_v52 = vrot.slane %v12124_v20, %v11210_v19  ;;  %v7345_v54 = vsub.f32 %v11975_v37, %v7260_v39  ;;  %v7391_v10 = vmul.f32 1.442695, %v7340_v56 }
0x10de   :  { %9921 = vpow2.f32 %v7381_v2  ;;  %v7466_v38 = vrot.slane %v7450_v9, %v12794_v23  ;;  %v7393_v43 = vmul.f32 1.442695, %v7341_v49  ;;  %v7346_v22 = vsub.f32 %v12807_v33, %v7264_v47 }
0x10df   :  { %v12155_v16 = vpop.eup %9903  ;;  %9923 = vpow2.f32 %v7383_v45  ;;  %v7395_v59 = vmul.f32 1.442695, %v7342_v12  ;;  %v7397_v20 = vmul.f32 1.442695, %v7343_v6  ;;  %v7347_v49 = vsub.f32 %v11989_v28, %v7268_v57  ;;  %v12808_v45 = vld [vmem:[#allocation31_spill] sm:$0xff] }
0x10e0   :  { %v12160_v11 = vpop.eup %9905  ;;  %v7451_v21 = vcombine.low %v12150_v62, %v12155_v16  ;;  %9925 = vpow2.f32 %v7385_v41  ;;  %v7481_v42 = vcombine.low %v7459_v13, %v7466_v38  ;;  %v7348_v0 = vsub.f32 %v11999_v31, %v7272_v51  ;;  %v12809_v13 = vld [vmem:[#allocation32_spill] sm:$0xff] }
0x10e1   :  { %v12165_v50 = vpop.eup %9907  ;;  %9927 = vpow2.f32 %v7387_v26  ;;  %v7399_v39 = vmul.f32 1.442695, %v7344_v48  ;;  %v7401_v2 = vmul.f32 1.442695, %v7345_v54  ;;  %v7349_v41 = vsub.f32 %v12808_v45, %v7276_v63 }
0x10e2   :  { %v12168_v1 = vpop.eup %9909  ;;  %v7452_v37 = vcombine.low %v12160_v11, %v12165_v50  ;;  %v7473_v56 = vrot.slane %v7451_v21, %v12794_v23  ;;  %9929 = vpow2.f32 %v7389_v15  ;;  %v7489_v26 = vrot.slane %v7481_v42, %v12794_v23 }
0x10e3   :  { %v12173_v7 = vpop.eup %9911  ;;  %9931 = vpow2.f32 %v7391_v10  ;;  %v7403_v28 = vmul.f32 1.442695, %v7346_v22  ;;  %v7350_v15 = vsub.f32 %v12809_v13, %v7280_v61  ;;  %v7351_v54 = vsub.f32 %v12003_v5, %v7284_v27 }
0x10e4   :  { %v12177_v8 = vpop.eup %9913  ;;  %v7480_v12 = vrot.slane %v7452_v37, %v12794_v23  ;;  %v7498_v6 = vcombine.low %v12168_v1, %v12173_v7  ;;  %9933 = vpow2.f32 %v7393_v43  ;;  %v7405_v63 = vmul.f32 1.442695, %v7347_v49 }
0x10e5   :  { %v12182_v47 = vpop.eup %9915  ;;  %9935 = vpow2.f32 %v7395_v59  ;;  %v7352_v22 = vsub.f32 %v12022_v36, %v7288_v52  ;;  %v7407_v61 = vmul.f32 1.442695, %v7348_v0  ;;  %v7409_v59 = vmul.f32 1.442695, %v7349_v41 }
0x10e6   :  { %v12186_v31 = vpop.eup %9917  ;;  %v7482_v48 = vcombine.low %v7473_v56, %v7480_v12  ;;  %v7499_v57 = vcombine.low %v12177_v8, %v12182_v47  ;;  %v7508_v51 = vrot.slane %v7498_v6, %v12794_v23  ;;  %9937 = vpow2.f32 %v7397_v20 }
0x10e7   :  { %v12191_v9 = vpop.eup %9919  ;;  %9939 = vpow2.f32 %v7399_v39  ;;  %v7411_v49 = vmul.f32 1.442695, %v7350_v15  ;;  %v7413_v12 = vmul.f32 1.442695, %v7351_v54  ;;  %v7415_v45 = vmul.f32 1.442695, %v7352_v22 }
0x10e8   :  { %v12195_v10 = vpop.eup %9921  ;;  %v7496_v21 = vrot.slane %v7482_v48, %v12794_v23  ;;  %v7500_v38 = vcombine.low %v12186_v31, %v12191_v9  ;;  %v7515_v43 = vrot.slane %v7499_v57, %v12794_v23  ;;  %9941 = vpow2.f32 %v7401_v2 }
0x10e9   :  { %v12201_v33 = vpop.eup %9923  ;;  %9943 = vpow2.f32 %v7403_v28 }
0x10ea   :  { %v12204_v5 = vpop.eup %9925  ;;  %v7497_v27 = vcombine.low %v7489_v26, %v7496_v21  ;;  %v7501_v20 = vcombine.low %v12195_v10, %v12201_v33  ;;  %v7522_v37 = vrot.slane %v7500_v38, %v12794_v23  ;;  %v7530_v56 = vcombine.low %v7508_v51, %v7515_v43 }
0x10eb   :  { %v12209_v42 = vpop.eup %9927  ;;  %9945 = vpow2.f32 %v7405_v63 }
0x10ec   :  { %v12211_v39 = vpop.eup %9929  ;;  %v7649_v36 = vsel %vm4486_vm9, %v7497_v27, 0.0  ;;  %v7529_v52 = vrot.slane %v7501_v20, %v12794_v23  ;;  %v7547_v0 = vcombine.low %v12204_v5, %v12209_v42  ;;  %v7538_v2 = vrot.slane %v7530_v56, %v12794_v23 }
0x10ed   :  { %v12217_v6 = vpop.eup %9931  ;;  %7650 = vadd.xlane.f32.xlu1 %v7649_v36  ;;  %9947 = vpow2.f32 %v7407_v61 }
0x10ee   :  { %v12220_v41 = vpop.eup %9933  ;;  %v7531_v26 = vcombine.low %v7522_v37, %v7529_v52  ;;  %v7548_v28 = vcombine.low %v12211_v39, %v12217_v6  ;;  %v7557_v48 = vrot.slane %v7547_v0, %v12794_v23  ;;  %9949 = vpow2.f32 %v7409_v59 }
0x10ef   :  { %v12225_v57 = vpop.eup %9935  ;;  %9951 = vpow2.f32 %v7411_v49 }
0x10f0   :  { %v12227_v51 = vpop.eup %9937  ;;  %v7545_v13 = vrot.slane %v7531_v26, %v12794_v23  ;;  %v7549_v15 = vcombine.low %v12220_v41, %v12225_v57  ;;  %v7564_v54 = vrot.slane %v7548_v28, %v12794_v23  ;;  %9953 = vpow2.f32 %v7413_v12 }
0x10f1   :  { %v12233_v63 = vpop.eup %9939  ;;  %9955 = vpow2.f32 %v7415_v45 }
0x10f2   :  { %v12235_v21 = vpop.eup %9941  ;;  %v7546_v38 = vcombine.low %v7538_v2, %v7545_v13  ;;  %v7550_v43 = vcombine.low %v12227_v51, %v12233_v63  ;;  %v7571_v22 = vrot.slane %v7549_v15, %v12794_v23  ;;  %v7579_v61 = vcombine.low %v7557_v48, %v7564_v54 }
0x10f3   :  { %12810 = vst [vmem:[#allocation33_spill] sm:$0xff] %v12235_v21  ;;  %v12240_v59 = vpop.eup %9943 }
0x10f4   :  { %12811 = vst [vmem:[#allocation34_spill] sm:$0xff] %v12240_v59  ;;  %v7652_v27 = vsel %vm4486_vm9, %v7546_v38, 0.0  ;;  %v7578_v20 = vrot.slane %v7550_v43, %v12794_v23  ;;  %v7596_v37 = vcombine.low %v12235_v21, %v12240_v59  ;;  %v7587_v36 = vrot.slane %v7579_v61, %v12794_v23 }
0x10f5   :  { %v12246_v56 = vpop.eup %9945  ;;  %7653 = vadd.xlane.f32.xlu0 %v7652_v27 }
0x10f6   :  { %12812 = vst [vmem:[#allocation25_spill] sm:$0xff] %v12246_v56  ;;  %v7580_v49 = vcombine.low %v7571_v22, %v7578_v20  ;;  %v7606_v45 = vrot.slane %v7596_v37, %v12794_v23 }
0x10f7   :  { %v12249_v52 = vpop.eup %9947 }
0x10f8   :  { %12813 = vst [vmem:[#allocation23_spill] sm:$0xff] %v12249_v52  ;;  %v12251_v0 = vpop.eup %9949  ;;  %v7594_v12 = vrot.slane %v7580_v49, %v12794_v23  ;;  %v7597_v2 = vcombine.low %v12246_v56, %v12249_v52 }
0x10f9   :  { %12814 = vst [vmem:[#allocation24_spill] sm:$0xff] %v12251_v0  ;;  %v12257_v26 = vpop.eup %9951 }
0x10fa   :  { %12815 = vst [vmem:[#allocation22_spill] sm:$0xff] %v12257_v26  ;;  %v12259_v28 = vpop.eup %9953  ;;  %v7595_v48 = vcombine.low %v7587_v36, %v7594_v12  ;;  %v7598_v13 = vcombine.low %v12251_v0, %v12257_v26  ;;  %v7613_v15 = vrot.slane %v7597_v2, %v12794_v23  ;;  %v12278_v2 = vpop.permute.xlu1 %6161 }
0x10fb   :  { %12816 = vst [vmem:[#allocation30_spill] sm:$0xff] %v12259_v28  ;;  %v12264_v54 = vpop.eup %9955 }
0x10fc   :  { %12817 = vst [vmem:[#allocation31_spill] sm:$0xff] %v12264_v54  ;;  %v7655_v38 = vsel %vm4486_vm9, %v7595_v48, 0.0  ;;  %v7599_v43 = vcombine.low %v12259_v28, %v12264_v54  ;;  %v7620_v22 = vrot.slane %v7598_v13, %v12794_v23  ;;  %v7628_v61 = vcombine.low %v7606_v45, %v7613_v15 }
0x10fd   :  { %7656 = vadd.xlane.f32.xlu1 %v7655_v38 }
0x10fe   :  { %v7627_v27 = vrot.slane %v7599_v43, %v12794_v23  ;;  %v7636_v37 = vrot.slane %v7628_v61, %v12794_v23  ;;  %v6168_v45 = vpop.permute.xlu1 %6167  ;;  %v12285_v61 = vpop.permute.xlu0 %6163 }
0x10ff   :  { %v6179_v35 = vcombine.low %v12804_v46, %v6168_v45 }
0x1100   :  { %v7629_v20 = vcombine.low %v7620_v22, %v7627_v27 }
0x1101   :  { %v12306_v4 = vrot.slane %v6179_v35, %v10410_v18 }
0x1102   :  { %v7643_v49 = vrot.slane %v7629_v20, %v12794_v23  ;;  %v6170_v48 = vpop.permute.xlu1 %6169 }
0x1104   :  { %v7644_v36 = vcombine.low %v7636_v37, %v7643_v49 }
0x1106   :  { %v7658_v12 = vsel %vm4486_vm9, %v7644_v36, 0.0 }
0x1107   :  { %7659 = vadd.xlane.f32.xlu0 %v7658_v12 }
0x110e   :  { %6173 = vrot.lane.b32.xlu1 %v12804_v46, %s10204_s23 }
0x111d   :  { %6175 = vrot.lane.b32.xlu0 %v12805_v24, %s10204_s23 }
0x117a   :  { %v7651_v13 = vpop.xlane.xlu1 %7650 }
0x117b   :  { %v7668_v15 = vrot.slane %v7651_v13, %v11189_v17  ;;  %v7672_v38 = vrot.slane %v7651_v13, %v11192_v32  ;;  %v7676_v23 = vrot.slane %v7651_v13, %v11195_v44  ;;  %v7680_v43 = vrot.slane %v7651_v13, %v11198_v3 }
0x117c   :  { %v7684_v22 = vrot.slane %v7651_v13, %v11201_v55  ;;  %v7688_v27 = vrot.slane %v7651_v13, %v11204_v60  ;;  %v7692_v20 = vrot.slane %v7651_v13, %v11207_v58  ;;  %v7696_v37 = vrot.slane %v7651_v13, %v11210_v19 }
0x117d   :  { %9957 = vrcp.f32 %v7668_v15  ;;  %v6247_v13 = vcombine.low %v12805_v24, %v6170_v48 }
0x117e   :  { %9959 = vrcp.f32 %v7672_v38 }
0x117f   :  { %9961 = vrcp.f32 %v7676_v23  ;;  %v6180_v23 = vcombine.high %v12804_v46, %v6168_v45 }
0x1180   :  { %9963 = vrcp.f32 %v7680_v43 }
0x1181   :  { %9965 = vrcp.f32 %v7684_v22  ;;  %v6248_v22 = vcombine.high %v12805_v24, %v6170_v48  ;;  %v12309_v24 = vrot.slane %v6180_v23, %v10410_v18  ;;  %v12312_v48 = vrot.slane %v6247_v13, %v10410_v18 }
0x1182   :  { %9967 = vrcp.f32 %v7688_v27  ;;  %v7654_v49 = vpop.xlane.xlu0 %7653 }
0x1183   :  { %9969 = vrcp.f32 %v7692_v20  ;;  %v7700_v36 = vrot.slane %v7654_v49, %v11189_v17  ;;  %v7704_v12 = vrot.slane %v7654_v49, %v11192_v32  ;;  %v7708_v15 = vrot.slane %v7654_v49, %v11195_v44 }
0x1184   :  { %9971 = vrcp.f32 %v7696_v37  ;;  %v7712_v38 = vrot.slane %v7654_v49, %v11198_v3  ;;  %v7716_v43 = vrot.slane %v7654_v49, %v11201_v55  ;;  %v7720_v27 = vrot.slane %v7654_v49, %v11204_v60 }
0x1185   :  { %9973 = vrcp.f32 %v7700_v36  ;;  %v7724_v34 = vrot.slane %v7654_v49, %v11207_v58  ;;  %v7728_v37 = vrot.slane %v7654_v49, %v11210_v19 }
0x1186   :  { %9975 = vrcp.f32 %v7704_v12  ;;  %v12315_v12 = vrot.slane %v6248_v22, %v10410_v18 }
0x1187   :  { %v9958_v20 = vpop.eup %9957  ;;  %9977 = vrcp.f32 %v7708_v15 }
0x1188   :  { %v9960_v29 = vpop.eup %9959  ;;  %9979 = vrcp.f32 %v7712_v38  ;;  %v12303_v46 = vmul.f32 %v9958_v20, %v12116_v14 }
0x1189   :  { %v9962_v45 = vpop.eup %9961  ;;  %9981 = vrcp.f32 %v7716_v43  ;;  %v12318_v49 = vmul.f32 %v9960_v29, %v12120_v40 }
0x118a   :  { %v9964_v36 = vpop.eup %9963  ;;  %9983 = vrcp.f32 %v7720_v27  ;;  %v7657_v14 = vpop.xlane.xlu1 %7656  ;;  %v12321_v15 = vmul.f32 %v9962_v45, %v12134_v53  ;;  %v7889_v40 = vpack.c.bf16 %v12303_v46, %v12303_v46 }
0x118b   :  { %v9966_v35 = vpop.eup %9965  ;;  %9985 = vrcp.f32 %v7724_v34  ;;  %v7732_v38 = vrot.slane %v7657_v14, %v11189_v17  ;;  %v7736_v23 = vrot.slane %v7657_v14, %v11192_v32  ;;  %v7740_v13 = vrot.slane %v7657_v14, %v11195_v44 }
0x118c   :  { %v9968_v43 = vpop.eup %9967  ;;  %9987 = vrcp.f32 %v7728_v37  ;;  %v7744_v22 = vrot.slane %v7657_v14, %v11198_v3  ;;  %v7748_v29 = vrot.slane %v7657_v14, %v11201_v55  ;;  %v7752_v53 = vrot.slane %v7657_v14, %v11204_v60 }
0x118d   :  { %v9970_v27 = vpop.eup %9969  ;;  %v7756_v34 = vrot.slane %v7657_v14, %v11207_v58  ;;  %9989 = vrcp.f32 %v7732_v38  ;;  %v12333_v20 = vmul.f32 %v9964_v36, %v12144_v30  ;;  %v7760_v54 = vrot.slane %v7657_v14, %v11210_v19 }
0x118e   :  { %v9972_v45 = vpop.eup %9971  ;;  %9991 = vrcp.f32 %v7736_v23  ;;  %v6174_v37 = vpop.permute.xlu1 %6173  ;;  %v12337_v28 = vmul.f32 %v9966_v35, %v12150_v62  ;;  %v12340_v26 = vmul.f32 %v9968_v43, %v12155_v16  ;;  %v12347_v30 = vmul.f32 %v9970_v27, %v12160_v11 }
0x118f   :  { %v12342_v46 = vpop.eup %9973  ;;  %9993 = vrcp.f32 %v7740_v13  ;;  %v6195_v0 = vcombine.low %v12278_v2, %v6174_v37  ;;  %v6196_v38 = vcombine.high %v12278_v2, %v6174_v37  ;;  %v12350_v14 = vmul.f32 %v9972_v45, %v12165_v50 }
0x1190   :  { %v9976_v36 = vpop.eup %9975  ;;  %9995 = vrcp.f32 %v7744_v22  ;;  %v12394_v11 = vunpack.c.l.b16 %v7889_v40 }
0x1191   :  { %v12356_v35 = vpop.eup %9977  ;;  %9997 = vrcp.f32 %v7748_v29  ;;  %v6203_v23 = vrot.slane %v6195_v0, %v10410_v18  ;;  %v6210_v2 = vrot.slane %v6196_v38, %v10410_v18  ;;  %v12365_v50 = vmul.f32 %v9976_v36, %v12173_v7 }
0x1192   :  { %v12362_v13 = vpop.eup %9979  ;;  %9999 = vrcp.f32 %v7752_v53 }
0x1193   :  { %v12371_v29 = vpop.eup %9981  ;;  %10001 = vrcp.f32 %v7756_v34  ;;  %v6211_v0 = vcombine.low %v12306_v4, %v6203_v23  ;;  %v6212_v27 = vcombine.high %v12306_v4, %v6203_v23  ;;  %v6227_v45 = vcombine.low %v12309_v24, %v6210_v2 }
0x1194   :  { %v12376_v37 = vpop.eup %9983  ;;  %10003 = vrcp.f32 %v7760_v54  ;;  %v6228_v7 = vcombine.high %v12309_v24, %v6210_v2  ;;  %v7660_v53 = vpop.xlane.xlu0 %7659 }
0x1195   :  { %v12383_v22 = vpop.eup %9985  ;;  %v6219_v34 = vrot.slane %v6211_v0, %v10413_v25  ;;  %v6226_v4 = vrot.slane %v6212_v27, %v10413_v25  ;;  %v6235_v23 = vrot.slane %v6227_v45, %v10413_v25  ;;  %v7764_v43 = vrot.slane %v7660_v53, %v11189_v17 }
0x1196   :  { %v12389_v54 = vpop.eup %9987  ;;  %v6242_v24 = vrot.slane %v6228_v7, %v10413_v25  ;;  %v7768_v2 = vrot.slane %v7660_v53, %v11192_v32  ;;  %v7772_v38 = vrot.slane %v7660_v53, %v11195_v44  ;;  %v7776_v27 = vrot.slane %v7660_v53, %v11198_v3 }
0x1197   :  { %v12396_v36 = vpop.eup %9989  ;;  %v6315_v16 = vcombine.low %v6219_v34, %v6226_v4  ;;  %v9002_v0 = vcombine.high %v6219_v34, %v6226_v4  ;;  %v7780_v45 = vrot.slane %v7660_v53, %v11201_v55  ;;  %v7784_v56 = vrot.slane %v7660_v53, %v11204_v60 }
0x1198   :  { %v9992_v62 = vpop.eup %9991  ;;  %v6331_v17 = vcombine.low %v6235_v23, %v6242_v24  ;;  %v9003_v52 = vcombine.high %v6235_v23, %v6242_v24  ;;  %v7788_v7 = vrot.slane %v7660_v53, %v11207_v58  ;;  %v6176_v32 = vpop.permute.xlu0 %6175  ;;  %v7792_v3 = vrot.slane %v7660_v53, %v11210_v19 }
0x1199   :  { %v12402_v21 = vpop.eup %9993  ;;  %v12405_v44 = vrot.slane %v6315_v16, %v10410_v18  ;;  %v12408_v40 = vrot.slane %v9002_v0, %v10410_v18  ;;  %10005 = vrcp.f32 %v7764_v43  ;;  %v6263_v58 = vcombine.low %v12285_v61, %v6176_v32 }
0x119a   :  { %v12411_v55 = vpop.eup %9995  ;;  %v12414_v34 = vrot.slane %v6331_v17, %v10410_v18  ;;  %v12417_v60 = vrot.slane %v9003_v52, %v10410_v18  ;;  %10007 = vrcp.f32 %v7768_v2  ;;  %v12423_v16 = vmul.f32 %v9992_v62, %v12209_v42 }
0x119b   :  { %v12420_v4 = vpop.eup %9997  ;;  %10009 = vrcp.f32 %v7772_v38  ;;  %v6264_v19 = vcombine.high %v12285_v61, %v6176_v32  ;;  %v6347_v43 = vcombine.low %v12405_v44, %v12408_v40  ;;  %v6271_v17 = vrot.slane %v6263_v58, %v10410_v18 }
0x119c   :  { %12818 = vst [vmem:[#allocation32_spill] sm:$0xff] %v12423_v16  ;;  %v12428_v53 = vpop.eup %9999  ;;  %10011 = vrcp.f32 %v7776_v27  ;;  %v6363_v52 = vcombine.low %v12414_v34, %v12417_v60  ;;  %v12819_v23 = vpack.c.bf16 %v12318_v49, %v12318_v49  ;;  %v12820_v62 = vpack.c.bf16 %v12321_v15, %v12321_v15 }
0x119d   :  { %v12436_v42 = vpop.eup %10001  ;;  %10013 = vrcp.f32 %v7780_v45  ;;  %v6278_v32 = vrot.slane %v6264_v19, %v10410_v18  ;;  %v12440_v61 = vrot.slane %v6347_v43, %v10413_v25  ;;  %v6279_v0 = vcombine.low %v12312_v48, %v6271_v17 }
0x119e   :  { %v7934_v24 = vunpack.c.l.b16 %v12819_v23  ;;  %v7935_v38 = vunpack.c.l.b16 %v12820_v62  ;;  %v12445_v2 = vpop.eup %10003  ;;  %10015 = vrcp.f32 %v7784_v56  ;;  %v6280_v49 = vcombine.high %v12312_v48, %v6271_v17 }
0x119f   :  { %v12450_v27 = vrot.slane %v6363_v52, %v10413_v25  ;;  %10017 = vrcp.f32 %v7788_v7  ;;  %v6295_v45 = vcombine.low %v12315_v12, %v6278_v32  ;;  %v6296_v58 = vcombine.high %v12315_v12, %v6278_v32 }
0x11a0   :  { %v12821_v19 = vpack.c.bf16 %v12333_v20, %v12333_v20  ;;  %10019 = vrcp.f32 %v7792_v3  ;;  %v6287_v43 = vrot.slane %v6279_v0, %v10413_v25  ;;  %v6294_v56 = vrot.slane %v6280_v49, %v10413_v25 }
0x11a1   :  { %v12822_v48 = vpack.c.bf16 %v12337_v28, %v12337_v28  ;;  %v6303_v52 = vrot.slane %v6295_v45, %v10413_v25  ;;  %v6310_v7 = vrot.slane %v6296_v58, %v10413_v25  ;;  %v6379_v12 = vcombine.low %v12440_v61, %v12450_v27 }
0x11a2   :  { %v7936_v15 = vunpack.c.l.b16 %v12821_v19  ;;  %v12823_v20 = vpack.c.bf16 %v12340_v26, %v12340_v26  ;;  %v6383_v3 = vcombine.low %v6287_v43, %v6294_v56  ;;  %v9004_v32 = vcombine.high %v6287_v43, %v6294_v56 }
0x11a3   :  { %v7937_v17 = vunpack.c.l.b16 %v12822_v48  ;;  %v12824_v62 = vpack.c.bf16 %v12347_v30, %v12347_v30  ;;  %v12825_v28 = vpack.c.bf16 %v12350_v14, %v12350_v14  ;;  %v12475_v45 = vpop.eup %10005  ;;  %v6399_v58 = vcombine.low %v6303_v52, %v6310_v7 }
0x11a4   :  { %v7938_v23 = vunpack.c.l.b16 %v12823_v20  ;;  %v9005_v19 = vcombine.high %v6303_v52, %v6310_v7  ;;  %v7941_v48 = vrot.slane %v7934_v24, 7  ;;  %v7943_v59 = vrot.slane %v7935_v38, 6  ;;  %v12477_v16 = vpop.eup %10007 }
0x11a5   :  { %v7939_v0 = vunpack.c.l.b16 %v12824_v62  ;;  %v7940_v49 = vunpack.c.l.b16 %v12825_v28  ;;  %v12480_v26 = vrot.slane %v6383_v3, %v10410_v18  ;;  %v12483_v43 = vrot.slane %v9004_v32, %v10410_v18  ;;  %v12487_v14 = vpop.eup %10009 }
0x11a6   :  { %v6380_v30 = vcombine.high %v12440_v61, %v12450_v27  ;;  %v7945_v56 = vrot.slane %v7936_v15, 5  ;;  %v12490_v20 = vrot.slane %v6399_v58, %v10410_v18  ;;  %v12493_v24 = vrot.slane %v9005_v19, %v10410_v18  ;;  %v12497_v7 = vpop.eup %10011 }
0x11a7   :  { %v7942_v38 = vsel %vm5284_vm10, %v7941_v48, %v12394_v11  ;;  %v7947_v52 = vrot.slane %v7937_v17, 4  ;;  %v6415_v3 = vcombine.low %v12480_v26, %v12483_v43  ;;  %v7949_v27 = vrot.slane %v7938_v23, 3  ;;  %v12502_v32 = vpop.eup %10013 }
0x11a8   :  { %v7944_v61 = vsel %vm5287_vm11, %v7943_v59, %v7942_v38  ;;  %v7951_v15 = vrot.slane %v7939_v0, 2  ;;  %v6431_v62 = vcombine.low %v12490_v20, %v12493_v24  ;;  %v7953_v58 = vrot.slane %v7940_v49, 1  ;;  %v12509_v17 = vpop.eup %10015 }
0x11a9   :  { %v7946_v28 = vsel %vm5290_vm12, %v7945_v56, %v7944_v61  ;;  %v7842_v11 = vmul.f32 %v12342_v46, %v12168_v1  ;;  %v6423_v19 = vrot.slane %v6415_v3, %v10413_v25  ;;  %v7846_v59 = vmul.f32 %v12356_v35, %v12177_v8  ;;  %v12517_v0 = vpop.eup %10017 }
0x11aa   :  { %v7948_v48 = vsel %vm5293_vm13, %v7947_v52, %v7946_v28  ;;  %v7848_v23 = vmul.f32 %v12362_v13, %v12182_v47  ;;  %v6439_v56 = vrot.slane %v6431_v62, %v10413_v25  ;;  %v7850_v1 = vmul.f32 %v12371_v29, %v12186_v31  ;;  %v12525_v38 = vpop.eup %10019 }
0x11ab   :  { %v7950_v49 = vsel %vm5296_vm14, %v7949_v27, %v7948_v48  ;;  %v7852_v46 = vmul.f32 %v12376_v37, %v12191_v9  ;;  %v7854_v8 = vmul.f32 %v12383_v22, %v12195_v10  ;;  %v7856_v47 = vmul.f32 %v12389_v54, %v12201_v33 }
0x11ac   :  { %v7952_v52 = vsel %vm5299_vm15, %v7951_v15, %v7950_v49  ;;  %v7897_v35 = vpack.c.bf16 %v7842_v11, %v7842_v11  ;;  %v6447_v13 = vcombine.low %v6423_v19, %v6439_v56  ;;  %v6448_v3 = vcombine.high %v6423_v19, %v6439_v56 }
0x11ad   :  { %v7954_v61 = vsel %vm5302_vm2, %v7953_v58, %v7952_v52  ;;  %v7898_v31 = vpack.c.bf16 %v12365_v50, %v12365_v50  ;;  %v7899_v9 = vpack.c.bf16 %v7846_v59, %v7846_v59  ;;  %v7900_v37 = vpack.c.bf16 %v7848_v23, %v7848_v23 }
0x11ae   :  { %v7955_v29 = vpack.c.b16 %v7954_v61, %v7954_v61  ;;  %v7901_v27 = vpack.c.bf16 %v7850_v1, %v7850_v1  ;;  %v7921_v62 = vpack.c.bf16 %v6447_v13, %v6379_v12  ;;  %v7922_v15 = vpack.c.bf16 %v6448_v3, %v6380_v30 }
0x11af   :  { %v7902_v28 = vpack.c.bf16 %v7852_v46, %v7852_v46  ;;  %v7903_v48 = vpack.c.bf16 %v7854_v8, %v7854_v8  ;;  %v7904_v10 = vpack.c.bf16 %v7856_v47, %v7856_v47  ;;  %v8007_v22 = vunpack.c.l.b16 %v7897_v35 }
0x11b0   :  { %v8008_v49 = vunpack.c.l.b16 %v7898_v31  ;;  %v8009_v33 = vunpack.c.l.b16 %v7899_v9  ;;  %9529 = vmatpush3.bf16.msra.mxu0 %v7921_v62  ;;  %9535 = vmatpush3.bf16.msra.mxu1 %v7922_v15  ;;  %v8010_v54 = vunpack.c.l.b16 %v7900_v37  ;;  %v8011_v11 = vunpack.c.l.b16 %v7901_v27 }
0x11b1   :  { %v8012_v58 = vunpack.c.l.b16 %v7902_v28  ;;  %v8013_v19 = vunpack.c.l.b16 %v7903_v48  ;;  %v8014_v56 = vunpack.c.l.b16 %v7904_v10  ;;  %v12826_v59 = vmov 0.0  }
0x11b2   :  { %v8015_v50 = vrot.slane %v8008_v49, 7  ;;  %v8017_v52 = vrot.slane %v8009_v33, 6  ;;  %9540 = vmatprep.subr.bf16.mxu0 %v12826_v59  ;;  %9546 = vmatprep.subr.bf16.mxu1 %v12826_v59  ;;  %v6348_v12 = vcombine.high %v12405_v44, %v12408_v40  ;;  %v8019_v30 = vrot.slane %v8010_v54, 5  ;;  %v12828_v54 = vld [vmem:[#allocation34_spill] sm:$0xff] }
0x11b3   :  { %v8021_v23 = vrot.slane %v8011_v11, 4  ;;  %v8023_v1 = vrot.slane %v8012_v58, 3  ;;  %v8025_v46 = vrot.slane %v8013_v19, 2  ;;  %9531 = vmatmul.mubr.msk.bf16.vlgmr.msra.gmra.mrb[56].mxu0 %vm4486_vm9, %v7955_v29  ;;  %v8027_v47 = vrot.slane %v8014_v56, 1 }
0x11b4   :  { %v8016_v8 = vsel %vm5284_vm10, %v8015_v50, %v8007_v22  ;;  %v6362_v35 = vrot.slane %v6348_v12, %v10413_v25  ;;  %v6364_v13 = vcombine.high %v12414_v34, %v12417_v60  ;;  %v6416_v61 = vcombine.high %v12480_v26, %v12483_v43  ;;  %9542 = vmatprep.mubr.msk.bf16.mxu0 %vm10202_vm0, %v12826_v59 }
0x11b5   :  { %v8018_v3 = vsel %vm5287_vm11, %v8017_v52, %v8016_v8  ;;  %v6432_v44 = vcombine.high %v12490_v20, %v12493_v24  ;;  %v7858_v40 = vmul.f32 %v12396_v36, %v12204_v5  ;;  %v7862_v34 = vmul.f32 %v12402_v21, %v12211_v39 }
0x11b6   :  { %v8020_v31 = vsel %vm5290_vm12, %v8019_v30, %v8018_v3  ;;  %v6378_v29 = vrot.slane %v6364_v13, %v10413_v25  ;;  %v7864_v60 = vmul.f32 %v12411_v55, %v12217_v6  ;;  %v6430_v43 = vrot.slane %v6416_v61, %v10413_v25  ;;  %v12829_v30 = vld [vmem:[#allocation33_spill] sm:$0xff]  ;;  %v12831_v61 = vld [vmem:[#allocation23_spill] sm:$0xff] }
0x11b7   :  { %v8022_v26 = vsel %vm5293_vm13, %v8021_v23, %v8020_v31  ;;  %v6446_v20 = vrot.slane %v6432_v44, %v10413_v25  ;;  %v7866_v24 = vmul.f32 %v12420_v4, %v12220_v41  ;;  %v7868_v37 = vmul.f32 %v12428_v53, %v12225_v57  ;;  %v12827_v4 = vld [vmem:[#allocation32_spill] sm:$0xff]  ;;  %v12830_v13 = vld [vmem:[#allocation25_spill] sm:$0xff] }
0x11b8   :  { %v8024_v5 = vsel %vm5296_vm14, %v8023_v1, %v8022_v26  ;;  %v6381_v36 = vcombine.low %v6362_v35, %v6378_v29  ;;  %v6382_v9 = vcombine.high %v6362_v35, %v6378_v29  ;;  %v7870_v55 = vmul.f32 %v12436_v42, %v12227_v51  ;;  %v12832_v31 = vld [vmem:[#allocation24_spill] sm:$0xff]  ;;  %v12833_v29 = vld [vmem:[#allocation22_spill] sm:$0xff] }
0x11b9   :  { %v8026_v39 = vsel %vm5299_vm15, %v8025_v46, %v8024_v5  ;;  %v6449_v21 = vcombine.low %v6430_v43, %v6446_v20  ;;  %v6450_v6 = vcombine.high %v6430_v43, %v6446_v20  ;;  %v7872_v62 = vmul.f32 %v12445_v2, %v12233_v63  ;;  %v12835_v20 = vld [vmem:[#allocation31_spill] sm:$0xff] }
0x11ba   :  { %v8028_v27 = vsel %vm5302_vm2, %v8027_v47, %v8026_v39  ;;  %v7905_v41 = vpack.c.bf16 %v7858_v40, %v7858_v40  ;;  %v7906_v15 = vpack.c.bf16 %v12827_v4, %v12827_v4  ;;  %v7907_v57 = vpack.c.bf16 %v7862_v34, %v7862_v34 }
0x11bb   :  { %v8029_v28 = vpack.c.b16 %v8028_v27, %v8028_v27  ;;  %v7923_v48 = vpack.c.bf16 %v6449_v21, %v6381_v36  ;;  %v7924_v10 = vpack.c.bf16 %v6450_v6, %v6382_v9  ;;  %v7908_v53 = vpack.c.bf16 %v7864_v60, %v7864_v60  ;;  %v12834_v60 = vld [vmem:[#allocation30_spill] sm:$0xff] }
0x11bc   :  { %v7909_v22 = vpack.c.bf16 %v7866_v24, %v7866_v24  ;;  %v7910_v49 = vpack.c.bf16 %v7868_v37, %v7868_v37  ;;  %v7911_v33 = vpack.c.bf16 %v7870_v55, %v7870_v55  ;;  %v7876_v51 = vmul.f32 %v12477_v16, %v12828_v54 }
0x11bd   :  { %9537 = vmatmul.mubr.msk.bf16.vlgmr.msra.gmra.mrb[84].mxu1 %vm4486_vm9, %v8029_v28  ;;  %9541 = vmatpush3.bf16.msra.mxu0 %v7923_v48  ;;  %v7912_v42 = vpack.c.bf16 %v7872_v62, %v7872_v62  ;;  %v8082_v63 = vunpack.c.l.b16 %v7906_v15  ;;  %v8083_v2 = vunpack.c.l.b16 %v7907_v57  ;;  %v8084_v11 = vunpack.c.l.b16 %v7908_v53 }
0x11be   :  { %9547 = vmatpush3.bf16.msra.mxu1 %v7924_v10  ;;  %9548 = vmatprep.mubr.msk.bf16.mxu1 %vm10202_vm0, %v12826_v59  ;;  %v8085_v58 = vunpack.c.l.b16 %v7909_v22  ;;  %v8086_v19 = vunpack.c.l.b16 %v7910_v49  ;;  %v8087_v56 = vunpack.c.l.b16 %v7911_v33  ;;  %v8081_v50 = vunpack.c.l.b16 %v7905_v41 }
0x11bf   :  { %v8089_v52 = vrot.slane %v8082_v63, 7  ;;  %v8091_v12 = vrot.slane %v8083_v2, 6  ;;  %v7874_v16 = vmul.f32 %v12475_v45, %v12829_v30  ;;  %9552 = vmatprep.subr.bf16.mxu0 %v12826_v59  ;;  %v8088_v23 = vunpack.c.l.b16 %v7912_v42  ;;  %v9679_v30 = vld [vmem:[#allocation5 + $0x1d0] sm:$0xff]  }
0x11c0   :  { %v8093_v1 = vrot.slane %v8084_v11, 5  ;;  %v8095_v46 = vrot.slane %v8085_v58, 4  ;;  %v8097_v8 = vrot.slane %v8086_v19, 3  ;;  %v8099_v35 = vrot.slane %v8087_v56, 2 }
0x11c1   :  { %v8090_v47 = vsel %vm5284_vm10, %v8089_v52, %v8081_v50  ;;  %v7878_v3 = vmul.f32 %v12487_v14, %v12830_v13  ;;  %v7880_v44 = vmul.f32 %v12497_v7, %v12831_v61  ;;  %v7882_v45 = vmul.f32 %v12502_v32, %v12832_v31  ;;  %v9677_v52 = vld [vmem:[#allocation5 + $0x1c0] sm:$0xff]  }
0x11c2   :  { %v8092_v40 = vsel %vm5287_vm11, %v8091_v12, %v8090_v47  ;;  %v7884_v34 = vmul.f32 %v12509_v17, %v12833_v29  ;;  %v7886_v26 = vmul.f32 %v12517_v0, %v12834_v60  ;;  %v7888_v24 = vmul.f32 %v12525_v38, %v12835_v20  ;;  %v9678_v12 = vld [vmem:[#allocation5 + $0x1c8] sm:$0xff]  }
0x11c3   :  { %v8094_v43 = vsel %vm5290_vm12, %v8093_v1, %v8092_v40  ;;  %v7913_v14 = vpack.c.bf16 %v7874_v16, %v7874_v16  ;;  %v7914_v5 = vpack.c.bf16 %v7876_v51, %v7876_v51  ;;  %v7915_v36 = vpack.c.bf16 %v7878_v3, %v7878_v3  ;;  %v9680_v16 = vld [vmem:[#allocation5 + $0x1d8] sm:$0xff]   ;;  %v9682_v1 = vld [vmem:[#allocation5 + $0x1e8] sm:$0xff]  }
0x11c4   :  { %v8096_v7 = vsel %vm5293_vm13, %v8095_v46, %v8094_v43  ;;  %v7916_v9 = vpack.c.bf16 %v7880_v44, %v7880_v44  ;;  %v7917_v37 = vpack.c.bf16 %v7882_v45, %v7882_v45  ;;  %v8101_v39 = vrot.slane %v8088_v23, 1  ;;  %v9681_v23 = vld [vmem:[#allocation5 + $0x1e0] sm:$0xff]  }
0x11c5   :  { %v8098_v32 = vsel %vm5296_vm14, %v8097_v8, %v8096_v7  ;;  %v7918_v21 = vpack.c.bf16 %v7884_v34, %v7884_v34  ;;  %v7919_v17 = vpack.c.bf16 %v7886_v26, %v7886_v26  ;;  %v7920_v0 = vpack.c.bf16 %v7888_v24, %v7888_v24 }
0x11c6   :  { %v8100_v6 = vsel %vm5299_vm15, %v8099_v35, %v8098_v32  ;;  %v8156_v55 = vunpack.c.l.b16 %v7914_v5  ;;  %v8157_v27 = vunpack.c.l.b16 %v7915_v36  ;;  %v8158_v38 = vunpack.c.l.b16 %v7916_v9 }
0x11c7   :  { %v8102_v62 = vsel %vm5302_vm2, %v8101_v39, %v8100_v6  ;;  %v8159_v41 = vunpack.c.l.b16 %v7917_v37  ;;  %v8155_v15 = vunpack.c.l.b16 %v7913_v14  ;;  %v8160_v28 = vunpack.c.l.b16 %v7918_v21 }
0x11c8   :  { %v8103_v4 = vpack.c.b16 %v8102_v62, %v8102_v62  ;;  %v8163_v48 = vrot.slane %v8156_v55, 7  ;;  %v8161_v10 = vunpack.c.l.b16 %v7919_v17  ;;  %v8165_v57 = vrot.slane %v8157_v27, 6 }
0x11c9   :  { %v8162_v53 = vunpack.c.l.b16 %v7920_v0  ;;  %v8167_v49 = vrot.slane %v8158_v38, 5  ;;  %v8169_v54 = vrot.slane %v8159_v41, 4  ;;  %v8171_v42 = vrot.slane %v8160_v28, 3 }
0x11ca   :  { %9543 = vmatmul.mubr.msk.bf16.vlgmr.msra.gmra.mrb[60].mxu0 %vm4486_vm9, %v8103_v4  ;;  %v8164_v22 = vsel %vm5284_vm10, %v8163_v48, %v8155_v15  ;;  %v8173_v2 = vrot.slane %v8161_v10, 2  ;;  %v9683_v15 = vld [vmem:[#allocation5 + $0x1f0] sm:$0xff]  }
0x11cb   :  { %v8166_v33 = vsel %vm5287_vm11, %v8165_v57, %v8164_v22  ;;  %9568 = vmatprep.mubr.msk.bf16.mxu0 %vm10202_vm0, %v12826_v59  ;;  %v8175_v58 = vrot.slane %v8162_v53, 1  ;;  %9553 = vmatpush3.bf16.msra.mxu0 %v9677_v52 }
0x11cc   :  { %v8168_v51 = vsel %vm5290_vm12, %v8167_v49, %v8166_v33  ;;  %9554 = vmatprep.subr.bf16.mxu0 %v12826_v59 }
0x11cd   :  { %v8170_v63 = vsel %vm5293_vm13, %v8169_v54, %v8168_v51 }
0x11ce   :  { %v8172_v11 = vsel %vm5296_vm14, %v8171_v42, %v8170_v63 }
0x11cf   :  { %v8174_v19 = vsel %vm5299_vm15, %v8173_v2, %v8172_v11  ;;  %9555 = vmatpush3.bf16.msra.mxu0 %v9678_v12  ;;  %v9684_v2 = vld [vmem:[#allocation5 + $0x1f8] sm:$0xff]  }
0x11d0   :  { %v8176_v56 = vsel %vm5302_vm2, %v8175_v58, %v8174_v19  ;;  %9556 = vmatprep.subr.bf16.mxu0 %v12826_v59 }
0x11d1   :  { %v8177_v50 = vpack.c.b16 %v8176_v56, %v8176_v56  ;;  %v12836_v56 = vld [vmem:[#allocation26_spill] sm:$0xff] }
0x11d3   :  { %9549 = vmatmul.mubr.msk.bf16.vlgmr.msra.gmra.mrb[88].mxu1 %vm4486_vm9, %v8177_v50  ;;  %9557 = vmatpush3.bf16.msra.mxu0 %v9679_v30  ;;  %v12837_v50 = vld [vmem:[#allocation27_spill] sm:$0xff]  ;;  %v12839_v30 = vld [vmem:[#allocation21_spill] sm:$0xff] }
0x11d4   :  { %9558 = vmatprep.subr.bf16.mxu0 %v12826_v59  ;;  %v12838_v52 = vcombine.low %v12836_v56, %v12837_v50 }
0x11d7   :  { %9559 = vmatpush3.bf16.msra.mxu0 %v9680_v16 }
0x11d8   :  { %9560 = vmatprep.subr.bf16.mxu0 %v12826_v59 }
0x11db   :  { %9561 = vmatpush3.bf16.msra.mxu0 %v9681_v23 }
0x11dc   :  { %9562 = vmatprep.subr.bf16.mxu0 %v12826_v59 }
0x11df   :  { %9563 = vmatpush3.bf16.msra.mxu0 %v9682_v1  ;;  %v12842_v1 = vcombine.high %v12836_v56, %v12837_v50  ;;  %v9710_v56 = vld [vmem:[#allocation8] sm:$0xff]   ;;  %v9711_v50 = vld [vmem:[#allocation8 + $0x48] sm:$0xff]  }
0x11e0   :  { %9564 = vmatprep.subr.bf16.mxu0 %v12826_v59 }
0x11e3   :  { %9565 = vmatpush3.bf16.msra.mxu0 %v9683_v15 }
0x11e4   :  { %9566 = vmatprep.subr.bf16.mxu0 %v12826_v59  ;;  %v12840_v59 = vld [vmem:[#allocation35_spill] sm:$0xff] }
0x11e5   :  { %v12841_v16 = vcombine.high %v12839_v30, %v12840_v59 }
0x11e7   :  { %9567 = vmatpush3.bf16.msra.mxu0 %v9684_v2  ;;  %v10208_v2 = vmov 0  }
0x11e8   :  { %8662 = vmatprep.mubr.bf16.mxu1 %v10208_v2 }
0x1286   :  { %v7993_v46 = vpop.f32.mrb[56].mxu0 }
0x1287   :  { %v9532_v8 = vpop.f32.mrb[57].mxu0 }
0x1288   :  { %v7996_v47 = vpop.f32.mrb[58].mxu0 }
0x1289   :  { %v9533_v35 = vpop.f32.mrb[59].mxu0 }
0x1290   :  { %v8067_v13 = vpop.f32.mrb[84].mxu1 }
0x1291   :  { %v9538_v3 = vpop.f32.mrb[85].mxu1 }
0x1292   :  { %v8070_v61 = vpop.f32.mrb[86].mxu1 }
0x1293   :  { %v9539_v44 = vpop.f32.mrb[87].mxu1  ;;  %v12843_v61 = vcombine.low %v12839_v30, %v12840_v59  ;;  %v9714_v30 = vld [vmem:[#allocation8 + $0x10] sm:$0xff]   ;;  %v9715_v59 = vld [vmem:[#allocation8 + $0x58] sm:$0xff]  }
0x129d   :  { %v8141_v40 = vpop.f32.mrb[60].mxu0 }
0x129e   :  { %v8221_v31 = vcombine.low %v7993_v46, %v8141_v40  ;;  %v8222_v45 = vcombine.high %v7993_v46, %v8141_v40  ;;  %v9544_v29 = vpop.f32.mrb[61].mxu0 }
0x129f   :  { %v8144_v34 = vpop.f32.mrb[62].mxu0 }
0x12a0   :  { %v9545_v60 = vpop.f32.mrb[63].mxu0  ;;  %v8229_v43 = vrot.slane %v8221_v31, %v10410_v18  ;;  %v8236_v20 = vrot.slane %v8222_v45, %v10410_v18 }
0x12a6   :  { %v8215_v26 = vpop.f32.mrb[88].mxu1 }
0x12a7   :  { %v8237_v24 = vcombine.low %v8067_v13, %v8215_v26  ;;  %v8238_v14 = vcombine.high %v8067_v13, %v8215_v26  ;;  %v9550_v5 = vpop.f32.mrb[89].mxu1 }
0x12a8   :  { %v8218_v7 = vpop.f32.mrb[90].mxu1 }
0x12a9   :  { %v8245_v36 = vrot.slane %v8237_v24, %v10410_v18  ;;  %v8252_v9 = vrot.slane %v8238_v14, %v10410_v18  ;;  %v9551_v37 = vpop.f32.mrb[91].mxu1  ;;  %v9016_v24 = vld [vmem:[#allocation2 + $0xb] ss:$0 sm:$0xff] }
0x12ab   :  { %v8253_v32 = vcombine.low %v8229_v43, %v8245_v36  ;;  %v8254_v39 = vcombine.high %v8229_v43, %v8245_v36  ;;  %v8269_v21 = vcombine.low %v8236_v20, %v8252_v9  ;;  %v8270_v17 = vcombine.high %v8236_v20, %v8252_v9  ;;  %v12844_v9 = vld [vmem:[#allocation19_spill] sm:$0xff] }
0x12ad   :  { %v8261_v6 = vrot.slane %v8253_v32, %v10413_v25  ;;  %v8268_v0 = vrot.slane %v8254_v39, %v10413_v25  ;;  %v8277_v55 = vrot.slane %v8269_v21, %v10413_v25  ;;  %v8284_v27 = vrot.slane %v8270_v17, %v10413_v25  ;;  %v12845_v21 = vld [vmem:[#allocation20_spill] sm:$0xff] }
0x12af   :  { %v8289_v62 = vcombine.low %v8261_v6, %v8268_v0  ;;  %v9014_v38 = vcombine.high %v8261_v6, %v8268_v0  ;;  %v8305_v41 = vcombine.low %v8277_v55, %v8284_v27  ;;  %v9015_v4 = vcombine.high %v8277_v55, %v8284_v27  ;;  %v9685_v6 = vld [vmem:[#allocation7] ss:$8 sps:$4 sm:$0xff]   ;;  %v9687_v0 = vld [vmem:[#allocation7 + $0x4] ss:$8 sps:$4 sm:$0xff]   ;;  %v9690_v55 = vld [vmem:[#allocation7 + $0x14] ss:$8 sps:$4 sm:$0xff]  }
0x12b0   :  { %8630 = vmatprep.subr.bf16.mxu1 %v9687_v0  ;;  %v9688_v27 = vld [vmem:[#allocation7 + $0x10] ss:$8 sps:$4 sm:$0xff]  }
0x12b1   :  { %v8296_v28 = vrot.slane %v8289_v62, %v10410_v18  ;;  %v8304_v48 = vrot.slane %v9014_v38, %v10410_v18  ;;  %v8312_v10 = vrot.slane %v8305_v41, %v10410_v18  ;;  %v8320_v57 = vrot.slane %v9015_v4, %v10410_v18  ;;  %8631 = vmatpush1.bf16.msra.mxu1 %v9685_v6 }
0x12b2   :  { %8632 = vmatprep.subr.bf16.mxu1 %v9690_v55 }
0x12b3   :  { %v8322_v53 = vcombine.high %v8296_v28, %v8304_v48  ;;  %v8338_v22 = vcombine.high %v8312_v10, %v8320_v57  ;;  %v8321_v49 = vcombine.low %v8296_v28, %v8304_v48  ;;  %v8337_v33 = vcombine.low %v8312_v10, %v8320_v57  ;;  %v9693_v57 = vld [vmem:[#allocation7 + $0x24] ss:$8 sps:$4 sm:$0xff]  }
0x12b5   :  { %v8336_v54 = vrot.slane %v8322_v53, %v10413_v25  ;;  %v8352_v51 = vrot.slane %v8338_v22, %v10413_v25  ;;  %v8329_v42 = vrot.slane %v8321_v49, %v10413_v25  ;;  %v8345_v63 = vrot.slane %v8337_v33, %v10413_v25  ;;  %8633 = vmatpush1.bf16.msra.mxu1 %v9688_v27  ;;  %v9691_v53 = vld [vmem:[#allocation7 + $0x20] ss:$8 sps:$4 sm:$0xff]   ;;  %v9696_v22 = vld [vmem:[#allocation7 + $0x34] ss:$8 sps:$4 sm:$0xff]   ;;  %v9694_v49 = vld [vmem:[#allocation7 + $0x30] ss:$8 sps:$4 sm:$0xff]  }
0x12b6   :  { %8634 = vmatprep.subr.bf16.mxu1 %v9693_v57  ;;  %v9699_v33 = vld [vmem:[#allocation7 + $0x44] ss:$8 sps:$4 sm:$0xff]  }
0x12b7   :  { %v8355_v11 = vcombine.low %v8336_v54, %v8352_v51  ;;  %v8354_v58 = vcombine.high %v8329_v42, %v8345_v63  ;;  %v8353_v19 = vcombine.low %v8329_v42, %v8345_v63  ;;  %v8356_v18 = vcombine.high %v8336_v54, %v8352_v51  ;;  %v9697_v54 = vld [vmem:[#allocation7 + $0x40] ss:$8 sps:$4 sm:$0xff]   ;;  %v9700_v51 = vld [vmem:[#allocation7 + $0x50] ss:$8 sps:$4 sm:$0xff]   ;;  %v9702_v42 = vld [vmem:[#allocation7 + $0x54] ss:$8 sps:$4 sm:$0xff]  }
0x12b8   :  { %v9705_v63 = vld [vmem:[#allocation7 + $0x64] ss:$8 sps:$4 sm:$0xff]  }
0x12b9   :  { %v9611_v12 = vpack.i.bf16 %v8355_v11, %v12838_v52  ;;  %v9606_v23 = vpack.i.bf16 %v8354_v58, %v12841_v16  ;;  %v9616_v46 = vpack.i.bf16 %v8356_v18, %v12842_v1  ;;  %8635 = vmatpush1.bf16.msra.mxu1 %v9691_v53  ;;  %v9703_v11 = vld [vmem:[#allocation7 + $0x60] ss:$8 sps:$4 sm:$0xff]   ;;  %v9708_v58 = vld [vmem:[#allocation7 + $0x74] ss:$8 sps:$4 sm:$0xff]  }
0x12ba   :  { %8636 = vmatprep.subr.bf16.mxu1 %v9696_v22  ;;  %v9709_v18 = vld [vmem:[#allocation8 + $0x40] sm:$0xff]   ;;  %v9712_v52 = vld [vmem:[#allocation8 + $0x8] sm:$0xff]   ;;  %v9716_v16 = vld [vmem:[#allocation8 + $0x18] sm:$0xff]  }
0x12bb   :  { %9612 = vrot.lane.b32.xlu0 %v9611_v12, %s10192_s19  ;;  %9607 = vrot.lane.b32.xlu1 %v9606_v23, %s10204_s23  ;;  %v9713_v12 = vld [vmem:[#allocation8 + $0x50] sm:$0xff]   ;;  %v9717_v23 = vld [vmem:[#allocation8 + $0x60] sm:$0xff]  }
0x12bc   :  { %9198 = vmatprep.subr.bf16.mxu0 %v9709_v18  ;;  %v9718_v1 = vld [vmem:[#allocation8 + $0x20] sm:$0xff]  }
0x12bd   :  { %8637 = vmatpush1.bf16.msra.mxu1 %v9694_v49 }
0x12be   :  { %8638 = vmatprep.subr.bf16.mxu1 %v9699_v33  ;;  %v9043_v33 = vld [vmem:[#allocation2 + $0xe] ss:$0 sm:$0xff] }
0x12bf   :  { %9617 = vrot.lane.b32.xlu1 %v9616_v46, %s10203_s7  ;;  %v9719_v46 = vld [vmem:[#allocation8 + $0x68] sm:$0xff]  }
0x12c1   :  { %8639 = vmatpush1.bf16.msra.mxu1 %v9697_v54 }
0x12c2   :  { %8640 = vmatprep.subr.bf16.mxu1 %v9702_v42 }
0x12c5   :  { %8641 = vmatpush1.bf16.msra.mxu1 %v9700_v51 }
0x12c6   :  { %8642 = vmatprep.subr.bf16.mxu1 %v9705_v63 }
0x12c9   :  { %8643 = vmatpush1.bf16.msra.mxu1 %v9703_v11 }
0x12ca   :  { %8644 = vmatprep.subr.bf16.mxu1 %v9708_v58 }
0x132d   :  { %v9613_v25 = vpop.permute.xlu0 %9612  ;;  %v9608_v8 = vpop.permute.xlu1 %9607 }
0x132e   :  { %v9610_v47 = vunpack.i.h.bf16 %v9608_v8  ;;  %v9609_v35 = vunpack.i.l.bf16 %v9608_v8  ;;  %v9615_v13 = vunpack.i.h.bf16 %v9613_v25  ;;  %v9614_v3 = vunpack.i.l.bf16 %v9613_v25 }
0x1330   :  { %v5718_v44 = vsel %vm947_vm1, %v12843_v61, %v9609_v35  ;;  %v8369_v40 = vsel %vm947_vm1, %v8353_v19, %v9610_v47  ;;  %v9706_v19 = vld [vmem:[#allocation7 + $0x70] ss:$8 sps:$4 sm:$0xff]  }
0x1331   :  { %v9618_v31 = vpop.permute.xlu1 %9617  ;;  %v5719_v34 = vsel %vm1529_vm6, %v5718_v44, %v9614_v3  ;;  %v8370_v60 = vsel %vm1529_vm6, %v8369_v40, %v9615_v13  ;;  %8645 = vmatpush1.bf16.msra.mxu1 %v9706_v19  ;;  %v9025_v40 = vld [vmem:[#allocation2 + $0xc] ss:$0 sm:$0xff] }
0x1332   :  { %v9620_v45 = vunpack.i.h.bf16 %v9618_v31  ;;  %v9619_v29 = vunpack.i.l.bf16 %v9618_v31 }
0x1334   :  { %v5720_v26 = vsel %vm1531_vm7, %v5719_v34, %v9619_v29  ;;  %v8371_v43 = vsel %vm1531_vm7, %v8370_v60, %v9620_v45  ;;  %v9026_v34 = vld [vmem:[#allocation2 + $0xd] ss:$0 sm:$0xff] }
0x1335   :  { %v8372_v20 = vpack.c.bf16 %v8371_v43, %v5720_v26 }
0x1337   :  { %9569 = vmatmul.mubr.bf16.vlgmr.msra.gmra.mrb[64].mxu0 %v8372_v20 }
0x1338   :  { %9199 = vmatpush3.bf16.msra.mxu0 %v9710_v56 }
0x1339   :  { %9200 = vmatprep.subr.bf16.mxu0 %v9711_v50 }
0x133c   :  { %9201 = vmatpush3.bf16.msra.mxu0 %v9712_v52 }
0x133d   :  { %9202 = vmatprep.subr.bf16.mxu0 %v9713_v12 }
0x1340   :  { %9203 = vmatpush3.bf16.msra.mxu0 %v9714_v30 }
0x1341   :  { %9204 = vmatprep.subr.bf16.mxu0 %v9715_v59 }
0x1344   :  { %9205 = vmatpush3.bf16.msra.mxu0 %v9716_v16 }
0x1345   :  { %9206 = vmatprep.subr.bf16.mxu0 %v9717_v23 }
0x1348   :  { %9207 = vmatpush3.bf16.msra.mxu0 %v9718_v1 }
0x1349   :  { %9208 = vmatprep.subr.bf16.mxu0 %v9719_v46 }
0x140a   :  { %v8476_v14 = vpop.f32.mrb[64].mxu0 }
0x140b   :  { %v8477_v5 = vadd.f32 %v9016_v24, %v8476_v14  ;;  %v9570_v7 = vpop.f32.mrb[65].mxu0  ;;  %v9721_v14 = vld [vmem:[#allocation8 + $0x70] sm:$0xff]  }
0x140c   :  { %v8479_v36 = vpop.f32.mrb[66].mxu0  ;;  %v9723_v7 = vld [vmem:[#allocation8 + $0x78] sm:$0xff]  }
0x140d   :  { %v12658_v37 = vadd.f32 %v8477_v5, %v12844_v9  ;;  %v8480_v32 = vadd.f32 %v9016_v24, %v8479_v36  ;;  %v9571_v39 = vpop.f32.mrb[67].mxu0  ;;  %v9720_v24 = vld [vmem:[#allocation8 + $0x28] sm:$0xff]   ;;  %v9722_v5 = vld [vmem:[#allocation8 + $0x30] sm:$0xff]   ;;  %v9724_v36 = vld [vmem:[#allocation8 + $0x38] sm:$0xff]  }
0x140e   :  { %9209 = vmatpush3.bf16.msra.mxu0 %v9720_v24  ;;  %v8538_v9 = vld [vmem:[%s12702_s3] sm:$0x3]  ;;  %s10209_s3 = smov [#allocation13]  }
0x140f   :  { %v12661_v17 = vadd.f32 %v8480_v32, %v12845_v21  ;;  %8487 = vadd.xlane.f32.xlu0 %v12658_v37  ;;  %9210 = vmatprep.subr.bf16.mxu0 %v9721_v14  ;;  %v12846_v32 = vld [vmem:[#allocation28_spill] sm:$0xff]  ;;  %v12847_v21 = vld [vmem:[#allocation29_spill] sm:$0xff]  ;;  %s8862_s12 = sshll.u32 %s10209_s3, 4  ;;  %s8863_s12 = int_to_ptr.vmem [resolvable:$true] %s8862_s12 }
0x1410   :  { %v8543_v39 = vrot.slane %v8538_v9, %v12846_v32  ;;  %v8547_v6 = vrot.slane %v8538_v9, %v12847_v21  ;;  %s10159_s13 = scalar_lea.vmem %s8863_s12, 256  ;;  %p10164_p7 = scmp.lt.s32.totalorder %s8863_s12, %s8863_s12 }
0x1411   :  { %8489 = vadd.xlane.f32.xlu1 %v12661_v17  ;;  %p10160_p6 = scmp.ne.s32.totalorder %s8863_s12, %s10159_s13  ;;  %p10165_p8 = scmp.lt.s32.totalorder %s10159_s13, %s10159_s13 }
0x1412   :  { %9211 = vmatpush3.bf16.msra.mxu0 %v9722_v5 }
0x1413   :  { %9212 = vmatprep.subr.bf16.mxu0 %v9723_v7  ;;  %p10166_p9 = por %p10165_p8, %p10164_p7 }
0x1415   :  { %p10167_p10 = pnand %p10166_p9, %p10160_p6 }
0x1416   :  { %9213 = vmatpush3.bf16.msra.mxu0 %v9724_v36 }
0x149c   :  { %v8488_v62 = vpop.xlane.xlu0 %8487 }
0x149d   :  { %v8491_v38 = vmul.f32 0.0078125, %v8488_v62 }
0x149e   :  { %v8490_v41 = vpop.xlane.xlu1 %8489 }
0x149f   :  { %v12666_v4 = vsub.f32 %v12658_v37, %v8491_v38  ;;  %v8492_v15 = vmul.f32 0.0078125, %v8490_v41 }
0x14a1   :  { %v12669_v28 = vsub.f32 %v12661_v17, %v8492_v15  ;;  %v8495_v48 = vmul.f32 %v12666_v4, %v12666_v4 }
0x14a3   :  { %8497 = vadd.xlane.f32.xlu0 %v8495_v48  ;;  %v8496_v10 = vmul.f32 %v12669_v28, %v12669_v28 }
0x14a7   :  { %8499 = vadd.xlane.f32.xlu0 %v8496_v10 }
0x1530   :  { %v8498_v25 = vpop.xlane.xlu0 %8497 }
0x1531   :  { %v8501_v8 = vmul.f32 0.0078125, %v8498_v25 }
0x1533   :  { %v8503_v47 = vadd.f32 1e-05, %v8501_v8 }
0x1534   :  { %v8500_v35 = vpop.xlane.xlu0 %8499 }
0x1535   :  { %10021 = vrsqrt.f32 %v8503_v47  ;;  %v8502_v13 = vmul.f32 0.0078125, %v8500_v35 }
0x1537   :  { %v8504_v3 = vadd.f32 1e-05, %v8502_v13 }
0x1539   :  { %10023 = vrsqrt.f32 %v8504_v3 }
0x153f   :  { %v10022_v61 = vpop.eup %10021 }
0x1540   :  { %v8507_v44 = vmul.f32 %v10022_v61, %v12666_v4 }
0x1542   :  { %v8513_v29 = vmul.f32 %v9025_v40, %v8507_v44 }
0x1543   :  { %v10024_v31 = vpop.eup %10023 }
0x1544   :  { %v8508_v45 = vmul.f32 %v10024_v31, %v12669_v28  ;;  %v8519_v26 = vadd.f32 %v9026_v34, %v8513_v29 }
0x1546   :  { %v8514_v60 = vmul.f32 %v9025_v40, %v8508_v45 }
0x1548   :  { %v8520_v43 = vadd.f32 %v9026_v34, %v8514_v60 }
0x154a   :  { %v8521_v20 = vpack.c.bf16 %v8520_v43, %v8519_v26 }
0x154c   :  { %8663 = vmatmul.mubr.bf16.vlgmr.msra.gmra.mrb[92].mxu1 %v8521_v20 }
0x161f   :  { %v8664_v0 = vpop.f32.mrb[92].mxu1 }
0x1620   :  { %v8665_v55 = vadd.f32 %v8664_v0, %v8543_v39  ;;  %v8666_v27 = vpop.f32.mrb[93].mxu1 }
0x1621   :  { %v8667_v62 = vadd.f32 %v8666_v27, %v8547_v6  ;;  %v8668_v38 = vpop.f32.mrb[94].mxu1 }
0x1622   :  { %v8669_v41 = vadd.f32 %v8668_v38, %v8543_v39  ;;  %v8670_v4 = vpop.f32.mrb[95].mxu1  ;;  %v8673_v28 = vmax.f32 %v8665_v55, 0.0 }
0x1623   :  { %v8671_v15 = vadd.f32 %v8670_v4, %v8547_v6  ;;  %v8674_v10 = vmax.f32 %v8667_v62, 0.0 }
0x1624   :  { %v8675_v48 = vmax.f32 %v8669_v41, 0.0 }
0x1625   :  { %v8676_v57 = vmax.f32 %v8671_v15, 0.0 }
0x1626   :  { %v8677_v53 = vpack.c.bf16 %v8675_v48, %v8673_v28 }
0x1627   :  { %v8678_v22 = vpack.c.bf16 %v8676_v57, %v8674_v10 }
0x1629   :  { %8844 = vmatprep.mubr.bf16.mxu0 %v8678_v22 }
0x162a   :  { %8845 = vmatmul.mubr.bf16.vlgmr.msra.gmra.mrb[68].mxu0 %v8677_v53 }
0x16fd   :  { %v9214_v49 = vpop.f32.mrb[68].mxu0 }
0x16fe   :  { %v9215_v54 = vpop.f32.mrb[69].mxu0 }
0x16ff   :  { %v9216_v51 = vadd.f32 %v9215_v54, %v9214_v49  ;;  %v9217_v42 = vpop.f32.mrb[70].mxu0 }
0x1700   :  { %v9218_v63 = vpop.f32.mrb[71].mxu0 }
0x1701   :  { %v8847_v2 = vadd.f32 %v9216_v51, %v9043_v33  ;;  %v9219_v11 = vadd.f32 %v9218_v63, %v9217_v42 }
0x1703   :  { %v8853_v58 = vadd.f32 %v8847_v2, %v12658_v37  ;;  %v8850_v19 = vadd.f32 %v9219_v11, %v9043_v33 }
0x1705   :  { %8855 = vst [vmem:[#allocation13] sm:$0xff] %v8853_v58  ;;  %v8854_v18 = vadd.f32 %v8850_v19, %v12661_v17 }
0x1707   :  { %8856 = vst [vmem:[#allocation13 + $0x8] sm:$0xff] %v8854_v18 }
0x1708   :  { %10170 = shalt.err (!%p10167_p10)
}
0x1709   :  { %s10171_s14 = scalar_lea.hbm %s12708_s9, 256 }
0x170a   :  { %p10172_p11 = scmp.ne.s32.totalorder %s12708_s9, %s10171_s14  ;;  %p10175_p12 = scmp.lt.u32.totalorder %s10171_s14, %s12708_s9 }
0x170c   :  { %p10177_p13 = pnand %p10175_p12, %p10172_p11 }
0x170e   :  { %10180 = shalt.err (!%p10177_p13)
}
0x170f   :  { %8868 = dma.vmem_to_hbm [thread:$0]  %s8863_s12, 256, %s12708_s9, [#allocation4], %s10196_s4, %s10196_s4, %s10197_s20  }
0x1710   :  { %10189 = dma.done.wait [#allocation4], 256  }
0x1711   :  { %10190 = vsyncadd [#allocation4], 4294967040 }
0x1712   :  { %8872 = vsyncpa [#allocation3], 1 }
0x1713   :  { %8873 = vsyncpa [#allocation6], 1 }
0x1714   :  { %8874 = vsyncpa [#allocation9], 1 }
0x1715   :  { %8875 = vsyncpa [#allocation12], 1 }
0x1716   :  { %8876 = vsyncpa [#allocation4], 1 }

</bundles_post_ra>
